<compile_context>
chip_gen: v7x
topology: tpu7x:2x2x1
jax: 0.10.0
libtpu: 0.0.40
codegen_flags: <defaults>
</compile_context>

<pallas_src>
import jax
import jax.numpy as jnp
from jax.experimental import pallas as pl
from jax.experimental.pallas import tpu as pltpu


def _lstm_general_kernel(x2d_ref,
                         wih1, whh1, b1,
                         wcat2, b2, wcat3, b3, wcat4, b4,
                         wfc, bfc,
                         y_ref, st_ref,
                         gx1_s, h4_s):
    TB, F = x2d_ref.shape            # TB = LEN * Bp
    H = st_ref.shape[-1]
    Bp = st_ref.shape[-2]
    LEN = TB // Bp
    G = 4 * H

    # ----- Hoisted loop invariants (emitted once, not 32x) -----
    lane = jax.lax.broadcasted_iota(jnp.int32, (Bp, G), 1)
    is_g = jnp.logical_and(lane >= 2 * H, lane < 3 * H)      # tanh ('g') gate lanes
    b2b = jnp.broadcast_to(b2[...], (Bp, G))
    b3b = jnp.broadcast_to(b3[...], (Bp, G))
    b4b = jnp.broadcast_to(b4[...], (Bp, G))
    whh1_v = whh1[...]                                       # (H, 4H)

    # Layer-1 input projection for ALL timesteps in one batched dot (bias folded),
    # staged in VMEM scratch -- off the recurrence critical path.
    gx1_s[...] = (jnp.dot(x2d_ref[...], wih1[...],
                          preferred_element_type=jnp.float32) + b1[...])

    def activations(gates):
        # Single EUP pass: sigmoid(x) = 0.5 * (tanh(0.5 * x) + 1).
        pre = jnp.where(is_g, gates, 0.5 * gates)
        t = jnp.tanh(pre)
        return jnp.where(is_g, t, 0.5 * t + 0.5)

    def update(act, c):
        i_g = act[:, 0 * H:1 * H]
        f_g = act[:, 1 * H:2 * H]
        g_g = act[:, 2 * H:3 * H]
        o_g = act[:, 3 * H:4 * H]
        c_new = f_g * c + i_g * g_g
        h_new = o_g * jnp.tanh(c_new)
        return h_new, c_new

    def fused_cell(x_in, h, c, wcat_ref, b_bcast):
        # gates = [x_in | h] @ [Wih ; Whh] + b  -> one MXU push per cell.
        # (Fallback if lane-concat lowers poorly: two 32-lane-offset stores
        #  into a (Bp, 2H) VMEM scratch, then a single load.)
        xh = jnp.concatenate([x_in, h], axis=-1)             # (Bp, 2H)
        gates = jnp.dot(xh, wcat_ref[...],
                        preferred_element_type=jnp.float32) + b_bcast
        return update(activations(gates), c)

    zeros = jnp.zeros((Bp, H), jnp.float32)
    h1 = c1 = h2 = c2 = h3 = c3 = h4 = c4 = zeros

    # Fully unrolled time loop (LEN small & static): lets the scheduler
    # wavefront-overlap layer 4 of step t with layer 1 of step t+1.
    for t in range(LEN):
        # Layer 1: x-projection precomputed; only h1 @ Whh1 on the chain.
        g1 = gx1_s[pl.ds(t * Bp, Bp), :] + jnp.dot(
            h1, whh1_v, preferred_element_type=jnp.float32)
        h1, c1 = update(activations(g1), c1)

        h2, c2 = fused_cell(h1, h2, c2, wcat2, b2b)
        h3, c3 = fused_cell(h2, h3, c3, wcat3, b3b)
        h4, c4 = fused_cell(h3, h4, c4, wcat4, b4b)

        h4_s[pl.ds(t * Bp, Bp), :] = h4

    # Batched FC head: one (LEN*Bp, H) @ (H, F) dot + one y store.
    y_ref[...] = (jnp.dot(h4_s[...], wfc[...],
                          preferred_element_type=jnp.float32)
                  + bfc[...]).astype(y_ref.dtype)

    # Final states: (8, Bp, H) = (ht1, ct1, ht2, ct2, ht3, ct3, ht4, ct4).
    for k, s in enumerate((h1, c1, h2, c2, h3, c3, h4, c4)):
        st_ref[k] = s


@jax.jit
def lstm_general_forward(x, params):
    """x: (LEN, B, F) float32.  params: dict of pre-transposed weights.

    Returns (y, (ht1, ct1, ht2, ct2, ht3, ct3, ht4, ct4)) like the PyTorch module.
    """
    LEN, B, F = x.shape
    H = params["whh1"].shape[0]

    # Pad batch up to a full sublane group (multiple of 8); sliced off on the way out.
    B_pad = ((B + 7) // 8) * 8
    x_p = x if B_pad == B else jnp.pad(x, ((0, 0), (0, B_pad - B), (0, 0)))
    x2d = x_p.reshape(LEN * B_pad, F)          # time folded into sublanes

    # K-stacked weights for the fused layer-2..4 cells: [Wih ; Whh] -> (2H, 4H).
    wcat = {l: jnp.concatenate([params[f"wih{l}"], params[f"whh{l}"]], axis=0)
            for l in (2, 3, 4)}

    vmem = pl.BlockSpec(memory_space=pltpu.MemorySpace.VMEM)

    args = [x2d,
            params["wih1"], params["whh1"], params["b1"],
            wcat[2], params["b2"],
            wcat[3], params["b3"],
            wcat[4], params["b4"],
            params["wfc"], params["bfc"]]

    y2d, st_p = pl.pallas_call(
        _lstm_general_kernel,
        out_shape=(jax.ShapeDtypeStruct((LEN * B_pad, F), jnp.float32),
                   jax.ShapeDtypeStruct((8, B_pad, H), jnp.float32)),
        in_specs=[vmem] * len(args),
        out_specs=(vmem, vmem),
        scratch_shapes=[pltpu.VMEM((LEN * B_pad, 4 * H), jnp.float32),   # gx1
                        pltpu.VMEM((LEN * B_pad, H), jnp.float32)],      # h4 staging
    )(*args)

    y = y2d.reshape(LEN, B_pad, F)[:, :B, :]
    st = st_p[:, :B, :]
    states = tuple(st[k] for k in range(8))
    return y, states


def make_params(key, inp_features, size):
    """Deterministic parameter init (PyTorch-style uniform(-1/sqrt(H), 1/sqrt(H)))."""
    H = size
    bound = 1.0 / jnp.sqrt(jnp.float32(H))
    params = {}
    keys = jax.random.split(key, 4 * 4 + 2)
    k = iter(keys)

    def u(kk, shape):
        return jax.random.uniform(kk, shape, jnp.float32, -bound, bound)

    in_sizes = [inp_features, H, H, H]
    for l, in_sz in zip((1, 2, 3, 4), in_sizes):
        # stored pre-transposed: (in, 4H), (H, 4H); combined bias b_ih + b_hh as (1, 4H)
        params[f"wih{l}"] = u(next(k), (in_sz, 4 * H))
        params[f"whh{l}"] = u(next(k), (H, 4 * H))
        params[f"b{l}"] = u(next(k), (1, 4 * H)) + u(next(k), (1, 4 * H))
    # fc1: (inp_features, H) in torch -> stored transposed (H, inp_features)
    params["wfc"] = u(next(k), (H, inp_features))
    params["bfc"] = u(next(k), (1, inp_features))
    return params


def reference_forward(x, params):
    """Pure-JAX reference (lax.scan) for verification."""
    H = params["whh1"].shape[0]

    def cell(x_in, h, c, wih, whh, b):
        g = x_in @ wih + h @ whh + b
        i = jax.nn.sigmoid(g[:, 0 * H:1 * H])
        f = jax.nn.sigmoid(g[:, 1 * H:2 * H])
        gg = jnp.tanh(g[:, 2 * H:3 * H])
        o = jax.nn.sigmoid(g[:, 3 * H:4 * H])
        c_new = f * c + i * gg
        h_new = o * jnp.tanh(c_new)
        return h_new, c_new

    B = x.shape[1]
    init = tuple(jnp.zeros((B, H), jnp.float32) for _ in range(8))

    def step(carry, x_t):
        h1, c1, h2, c2, h3, c3, h4, c4 = carry
        h1, c1 = cell(x_t, h1, c1, params["wih1"], params["whh1"], params["b1"])
        h2, c2 = cell(h1, h2, c2, params["wih2"], params["whh2"], params["b2"])
        h3, c3 = cell(h2, h3, c3, params["wih3"], params["whh3"], params["b3"])
        h4, c4 = cell(h3, h4, c4, params["wih4"], params["whh4"], params["b4"])
        y_t = h4 @ params["wfc"] + params["bfc"]
        return (h1, c1, h2, c2, h3, c3, h4, c4), y_t

    carry, y = jax.lax.scan(step, init, x)
    return y, carry


if __name__ == "__main__":
    LEN, BSIZE, INP, SIZE = 8, 2, 8, 32   # seq=8, batch=2, inp_features=8, hidden=32

    key = jax.random.PRNGKey(0)
    kx, kp = jax.random.split(key)
    x = jax.random.normal(kx, (LEN, BSIZE, INP), jnp.float32)
    params = make_params(kp, INP, SIZE)

    y, states = lstm_general_forward(x, params)
    jax.block_until_ready(y)

    y_ref, states_ref = reference_forward(x, params)
    assert jnp.allclose(y, y_ref, atol=1e-4, rtol=1e-4)
    for s, sr in zip(states, states_ref):
        assert jnp.allclose(s, sr, atol=1e-4, rtol=1e-4)

    print("KERNEL_OK")
</pallas_src>

<mosaic_0001>
module attributes {stable_mosaic.version = 11 : i64} {
  func.func @_lstm_general_kernel(%arg0: memref<64x8xf32, #tpu.memory_space<vmem>>, %arg1: memref<8x128xf32, #tpu.memory_space<vmem>>, %arg2: memref<32x128xf32, #tpu.memory_space<vmem>>, %arg3: memref<1x128xf32, #tpu.memory_space<vmem>>, %arg4: memref<64x128xf32, #tpu.memory_space<vmem>>, %arg5: memref<1x128xf32, #tpu.memory_space<vmem>>, %arg6: memref<64x128xf32, #tpu.memory_space<vmem>>, %arg7: memref<1x128xf32, #tpu.memory_space<vmem>>, %arg8: memref<64x128xf32, #tpu.memory_space<vmem>>, %arg9: memref<1x128xf32, #tpu.memory_space<vmem>>, %arg10: memref<32x8xf32, #tpu.memory_space<vmem>>, %arg11: memref<1x8xf32, #tpu.memory_space<vmem>>, %arg12: memref<64x8xf32, #tpu.memory_space<vmem>>, %arg13: memref<8x8x32xf32, #tpu.memory_space<vmem>>, %arg14: memref<64x128xf32, #tpu.memory_space<vmem>>, %arg15: memref<64x32xf32, #tpu.memory_space<vmem>>) attributes {dimension_semantics = [], scalar_prefetch = 0 : i64, scratch_operands = 2 : i64, tpu.core_type = #tpu.core_type<tc>} {
    %0 = tpu.iota {dimensions = array<i32: 1>} : vector<8x128xi32>
    %c64_i32 = arith.constant 64 : i32
    %1 = vector.broadcast %c64_i32 : i32 to vector<8x128xi32>
    %2 = arith.cmpi sge, %0, %1 : vector<8x128xi32>
    %c96_i32 = arith.constant 96 : i32
    %3 = vector.broadcast %c96_i32 : i32 to vector<8x128xi32>
    %4 = arith.cmpi slt, %0, %3 : vector<8x128xi32>
    %5 = arith.andi %2, %4 : vector<8x128xi1>
    %c0 = arith.constant 0 : index
    %c0_0 = arith.constant 0 : index
    %6 = vector.load %arg5[%c0, %c0_0] : memref<1x128xf32, #tpu.memory_space<vmem>>, vector<1x128xf32>
    %7 = vector.shape_cast %6 : vector<1x128xf32> to vector<1x128xf32>
    %8 = vector.broadcast %7 : vector<1x128xf32> to vector<8x128xf32>
    %c0_1 = arith.constant 0 : index
    %c0_2 = arith.constant 0 : index
    %9 = vector.load %arg7[%c0_1, %c0_2] : memref<1x128xf32, #tpu.memory_space<vmem>>, vector<1x128xf32>
    %10 = vector.shape_cast %9 : vector<1x128xf32> to vector<1x128xf32>
    %11 = vector.broadcast %10 : vector<1x128xf32> to vector<8x128xf32>
    %c0_3 = arith.constant 0 : index
    %c0_4 = arith.constant 0 : index
    %12 = vector.load %arg9[%c0_3, %c0_4] : memref<1x128xf32, #tpu.memory_space<vmem>>, vector<1x128xf32>
    %13 = vector.shape_cast %12 : vector<1x128xf32> to vector<1x128xf32>
    %14 = vector.broadcast %13 : vector<1x128xf32> to vector<8x128xf32>
    %c0_5 = arith.constant 0 : index
    %c0_6 = arith.constant 0 : index
    %15 = vector.load %arg2[%c0_5, %c0_6] : memref<32x128xf32, #tpu.memory_space<vmem>>, vector<32x128xf32>
    %c0_7 = arith.constant 0 : index
    %c0_8 = arith.constant 0 : index
    %16 = vector.load %arg0[%c0_7, %c0_8] : memref<64x8xf32, #tpu.memory_space<vmem>>, vector<64x8xf32>
    %c0_9 = arith.constant 0 : index
    %c0_10 = arith.constant 0 : index
    %17 = vector.load %arg1[%c0_9, %c0_10] : memref<8x128xf32, #tpu.memory_space<vmem>>, vector<8x128xf32>
    %cst = arith.constant dense<0.000000e+00> : vector<64x128xf32>
    %18 = tpu.matmul %16, %17, %cst {dimension_numbers = #tpu.dot_dimension_numbers<[1], [0], [0], [1], [0, 0, 1, 1], [], []>} : vector<64x8xf32>, vector<8x128xf32>, vector<64x128xf32> -> vector<64x128xf32>
    %c0_11 = arith.constant 0 : index
    %c0_12 = arith.constant 0 : index
    %19 = vector.load %arg3[%c0_11, %c0_12] : memref<1x128xf32, #tpu.memory_space<vmem>>, vector<1x128xf32>
    %20 = vector.broadcast %19 : vector<1x128xf32> to vector<64x128xf32>
    %21 = arith.addf %18, %20 : vector<64x128xf32>
    %c0_13 = arith.constant 0 : index
    %c0_14 = arith.constant 0 : index
    %22 = vector.load %arg14[%c0_13, %c0_14] : memref<64x128xf32, #tpu.memory_space<vmem>>, vector<64x128xf32>
    tpu.vector_store %arg14[%c0_13, %c0_14], %21 {strides = array<i32>} : memref<64x128xf32, #tpu.memory_space<vmem>>, vector<64x128xf32>,
    %cst_15 = arith.constant 0.000000e+00 : f32
    %23 = vector.broadcast %cst_15 : f32 to vector<8x32xf32>
    %c0_16 = arith.constant 0 : index
    %c0_17 = arith.constant 0 : index
    %24 = vector.load %arg14[%c0_16, %c0_17] : memref<64x128xf32, #tpu.memory_space<vmem>>, vector<8x128xf32>
    %cst_18 = arith.constant dense<0.000000e+00> : vector<8x128xf32>
    %25 = tpu.matmul %23, %15, %cst_18 {dimension_numbers = #tpu.dot_dimension_numbers<[1], [0], [0], [1], [0, 0, 1, 1], [], []>} : vector<8x32xf32>, vector<32x128xf32>, vector<8x128xf32> -> vector<8x128xf32>
    %26 = arith.addf %24, %25 : vector<8x128xf32>
    %cst_19 = arith.constant 5.000000e-01 : f32
    %27 = vector.broadcast %cst_19 : f32 to vector<8x128xf32>
    %28 = arith.mulf %27, %26 : vector<8x128xf32>
    %29 = arith.select %5, %26, %28 : vector<8x128xi1>, vector<8x128xf32>
    %30 = math.tanh %29 : vector<8x128xf32>
    %cst_20 = arith.constant 5.000000e-01 : f32
    %31 = vector.broadcast %cst_20 : f32 to vector<8x128xf32>
    %32 = arith.mulf %31, %30 : vector<8x128xf32>
    %cst_21 = arith.constant 5.000000e-01 : f32
    %33 = vector.broadcast %cst_21 : f32 to vector<8x128xf32>
    %34 = arith.addf %32, %33 : vector<8x128xf32>
    %35 = arith.select %5, %30, %34 : vector<8x128xi1>, vector<8x128xf32>
    %36 = vector.extract_strided_slice %35 {offsets = [0, 0], sizes = [8, 32], strides = [1, 1]} : vector<8x128xf32> to vector<8x32xf32>
    %37 = vector.extract_strided_slice %35 {offsets = [0, 32], sizes = [8, 32], strides = [1, 1]} : vector<8x128xf32> to vector<8x32xf32>
    %38 = vector.extract_strided_slice %35 {offsets = [0, 64], sizes = [8, 32], strides = [1, 1]} : vector<8x128xf32> to vector<8x32xf32>
    %39 = vector.extract_strided_slice %35 {offsets = [0, 96], sizes = [8, 32], strides = [1, 1]} : vector<8x128xf32> to vector<8x32xf32>
    %40 = arith.mulf %37, %23 : vector<8x32xf32>
    %41 = arith.mulf %36, %38 : vector<8x32xf32>
    %42 = arith.addf %40, %41 : vector<8x32xf32>
    %43 = math.tanh %42 : vector<8x32xf32>
    %44 = arith.mulf %39, %43 : vector<8x32xf32>
    %45 = tpu.concatenate %44, %23 in 1 : vector<8x32xf32>, vector<8x32xf32> -> vector<8x64xf32>
    %c0_22 = arith.constant 0 : index
    %c0_23 = arith.constant 0 : index
    %46 = vector.load %arg4[%c0_22, %c0_23] : memref<64x128xf32, #tpu.memory_space<vmem>>, vector<64x128xf32>
    %cst_24 = arith.constant dense<0.000000e+00> : vector<8x128xf32>
    %47 = tpu.matmul %45, %46, %cst_24 {dimension_numbers = #tpu.dot_dimension_numbers<[1], [0], [0], [1], [0, 0, 1, 1], [], []>} : vector<8x64xf32>, vector<64x128xf32>, vector<8x128xf32> -> vector<8x128xf32>
    %48 = arith.addf %47, %8 : vector<8x128xf32>
    %cst_25 = arith.constant 5.000000e-01 : f32
    %49 = vector.broadcast %cst_25 : f32 to vector<8x128xf32>
    %50 = arith.mulf %49, %48 : vector<8x128xf32>
    %51 = arith.select %5, %48, %50 : vector<8x128xi1>, vector<8x128xf32>
    %52 = math.tanh %51 : vector<8x128xf32>
    %cst_26 = arith.constant 5.000000e-01 : f32
    %53 = vector.broadcast %cst_26 : f32 to vector<8x128xf32>
    %54 = arith.mulf %53, %52 : vector<8x128xf32>
    %cst_27 = arith.constant 5.000000e-01 : f32
    %55 = vector.broadcast %cst_27 : f32 to vector<8x128xf32>
    %56 = arith.addf %54, %55 : vector<8x128xf32>
    %57 = arith.select %5, %52, %56 : vector<8x128xi1>, vector<8x128xf32>
    %58 = vector.extract_strided_slice %57 {offsets = [0, 0], sizes = [8, 32], strides = [1, 1]} : vector<8x128xf32> to vector<8x32xf32>
    %59 = vector.extract_strided_slice %57 {offsets = [0, 32], sizes = [8, 32], strides = [1, 1]} : vector<8x128xf32> to vector<8x32xf32>
    %60 = vector.extract_strided_slice %57 {offsets = [0, 64], sizes = [8, 32], strides = [1, 1]} : vector<8x128xf32> to vector<8x32xf32>
    %61 = vector.extract_strided_slice %57 {offsets = [0, 96], sizes = [8, 32], strides = [1, 1]} : vector<8x128xf32> to vector<8x32xf32>
    %62 = arith.mulf %59, %23 : vector<8x32xf32>
    %63 = arith.mulf %58, %60 : vector<8x32xf32>
    %64 = arith.addf %62, %63 : vector<8x32xf32>
    %65 = math.tanh %64 : vector<8x32xf32>
    %66 = arith.mulf %61, %65 : vector<8x32xf32>
    %67 = tpu.concatenate %66, %23 in 1 : vector<8x32xf32>, vector<8x32xf32> -> vector<8x64xf32>
    %c0_28 = arith.constant 0 : index
    %c0_29 = arith.constant 0 : index
    %68 = vector.load %arg6[%c0_28, %c0_29] : memref<64x128xf32, #tpu.memory_space<vmem>>, vector<64x128xf32>
    %cst_30 = arith.constant dense<0.000000e+00> : vector<8x128xf32>
    %69 = tpu.matmul %67, %68, %cst_30 {dimension_numbers = #tpu.dot_dimension_numbers<[1], [0], [0], [1], [0, 0, 1, 1], [], []>} : vector<8x64xf32>, vector<64x128xf32>, vector<8x128xf32> -> vector<8x128xf32>
    %70 = arith.addf %69, %11 : vector<8x128xf32>
    %cst_31 = arith.constant 5.000000e-01 : f32
    %71 = vector.broadcast %cst_31 : f32 to vector<8x128xf32>
    %72 = arith.mulf %71, %70 : vector<8x128xf32>
    %73 = arith.select %5, %70, %72 : vector<8x128xi1>, vector<8x128xf32>
    %74 = math.tanh %73 : vector<8x128xf32>
    %cst_32 = arith.constant 5.000000e-01 : f32
    %75 = vector.broadcast %cst_32 : f32 to vector<8x128xf32>
    %76 = arith.mulf %75, %74 : vector<8x128xf32>
    %cst_33 = arith.constant 5.000000e-01 : f32
    %77 = vector.broadcast %cst_33 : f32 to vector<8x128xf32>
    %78 = arith.addf %76, %77 : vector<8x128xf32>
    %79 = arith.select %5, %74, %78 : vector<8x128xi1>, vector<8x128xf32>
    %80 = vector.extract_strided_slice %79 {offsets = [0, 0], sizes = [8, 32], strides = [1, 1]} : vector<8x128xf32> to vector<8x32xf32>
    %81 = vector.extract_strided_slice %79 {offsets = [0, 32], sizes = [8, 32], strides = [1, 1]} : vector<8x128xf32> to vector<8x32xf32>
    %82 = vector.extract_strided_slice %79 {offsets = [0, 64], sizes = [8, 32], strides = [1, 1]} : vector<8x128xf32> to vector<8x32xf32>
    %83 = vector.extract_strided_slice %79 {offsets = [0, 96], sizes = [8, 32], strides = [1, 1]} : vector<8x128xf32> to vector<8x32xf32>
    %84 = arith.mulf %81, %23 : vector<8x32xf32>
    %85 = arith.mulf %80, %82 : vector<8x32xf32>
    %86 = arith.addf %84, %85 : vector<8x32xf32>
    %87 = math.tanh %86 : vector<8x32xf32>
    %88 = arith.mulf %83, %87 : vector<8x32xf32>
    %89 = tpu.concatenate %88, %23 in 1 : vector<8x32xf32>, vector<8x32xf32> -> vector<8x64xf32>
    %c0_34 = arith.constant 0 : index
    %c0_35 = arith.constant 0 : index
    %90 = vector.load %arg8[%c0_34, %c0_35] : memref<64x128xf32, #tpu.memory_space<vmem>>, vector<64x128xf32>
    %cst_36 = arith.constant dense<0.000000e+00> : vector<8x128xf32>
    %91 = tpu.matmul %89, %90, %cst_36 {dimension_numbers = #tpu.dot_dimension_numbers<[1], [0], [0], [1], [0, 0, 1, 1], [], []>} : vector<8x64xf32>, vector<64x128xf32>, vector<8x128xf32> -> vector<8x128xf32>
    %92 = arith.addf %91, %14 : vector<8x128xf32>
    %cst_37 = arith.constant 5.000000e-01 : f32
    %93 = vector.broadcast %cst_37 : f32 to vector<8x128xf32>
    %94 = arith.mulf %93, %92 : vector<8x128xf32>
    %95 = arith.select %5, %92, %94 : vector<8x128xi1>, vector<8x128xf32>
    %96 = math.tanh %95 : vector<8x128xf32>
    %cst_38 = arith.constant 5.000000e-01 : f32
    %97 = vector.broadcast %cst_38 : f32 to vector<8x128xf32>
    %98 = arith.mulf %97, %96 : vector<8x128xf32>
    %cst_39 = arith.constant 5.000000e-01 : f32
    %99 = vector.broadcast %cst_39 : f32 to vector<8x128xf32>
    %100 = arith.addf %98, %99 : vector<8x128xf32>
    %101 = arith.select %5, %96, %100 : vector<8x128xi1>, vector<8x128xf32>
    %102 = vector.extract_strided_slice %101 {offsets = [0, 0], sizes = [8, 32], strides = [1, 1]} : vector<8x128xf32> to vector<8x32xf32>
    %103 = vector.extract_strided_slice %101 {offsets = [0, 32], sizes = [8, 32], strides = [1, 1]} : vector<8x128xf32> to vector<8x32xf32>
    %104 = vector.extract_strided_slice %101 {offsets = [0, 64], sizes = [8, 32], strides = [1, 1]} : vector<8x128xf32> to vector<8x32xf32>
    %105 = vector.extract_strided_slice %101 {offsets = [0, 96], sizes = [8, 32], strides = [1, 1]} : vector<8x128xf32> to vector<8x32xf32>
    %106 = arith.mulf %103, %23 : vector<8x32xf32>
    %107 = arith.mulf %102, %104 : vector<8x32xf32>
    %108 = arith.addf %106, %107 : vector<8x32xf32>
    %109 = math.tanh %108 : vector<8x32xf32>
    %110 = arith.mulf %105, %109 : vector<8x32xf32>
    %c0_40 = arith.constant 0 : index
    %c0_41 = arith.constant 0 : index
    %111 = vector.load %arg15[%c0_40, %c0_41] : memref<64x32xf32, #tpu.memory_space<vmem>>, vector<8x32xf32>
    tpu.vector_store %arg15[%c0_40, %c0_41], %110 {strides = array<i32>} : memref<64x32xf32, #tpu.memory_space<vmem>>, vector<8x32xf32>,
    %c8 = arith.constant 8 : index
    %c0_42 = arith.constant 0 : index
    %112 = vector.load %arg14[%c8, %c0_42] : memref<64x128xf32, #tpu.memory_space<vmem>>, vector<8x128xf32>
    %cst_43 = arith.constant dense<0.000000e+00> : vector<8x128xf32>
    %113 = tpu.matmul %44, %15, %cst_43 {dimension_numbers = #tpu.dot_dimension_numbers<[1], [0], [0], [1], [0, 0, 1, 1], [], []>} : vector<8x32xf32>, vector<32x128xf32>, vector<8x128xf32> -> vector<8x128xf32>
    %114 = arith.addf %112, %113 : vector<8x128xf32>
    %cst_44 = arith.constant 5.000000e-01 : f32
    %115 = vector.broadcast %cst_44 : f32 to vector<8x128xf32>
    %116 = arith.mulf %115, %114 : vector<8x128xf32>
    %117 = arith.select %5, %114, %116 : vector<8x128xi1>, vector<8x128xf32>
    %118 = math.tanh %117 : vector<8x128xf32>
    %cst_45 = arith.constant 5.000000e-01 : f32
    %119 = vector.broadcast %cst_45 : f32 to vector<8x128xf32>
    %120 = arith.mulf %119, %118 : vector<8x128xf32>
    %cst_46 = arith.constant 5.000000e-01 : f32
    %121 = vector.broadcast %cst_46 : f32 to vector<8x128xf32>
    %122 = arith.addf %120, %121 : vector<8x128xf32>
    %123 = arith.select %5, %118, %122 : vector<8x128xi1>, vector<8x128xf32>
    %124 = vector.extract_strided_slice %123 {offsets = [0, 0], sizes = [8, 32], strides = [1, 1]} : vector<8x128xf32> to vector<8x32xf32>
    %125 = vector.extract_strided_slice %123 {offsets = [0, 32], sizes = [8, 32], strides = [1, 1]} : vector<8x128xf32> to vector<8x32xf32>
    %126 = vector.extract_strided_slice %123 {offsets = [0, 64], sizes = [8, 32], strides = [1, 1]} : vector<8x128xf32> to vector<8x32xf32>
    %127 = vector.extract_strided_slice %123 {offsets = [0, 96], sizes = [8, 32], strides = [1, 1]} : vector<8x128xf32> to vector<8x32xf32>
    %128 = arith.mulf %125, %42 : vector<8x32xf32>
    %129 = arith.mulf %124, %126 : vector<8x32xf32>
    %130 = arith.addf %128, %129 : vector<8x32xf32>
    %131 = math.tanh %130 : vector<8x32xf32>
    %132 = arith.mulf %127, %131 : vector<8x32xf32>
    %133 = tpu.concatenate %132, %66 in 1 : vector<8x32xf32>, vector<8x32xf32> -> vector<8x64xf32>
    %c0_47 = arith.constant 0 : index
    %c0_48 = arith.constant 0 : index
    %134 = vector.load %arg4[%c0_47, %c0_48] : memref<64x128xf32, #tpu.memory_space<vmem>>, vector<64x128xf32>
    %cst_49 = arith.constant dense<0.000000e+00> : vector<8x128xf32>
    %135 = tpu.matmul %133, %134, %cst_49 {dimension_numbers = #tpu.dot_dimension_numbers<[1], [0], [0], [1], [0, 0, 1, 1], [], []>} : vector<8x64xf32>, vector<64x128xf32>, vector<8x128xf32> -> vector<8x128xf32>
    %136 = arith.addf %135, %8 : vector<8x128xf32>
    %cst_50 = arith.constant 5.000000e-01 : f32
    %137 = vector.broadcast %cst_50 : f32 to vector<8x128xf32>
    %138 = arith.mulf %137, %136 : vector<8x128xf32>
    %139 = arith.select %5, %136, %138 : vector<8x128xi1>, vector<8x128xf32>
    %140 = math.tanh %139 : vector<8x128xf32>
    %cst_51 = arith.constant 5.000000e-01 : f32
    %141 = vector.broadcast %cst_51 : f32 to vector<8x128xf32>
    %142 = arith.mulf %141, %140 : vector<8x128xf32>
    %cst_52 = arith.constant 5.000000e-01 : f32
    %143 = vector.broadcast %cst_52 : f32 to vector<8x128xf32>
    %144 = arith.addf %142, %143 : vector<8x128xf32>
    %145 = arith.select %5, %140, %144 : vector<8x128xi1>, vector<8x128xf32>
    %146 = vector.extract_strided_slice %145 {offsets = [0, 0], sizes = [8, 32], strides = [1, 1]} : vector<8x128xf32> to vector<8x32xf32>
    %147 = vector.extract_strided_slice %145 {offsets = [0, 32], sizes = [8, 32], strides = [1, 1]} : vector<8x128xf32> to vector<8x32xf32>
    %148 = vector.extract_strided_slice %145 {offsets = [0, 64], sizes = [8, 32], strides = [1, 1]} : vector<8x128xf32> to vector<8x32xf32>
    %149 = vector.extract_strided_slice %145 {offsets = [0, 96], sizes = [8, 32], strides = [1, 1]} : vector<8x128xf32> to vector<8x32xf32>
    %150 = arith.mulf %147, %64 : vector<8x32xf32>
    %151 = arith.mulf %146, %148 : vector<8x32xf32>
    %152 = arith.addf %150, %151 : vector<8x32xf32>
    %153 = math.tanh %152 : vector<8x32xf32>
    %154 = arith.mulf %149, %153 : vector<8x32xf32>
    %155 = tpu.concatenate %154, %88 in 1 : vector<8x32xf32>, vector<8x32xf32> -> vector<8x64xf32>
    %c0_53 = arith.constant 0 : index
    %c0_54 = arith.constant 0 : index
    %156 = vector.load %arg6[%c0_53, %c0_54] : memref<64x128xf32, #tpu.memory_space<vmem>>, vector<64x128xf32>
    %cst_55 = arith.constant dense<0.000000e+00> : vector<8x128xf32>
    %157 = tpu.matmul %155, %156, %cst_55 {dimension_numbers = #tpu.dot_dimension_numbers<[1], [0], [0], [1], [0, 0, 1, 1], [], []>} : vector<8x64xf32>, vector<64x128xf32>, vector<8x128xf32> -> vector<8x128xf32>
    %158 = arith.addf %157, %11 : vector<8x128xf32>
    %cst_56 = arith.constant 5.000000e-01 : f32
    %159 = vector.broadcast %cst_56 : f32 to vector<8x128xf32>
    %160 = arith.mulf %159, %158 : vector<8x128xf32>
    %161 = arith.select %5, %158, %160 : vector<8x128xi1>, vector<8x128xf32>
    %162 = math.tanh %161 : vector<8x128xf32>
    %cst_57 = arith.constant 5.000000e-01 : f32
    %163 = vector.broadcast %cst_57 : f32 to vector<8x128xf32>
    %164 = arith.mulf %163, %162 : vector<8x128xf32>
    %cst_58 = arith.constant 5.000000e-01 : f32
    %165 = vector.broadcast %cst_58 : f32 to vector<8x128xf32>
    %166 = arith.addf %164, %165 : vector<8x128xf32>
    %167 = arith.select %5, %162, %166 : vector<8x128xi1>, vector<8x128xf32>
    %168 = vector.extract_strided_slice %167 {offsets = [0, 0], sizes = [8, 32], strides = [1, 1]} : vector<8x128xf32> to vector<8x32xf32>
    %169 = vector.extract_strided_slice %167 {offsets = [0, 32], sizes = [8, 32], strides = [1, 1]} : vector<8x128xf32> to vector<8x32xf32>
    %170 = vector.extract_strided_slice %167 {offsets = [0, 64], sizes = [8, 32], strides = [1, 1]} : vector<8x128xf32> to vector<8x32xf32>
    %171 = vector.extract_strided_slice %167 {offsets = [0, 96], sizes = [8, 32], strides = [1, 1]} : vector<8x128xf32> to vector<8x32xf32>
    %172 = arith.mulf %169, %86 : vector<8x32xf32>
    %173 = arith.mulf %168, %170 : vector<8x32xf32>
    %174 = arith.addf %172, %173 : vector<8x32xf32>
    %175 = math.tanh %174 : vector<8x32xf32>
    %176 = arith.mulf %171, %175 : vector<8x32xf32>
    %177 = tpu.concatenate %176, %110 in 1 : vector<8x32xf32>, vector<8x32xf32> -> vector<8x64xf32>
    %c0_59 = arith.constant 0 : index
    %c0_60 = arith.constant 0 : index
    %178 = vector.load %arg8[%c0_59, %c0_60] : memref<64x128xf32, #tpu.memory_space<vmem>>, vector<64x128xf32>
    %cst_61 = arith.constant dense<0.000000e+00> : vector<8x128xf32>
    %179 = tpu.matmul %177, %178, %cst_61 {dimension_numbers = #tpu.dot_dimension_numbers<[1], [0], [0], [1], [0, 0, 1, 1], [], []>} : vector<8x64xf32>, vector<64x128xf32>, vector<8x128xf32> -> vector<8x128xf32>
    %180 = arith.addf %179, %14 : vector<8x128xf32>
    %cst_62 = arith.constant 5.000000e-01 : f32
    %181 = vector.broadcast %cst_62 : f32 to vector<8x128xf32>
    %182 = arith.mulf %181, %180 : vector<8x128xf32>
    %183 = arith.select %5, %180, %182 : vector<8x128xi1>, vector<8x128xf32>
    %184 = math.tanh %183 : vector<8x128xf32>
    %cst_63 = arith.constant 5.000000e-01 : f32
    %185 = vector.broadcast %cst_63 : f32 to vector<8x128xf32>
    %186 = arith.mulf %185, %184 : vector<8x128xf32>
    %cst_64 = arith.constant 5.000000e-01 : f32
    %187 = vector.broadcast %cst_64 : f32 to vector<8x128xf32>
    %188 = arith.addf %186, %187 : vector<8x128xf32>
    %189 = arith.select %5, %184, %188 : vector<8x128xi1>, vector<8x128xf32>
    %190 = vector.extract_strided_slice %189 {offsets = [0, 0], sizes = [8, 32], strides = [1, 1]} : vector<8x128xf32> to vector<8x32xf32>
    %191 = vector.extract_strided_slice %189 {offsets = [0, 32], sizes = [8, 32], strides = [1, 1]} : vector<8x128xf32> to vector<8x32xf32>
    %192 = vector.extract_strided_slice %189 {offsets = [0, 64], sizes = [8, 32], strides = [1, 1]} : vector<8x128xf32> to vector<8x32xf32>
    %193 = vector.extract_strided_slice %189 {offsets = [0, 96], sizes = [8, 32], strides = [1, 1]} : vector<8x128xf32> to vector<8x32xf32>
    %194 = arith.mulf %191, %108 : vector<8x32xf32>
    %195 = arith.mulf %190, %192 : vector<8x32xf32>
    %196 = arith.addf %194, %195 : vector<8x32xf32>
    %197 = math.tanh %196 : vector<8x32xf32>
    %198 = arith.mulf %193, %197 : vector<8x32xf32>
    %c8_65 = arith.constant 8 : index
    %c0_66 = arith.constant 0 : index
    %199 = vector.load %arg15[%c8_65, %c0_66] : memref<64x32xf32, #tpu.memory_space<vmem>>, vector<8x32xf32>
    tpu.vector_store %arg15[%c8_65, %c0_66], %198 {strides = array<i32>} : memref<64x32xf32, #tpu.memory_space<vmem>>, vector<8x32xf32>,
    %c16 = arith.constant 16 : index
    %c0_67 = arith.constant 0 : index
    %200 = vector.load %arg14[%c16, %c0_67] : memref<64x128xf32, #tpu.memory_space<vmem>>, vector<8x128xf32>
    %cst_68 = arith.constant dense<0.000000e+00> : vector<8x128xf32>
    %201 = tpu.matmul %132, %15, %cst_68 {dimension_numbers = #tpu.dot_dimension_numbers<[1], [0], [0], [1], [0, 0, 1, 1], [], []>} : vector<8x32xf32>, vector<32x128xf32>, vector<8x128xf32> -> vector<8x128xf32>
    %202 = arith.addf %200, %201 : vector<8x128xf32>
    %cst_69 = arith.constant 5.000000e-01 : f32
    %203 = vector.broadcast %cst_69 : f32 to vector<8x128xf32>
    %204 = arith.mulf %203, %202 : vector<8x128xf32>
    %205 = arith.select %5, %202, %204 : vector<8x128xi1>, vector<8x128xf32>
    %206 = math.tanh %205 : vector<8x128xf32>
    %cst_70 = arith.constant 5.000000e-01 : f32
    %207 = vector.broadcast %cst_70 : f32 to vector<8x128xf32>
    %208 = arith.mulf %207, %206 : vector<8x128xf32>
    %cst_71 = arith.constant 5.000000e-01 : f32
    %209 = vector.broadcast %cst_71 : f32 to vector<8x128xf32>
    %210 = arith.addf %208, %209 : vector<8x128xf32>
    %211 = arith.select %5, %206, %210 : vector<8x128xi1>, vector<8x128xf32>
    %212 = vector.extract_strided_slice %211 {offsets = [0, 0], sizes = [8, 32], strides = [1, 1]} : vector<8x128xf32> to vector<8x32xf32>
    %213 = vector.extract_strided_slice %211 {offsets = [0, 32], sizes = [8, 32], strides = [1, 1]} : vector<8x128xf32> to vector<8x32xf32>
    %214 = vector.extract_strided_slice %211 {offsets = [0, 64], sizes = [8, 32], strides = [1, 1]} : vector<8x128xf32> to vector<8x32xf32>
    %215 = vector.extract_strided_slice %211 {offsets = [0, 96], sizes = [8, 32], strides = [1, 1]} : vector<8x128xf32> to vector<8x32xf32>
    %216 = arith.mulf %213, %130 : vector<8x32xf32>
    %217 = arith.mulf %212, %214 : vector<8x32xf32>
    %218 = arith.addf %216, %217 : vector<8x32xf32>
    %219 = math.tanh %218 : vector<8x32xf32>
    %220 = arith.mulf %215, %219 : vector<8x32xf32>
    %221 = tpu.concatenate %220, %154 in 1 : vector<8x32xf32>, vector<8x32xf32> -> vector<8x64xf32>
    %c0_72 = arith.constant 0 : index
    %c0_73 = arith.constant 0 : index
    %222 = vector.load %arg4[%c0_72, %c0_73] : memref<64x128xf32, #tpu.memory_space<vmem>>, vector<64x128xf32>
    %cst_74 = arith.constant dense<0.000000e+00> : vector<8x128xf32>
    %223 = tpu.matmul %221, %222, %cst_74 {dimension_numbers = #tpu.dot_dimension_numbers<[1], [0], [0], [1], [0, 0, 1, 1], [], []>} : vector<8x64xf32>, vector<64x128xf32>, vector<8x128xf32> -> vector<8x128xf32>
    %224 = arith.addf %223, %8 : vector<8x128xf32>
    %cst_75 = arith.constant 5.000000e-01 : f32
    %225 = vector.broadcast %cst_75 : f32 to vector<8x128xf32>
    %226 = arith.mulf %225, %224 : vector<8x128xf32>
    %227 = arith.select %5, %224, %226 : vector<8x128xi1>, vector<8x128xf32>
    %228 = math.tanh %227 : vector<8x128xf32>
    %cst_76 = arith.constant 5.000000e-01 : f32
    %229 = vector.broadcast %cst_76 : f32 to vector<8x128xf32>
    %230 = arith.mulf %229, %228 : vector<8x128xf32>
    %cst_77 = arith.constant 5.000000e-01 : f32
    %231 = vector.broadcast %cst_77 : f32 to vector<8x128xf32>
    %232 = arith.addf %230, %231 : vector<8x128xf32>
    %233 = arith.select %5, %228, %232 : vector<8x128xi1>, vector<8x128xf32>
    %234 = vector.extract_strided_slice %233 {offsets = [0, 0], sizes = [8, 32], strides = [1, 1]} : vector<8x128xf32> to vector<8x32xf32>
    %235 = vector.extract_strided_slice %233 {offsets = [0, 32], sizes = [8, 32], strides = [1, 1]} : vector<8x128xf32> to vector<8x32xf32>
    %236 = vector.extract_strided_slice %233 {offsets = [0, 64], sizes = [8, 32], strides = [1, 1]} : vector<8x128xf32> to vector<8x32xf32>
    %237 = vector.extract_strided_slice %233 {offsets = [0, 96], sizes = [8, 32], strides = [1, 1]} : vector<8x128xf32> to vector<8x32xf32>
    %238 = arith.mulf %235, %152 : vector<8x32xf32>
    %239 = arith.mulf %234, %236 : vector<8x32xf32>
    %240 = arith.addf %238, %239 : vector<8x32xf32>
    %241 = math.tanh %240 : vector<8x32xf32>
    %242 = arith.mulf %237, %241 : vector<8x32xf32>
    %243 = tpu.concatenate %242, %176 in 1 : vector<8x32xf32>, vector<8x32xf32> -> vector<8x64xf32>
    %c0_78 = arith.constant 0 : index
    %c0_79 = arith.constant 0 : index
    %244 = vector.load %arg6[%c0_78, %c0_79] : memref<64x128xf32, #tpu.memory_space<vmem>>, vector<64x128xf32>
    %cst_80 = arith.constant dense<0.000000e+00> : vector<8x128xf32>
    %245 = tpu.matmul %243, %244, %cst_80 {dimension_numbers = #tpu.dot_dimension_numbers<[1], [0], [0], [1], [0, 0, 1, 1], [], []>} : vector<8x64xf32>, vector<64x128xf32>, vector<8x128xf32> -> vector<8x128xf32>
    %246 = arith.addf %245, %11 : vector<8x128xf32>
    %cst_81 = arith.constant 5.000000e-01 : f32
    %247 = vector.broadcast %cst_81 : f32 to vector<8x128xf32>
    %248 = arith.mulf %247, %246 : vector<8x128xf32>
    %249 = arith.select %5, %246, %248 : vector<8x128xi1>, vector<8x128xf32>
    %250 = math.tanh %249 : vector<8x128xf32>
    %cst_82 = arith.constant 5.000000e-01 : f32
    %251 = vector.broadcast %cst_82 : f32 to vector<8x128xf32>
    %252 = arith.mulf %251, %250 : vector<8x128xf32>
    %cst_83 = arith.constant 5.000000e-01 : f32
    %253 = vector.broadcast %cst_83 : f32 to vector<8x128xf32>
    %254 = arith.addf %252, %253 : vector<8x128xf32>
    %255 = arith.select %5, %250, %254 : vector<8x128xi1>, vector<8x128xf32>
    %256 = vector.extract_strided_slice %255 {offsets = [0, 0], sizes = [8, 32], strides = [1, 1]} : vector<8x128xf32> to vector<8x32xf32>
    %257 = vector.extract_strided_slice %255 {offsets = [0, 32], sizes = [8, 32], strides = [1, 1]} : vector<8x128xf32> to vector<8x32xf32>
    %258 = vector.extract_strided_slice %255 {offsets = [0, 64], sizes = [8, 32], strides = [1, 1]} : vector<8x128xf32> to vector<8x32xf32>
    %259 = vector.extract_strided_slice %255 {offsets = [0, 96], sizes = [8, 32], strides = [1, 1]} : vector<8x128xf32> to vector<8x32xf32>
    %260 = arith.mulf %257, %174 : vector<8x32xf32>
    %261 = arith.mulf %256, %258 : vector<8x32xf32>
    %262 = arith.addf %260, %261 : vector<8x32xf32>
    %263 = math.tanh %262 : vector<8x32xf32>
    %264 = arith.mulf %259, %263 : vector<8x32xf32>
    %265 = tpu.concatenate %264, %198 in 1 : vector<8x32xf32>, vector<8x32xf32> -> vector<8x64xf32>
    %c0_84 = arith.constant 0 : index
    %c0_85 = arith.constant 0 : index
    %266 = vector.load %arg8[%c0_84, %c0_85] : memref<64x128xf32, #tpu.memory_space<vmem>>, vector<64x128xf32>
    %cst_86 = arith.constant dense<0.000000e+00> : vector<8x128xf32>
    %267 = tpu.matmul %265, %266, %cst_86 {dimension_numbers = #tpu.dot_dimension_numbers<[1], [0], [0], [1], [0, 0, 1, 1], [], []>} : vector<8x64xf32>, vector<64x128xf32>, vector<8x128xf32> -> vector<8x128xf32>
    %268 = arith.addf %267, %14 : vector<8x128xf32>
    %cst_87 = arith.constant 5.000000e-01 : f32
    %269 = vector.broadcast %cst_87 : f32 to vector<8x128xf32>
    %270 = arith.mulf %269, %268 : vector<8x128xf32>
    %271 = arith.select %5, %268, %270 : vector<8x128xi1>, vector<8x128xf32>
    %272 = math.tanh %271 : vector<8x128xf32>
    %cst_88 = arith.constant 5.000000e-01 : f32
    %273 = vector.broadcast %cst_88 : f32 to vector<8x128xf32>
    %274 = arith.mulf %273, %272 : vector<8x128xf32>
    %cst_89 = arith.constant 5.000000e-01 : f32
    %275 = vector.broadcast %cst_89 : f32 to vector<8x128xf32>
    %276 = arith.addf %274, %275 : vector<8x128xf32>
    %277 = arith.select %5, %272, %276 : vector<8x128xi1>, vector<8x128xf32>
    %278 = vector.extract_strided_slice %277 {offsets = [0, 0], sizes = [8, 32], strides = [1, 1]} : vector<8x128xf32> to vector<8x32xf32>
    %279 = vector.extract_strided_slice %277 {offsets = [0, 32], sizes = [8, 32], strides = [1, 1]} : vector<8x128xf32> to vector<8x32xf32>
    %280 = vector.extract_strided_slice %277 {offsets = [0, 64], sizes = [8, 32], strides = [1, 1]} : vector<8x128xf32> to vector<8x32xf32>
    %281 = vector.extract_strided_slice %277 {offsets = [0, 96], sizes = [8, 32], strides = [1, 1]} : vector<8x128xf32> to vector<8x32xf32>
    %282 = arith.mulf %279, %196 : vector<8x32xf32>
    %283 = arith.mulf %278, %280 : vector<8x32xf32>
    %284 = arith.addf %282, %283 : vector<8x32xf32>
    %285 = math.tanh %284 : vector<8x32xf32>
    %286 = arith.mulf %281, %285 : vector<8x32xf32>
    %c16_90 = arith.constant 16 : index
    %c0_91 = arith.constant 0 : index
    %287 = vector.load %arg15[%c16_90, %c0_91] : memref<64x32xf32, #tpu.memory_space<vmem>>, vector<8x32xf32>
    tpu.vector_store %arg15[%c16_90, %c0_91], %286 {strides = array<i32>} : memref<64x32xf32, #tpu.memory_space<vmem>>, vector<8x32xf32>,
    %c24 = arith.constant 24 : index
    %c0_92 = arith.constant 0 : index
    %288 = vector.load %arg14[%c24, %c0_92] : memref<64x128xf32, #tpu.memory_space<vmem>>, vector<8x128xf32>
    %cst_93 = arith.constant dense<0.000000e+00> : vector<8x128xf32>
    %289 = tpu.matmul %220, %15, %cst_93 {dimension_numbers = #tpu.dot_dimension_numbers<[1], [0], [0], [1], [0, 0, 1, 1], [], []>} : vector<8x32xf32>, vector<32x128xf32>, vector<8x128xf32> -> vector<8x128xf32>
    %290 = arith.addf %288, %289 : vector<8x128xf32>
    %cst_94 = arith.constant 5.000000e-01 : f32
    %291 = vector.broadcast %cst_94 : f32 to vector<8x128xf32>
    %292 = arith.mulf %291, %290 : vector<8x128xf32>
    %293 = arith.select %5, %290, %292 : vector<8x128xi1>, vector<8x128xf32>
    %294 = math.tanh %293 : vector<8x128xf32>
    %cst_95 = arith.constant 5.000000e-01 : f32
    %295 = vector.broadcast %cst_95 : f32 to vector<8x128xf32>
    %296 = arith.mulf %295, %294 : vector<8x128xf32>
    %cst_96 = arith.constant 5.000000e-01 : f32
    %297 = vector.broadcast %cst_96 : f32 to vector<8x128xf32>
    %298 = arith.addf %296, %297 : vector<8x128xf32>
    %299 = arith.select %5, %294, %298 : vector<8x128xi1>, vector<8x128xf32>
    %300 = vector.extract_strided_slice %299 {offsets = [0, 0], sizes = [8, 32], strides = [1, 1]} : vector<8x128xf32> to vector<8x32xf32>
    %301 = vector.extract_strided_slice %299 {offsets = [0, 32], sizes = [8, 32], strides = [1, 1]} : vector<8x128xf32> to vector<8x32xf32>
    %302 = vector.extract_strided_slice %299 {offsets = [0, 64], sizes = [8, 32], strides = [1, 1]} : vector<8x128xf32> to vector<8x32xf32>
    %303 = vector.extract_strided_slice %299 {offsets = [0, 96], sizes = [8, 32], strides = [1, 1]} : vector<8x128xf32> to vector<8x32xf32>
    %304 = arith.mulf %301, %218 : vector<8x32xf32>
    %305 = arith.mulf %300, %302 : vector<8x32xf32>
    %306 = arith.addf %304, %305 : vector<8x32xf32>
    %307 = math.tanh %306 : vector<8x32xf32>
    %308 = arith.mulf %303, %307 : vector<8x32xf32>
    %309 = tpu.concatenate %308, %242 in 1 : vector<8x32xf32>, vector<8x32xf32> -> vector<8x64xf32>
    %c0_97 = arith.constant 0 : index
    %c0_98 = arith.constant 0 : index
    %310 = vector.load %arg4[%c0_97, %c0_98] : memref<64x128xf32, #tpu.memory_space<vmem>>, vector<64x128xf32>
    %cst_99 = arith.constant dense<0.000000e+00> : vector<8x128xf32>
    %311 = tpu.matmul %309, %310, %cst_99 {dimension_numbers = #tpu.dot_dimension_numbers<[1], [0], [0], [1], [0, 0, 1, 1], [], []>} : vector<8x64xf32>, vector<64x128xf32>, vector<8x128xf32> -> vector<8x128xf32>
    %312 = arith.addf %311, %8 : vector<8x128xf32>
    %cst_100 = arith.constant 5.000000e-01 : f32
    %313 = vector.broadcast %cst_100 : f32 to vector<8x128xf32>
    %314 = arith.mulf %313, %312 : vector<8x128xf32>
    %315 = arith.select %5, %312, %314 : vector<8x128xi1>, vector<8x128xf32>
    %316 = math.tanh %315 : vector<8x128xf32>
    %cst_101 = arith.constant 5.000000e-01 : f32
    %317 = vector.broadcast %cst_101 : f32 to vector<8x128xf32>
    %318 = arith.mulf %317, %316 : vector<8x128xf32>
    %cst_102 = arith.constant 5.000000e-01 : f32
    %319 = vector.broadcast %cst_102 : f32 to vector<8x128xf32>
    %320 = arith.addf %318, %319 : vector<8x128xf32>
    %321 = arith.select %5, %316, %320 : vector<8x128xi1>, vector<8x128xf32>
    %322 = vector.extract_strided_slice %321 {offsets = [0, 0], sizes = [8, 32], strides = [1, 1]} : vector<8x128xf32> to vector<8x32xf32>
    %323 = vector.extract_strided_slice %321 {offsets = [0, 32], sizes = [8, 32], strides = [1, 1]} : vector<8x128xf32> to vector<8x32xf32>
    %324 = vector.extract_strided_slice %321 {offsets = [0, 64], sizes = [8, 32], strides = [1, 1]} : vector<8x128xf32> to vector<8x32xf32>
    %325 = vector.extract_strided_slice %321 {offsets = [0, 96], sizes = [8, 32], strides = [1, 1]} : vector<8x128xf32> to vector<8x32xf32>
    %326 = arith.mulf %323, %240 : vector<8x32xf32>
    %327 = arith.mulf %322, %324 : vector<8x32xf32>
    %328 = arith.addf %326, %327 : vector<8x32xf32>
    %329 = math.tanh %328 : vector<8x32xf32>
    %330 = arith.mulf %325, %329 : vector<8x32xf32>
    %331 = tpu.concatenate %330, %264 in 1 : vector<8x32xf32>, vector<8x32xf32> -> vector<8x64xf32>
    %c0_103 = arith.constant 0 : index
    %c0_104 = arith.constant 0 : index
    %332 = vector.load %arg6[%c0_103, %c0_104] : memref<64x128xf32, #tpu.memory_space<vmem>>, vector<64x128xf32>
    %cst_105 = arith.constant dense<0.000000e+00> : vector<8x128xf32>
    %333 = tpu.matmul %331, %332, %cst_105 {dimension_numbers = #tpu.dot_dimension_numbers<[1], [0], [0], [1], [0, 0, 1, 1], [], []>} : vector<8x64xf32>, vector<64x128xf32>, vector<8x128xf32> -> vector<8x128xf32>
    %334 = arith.addf %333, %11 : vector<8x128xf32>
    %cst_106 = arith.constant 5.000000e-01 : f32
    %335 = vector.broadcast %cst_106 : f32 to vector<8x128xf32>
    %336 = arith.mulf %335, %334 : vector<8x128xf32>
    %337 = arith.select %5, %334, %336 : vector<8x128xi1>, vector<8x128xf32>
    %338 = math.tanh %337 : vector<8x128xf32>
    %cst_107 = arith.constant 5.000000e-01 : f32
    %339 = vector.broadcast %cst_107 : f32 to vector<8x128xf32>
    %340 = arith.mulf %339, %338 : vector<8x128xf32>
    %cst_108 = arith.constant 5.000000e-01 : f32
    %341 = vector.broadcast %cst_108 : f32 to vector<8x128xf32>
    %342 = arith.addf %340, %341 : vector<8x128xf32>
    %343 = arith.select %5, %338, %342 : vector<8x128xi1>, vector<8x128xf32>
    %344 = vector.extract_strided_slice %343 {offsets = [0, 0], sizes = [8, 32], strides = [1, 1]} : vector<8x128xf32> to vector<8x32xf32>
    %345 = vector.extract_strided_slice %343 {offsets = [0, 32], sizes = [8, 32], strides = [1, 1]} : vector<8x128xf32> to vector<8x32xf32>
    %346 = vector.extract_strided_slice %343 {offsets = [0, 64], sizes = [8, 32], strides = [1, 1]} : vector<8x128xf32> to vector<8x32xf32>
    %347 = vector.extract_strided_slice %343 {offsets = [0, 96], sizes = [8, 32], strides = [1, 1]} : vector<8x128xf32> to vector<8x32xf32>
    %348 = arith.mulf %345, %262 : vector<8x32xf32>
    %349 = arith.mulf %344, %346 : vector<8x32xf32>
    %350 = arith.addf %348, %349 : vector<8x32xf32>
    %351 = math.tanh %350 : vector<8x32xf32>
    %352 = arith.mulf %347, %351 : vector<8x32xf32>
    %353 = tpu.concatenate %352, %286 in 1 : vector<8x32xf32>, vector<8x32xf32> -> vector<8x64xf32>
    %c0_109 = arith.constant 0 : index
    %c0_110 = arith.constant 0 : index
    %354 = vector.load %arg8[%c0_109, %c0_110] : memref<64x128xf32, #tpu.memory_space<vmem>>, vector<64x128xf32>
    %cst_111 = arith.constant dense<0.000000e+00> : vector<8x128xf32>
    %355 = tpu.matmul %353, %354, %cst_111 {dimension_numbers = #tpu.dot_dimension_numbers<[1], [0], [0], [1], [0, 0, 1, 1], [], []>} : vector<8x64xf32>, vector<64x128xf32>, vector<8x128xf32> -> vector<8x128xf32>
    %356 = arith.addf %355, %14 : vector<8x128xf32>
    %cst_112 = arith.constant 5.000000e-01 : f32
    %357 = vector.broadcast %cst_112 : f32 to vector<8x128xf32>
    %358 = arith.mulf %357, %356 : vector<8x128xf32>
    %359 = arith.select %5, %356, %358 : vector<8x128xi1>, vector<8x128xf32>
    %360 = math.tanh %359 : vector<8x128xf32>
    %cst_113 = arith.constant 5.000000e-01 : f32
    %361 = vector.broadcast %cst_113 : f32 to vector<8x128xf32>
    %362 = arith.mulf %361, %360 : vector<8x128xf32>
    %cst_114 = arith.constant 5.000000e-01 : f32
    %363 = vector.broadcast %cst_114 : f32 to vector<8x128xf32>
    %364 = arith.addf %362, %363 : vector<8x128xf32>
    %365 = arith.select %5, %360, %364 : vector<8x128xi1>, vector<8x128xf32>
    %366 = vector.extract_strided_slice %365 {offsets = [0, 0], sizes = [8, 32], strides = [1, 1]} : vector<8x128xf32> to vector<8x32xf32>
    %367 = vector.extract_strided_slice %365 {offsets = [0, 32], sizes = [8, 32], strides = [1, 1]} : vector<8x128xf32> to vector<8x32xf32>
    %368 = vector.extract_strided_slice %365 {offsets = [0, 64], sizes = [8, 32], strides = [1, 1]} : vector<8x128xf32> to vector<8x32xf32>
    %369 = vector.extract_strided_slice %365 {offsets = [0, 96], sizes = [8, 32], strides = [1, 1]} : vector<8x128xf32> to vector<8x32xf32>
    %370 = arith.mulf %367, %284 : vector<8x32xf32>
    %371 = arith.mulf %366, %368 : vector<8x32xf32>
    %372 = arith.addf %370, %371 : vector<8x32xf32>
    %373 = math.tanh %372 : vector<8x32xf32>
    %374 = arith.mulf %369, %373 : vector<8x32xf32>
    %c24_115 = arith.constant 24 : index
    %c0_116 = arith.constant 0 : index
    %375 = vector.load %arg15[%c24_115, %c0_116] : memref<64x32xf32, #tpu.memory_space<vmem>>, vector<8x32xf32>
    tpu.vector_store %arg15[%c24_115, %c0_116], %374 {strides = array<i32>} : memref<64x32xf32, #tpu.memory_space<vmem>>, vector<8x32xf32>,
    %c32 = arith.constant 32 : index
    %c0_117 = arith.constant 0 : index
    %376 = vector.load %arg14[%c32, %c0_117] : memref<64x128xf32, #tpu.memory_space<vmem>>, vector<8x128xf32>
    %cst_118 = arith.constant dense<0.000000e+00> : vector<8x128xf32>
    %377 = tpu.matmul %308, %15, %cst_118 {dimension_numbers = #tpu.dot_dimension_numbers<[1], [0], [0], [1], [0, 0, 1, 1], [], []>} : vector<8x32xf32>, vector<32x128xf32>, vector<8x128xf32> -> vector<8x128xf32>
    %378 = arith.addf %376, %377 : vector<8x128xf32>
    %cst_119 = arith.constant 5.000000e-01 : f32
    %379 = vector.broadcast %cst_119 : f32 to vector<8x128xf32>
    %380 = arith.mulf %379, %378 : vector<8x128xf32>
    %381 = arith.select %5, %378, %380 : vector<8x128xi1>, vector<8x128xf32>
    %382 = math.tanh %381 : vector<8x128xf32>
    %cst_120 = arith.constant 5.000000e-01 : f32
    %383 = vector.broadcast %cst_120 : f32 to vector<8x128xf32>
    %384 = arith.mulf %383, %382 : vector<8x128xf32>
    %cst_121 = arith.constant 5.000000e-01 : f32
    %385 = vector.broadcast %cst_121 : f32 to vector<8x128xf32>
    %386 = arith.addf %384, %385 : vector<8x128xf32>
    %387 = arith.select %5, %382, %386 : vector<8x128xi1>, vector<8x128xf32>
    %388 = vector.extract_strided_slice %387 {offsets = [0, 0], sizes = [8, 32], strides = [1, 1]} : vector<8x128xf32> to vector<8x32xf32>
    %389 = vector.extract_strided_slice %387 {offsets = [0, 32], sizes = [8, 32], strides = [1, 1]} : vector<8x128xf32> to vector<8x32xf32>
    %390 = vector.extract_strided_slice %387 {offsets = [0, 64], sizes = [8, 32], strides = [1, 1]} : vector<8x128xf32> to vector<8x32xf32>
    %391 = vector.extract_strided_slice %387 {offsets = [0, 96], sizes = [8, 32], strides = [1, 1]} : vector<8x128xf32> to vector<8x32xf32>
    %392 = arith.mulf %389, %306 : vector<8x32xf32>
    %393 = arith.mulf %388, %390 : vector<8x32xf32>
    %394 = arith.addf %392, %393 : vector<8x32xf32>
    %395 = math.tanh %394 : vector<8x32xf32>
    %396 = arith.mulf %391, %395 : vector<8x32xf32>
    %397 = tpu.concatenate %396, %330 in 1 : vector<8x32xf32>, vector<8x32xf32> -> vector<8x64xf32>
    %c0_122 = arith.constant 0 : index
    %c0_123 = arith.constant 0 : index
    %398 = vector.load %arg4[%c0_122, %c0_123] : memref<64x128xf32, #tpu.memory_space<vmem>>, vector<64x128xf32>
    %cst_124 = arith.constant dense<0.000000e+00> : vector<8x128xf32>
    %399 = tpu.matmul %397, %398, %cst_124 {dimension_numbers = #tpu.dot_dimension_numbers<[1], [0], [0], [1], [0, 0, 1, 1], [], []>} : vector<8x64xf32>, vector<64x128xf32>, vector<8x128xf32> -> vector<8x128xf32>
    %400 = arith.addf %399, %8 : vector<8x128xf32>
    %cst_125 = arith.constant 5.000000e-01 : f32
    %401 = vector.broadcast %cst_125 : f32 to vector<8x128xf32>
    %402 = arith.mulf %401, %400 : vector<8x128xf32>
    %403 = arith.select %5, %400, %402 : vector<8x128xi1>, vector<8x128xf32>
    %404 = math.tanh %403 : vector<8x128xf32>
    %cst_126 = arith.constant 5.000000e-01 : f32
    %405 = vector.broadcast %cst_126 : f32 to vector<8x128xf32>
    %406 = arith.mulf %405, %404 : vector<8x128xf32>
    %cst_127 = arith.constant 5.000000e-01 : f32
    %407 = vector.broadcast %cst_127 : f32 to vector<8x128xf32>
    %408 = arith.addf %406, %407 : vector<8x128xf32>
    %409 = arith.select %5, %404, %408 : vector<8x128xi1>, vector<8x128xf32>
    %410 = vector.extract_strided_slice %409 {offsets = [0, 0], sizes = [8, 32], strides = [1, 1]} : vector<8x128xf32> to vector<8x32xf32>
    %411 = vector.extract_strided_slice %409 {offsets = [0, 32], sizes = [8, 32], strides = [1, 1]} : vector<8x128xf32> to vector<8x32xf32>
    %412 = vector.extract_strided_slice %409 {offsets = [0, 64], sizes = [8, 32], strides = [1, 1]} : vector<8x128xf32> to vector<8x32xf32>
    %413 = vector.extract_strided_slice %409 {offsets = [0, 96], sizes = [8, 32], strides = [1, 1]} : vector<8x128xf32> to vector<8x32xf32>
    %414 = arith.mulf %411, %328 : vector<8x32xf32>
    %415 = arith.mulf %410, %412 : vector<8x32xf32>
    %416 = arith.addf %414, %415 : vector<8x32xf32>
    %417 = math.tanh %416 : vector<8x32xf32>
    %418 = arith.mulf %413, %417 : vector<8x32xf32>
    %419 = tpu.concatenate %418, %352 in 1 : vector<8x32xf32>, vector<8x32xf32> -> vector<8x64xf32>
    %c0_128 = arith.constant 0 : index
    %c0_129 = arith.constant 0 : index
    %420 = vector.load %arg6[%c0_128, %c0_129] : memref<64x128xf32, #tpu.memory_space<vmem>>, vector<64x128xf32>
    %cst_130 = arith.constant dense<0.000000e+00> : vector<8x128xf32>
    %421 = tpu.matmul %419, %420, %cst_130 {dimension_numbers = #tpu.dot_dimension_numbers<[1], [0], [0], [1], [0, 0, 1, 1], [], []>} : vector<8x64xf32>, vector<64x128xf32>, vector<8x128xf32> -> vector<8x128xf32>
    %422 = arith.addf %421, %11 : vector<8x128xf32>
    %cst_131 = arith.constant 5.000000e-01 : f32
    %423 = vector.broadcast %cst_131 : f32 to vector<8x128xf32>
    %424 = arith.mulf %423, %422 : vector<8x128xf32>
    %425 = arith.select %5, %422, %424 : vector<8x128xi1>, vector<8x128xf32>
    %426 = math.tanh %425 : vector<8x128xf32>
    %cst_132 = arith.constant 5.000000e-01 : f32
    %427 = vector.broadcast %cst_132 : f32 to vector<8x128xf32>
    %428 = arith.mulf %427, %426 : vector<8x128xf32>
    %cst_133 = arith.constant 5.000000e-01 : f32
    %429 = vector.broadcast %cst_133 : f32 to vector<8x128xf32>
    %430 = arith.addf %428, %429 : vector<8x128xf32>
    %431 = arith.select %5, %426, %430 : vector<8x128xi1>, vector<8x128xf32>
    %432 = vector.extract_strided_slice %431 {offsets = [0, 0], sizes = [8, 32], strides = [1, 1]} : vector<8x128xf32> to vector<8x32xf32>
    %433 = vector.extract_strided_slice %431 {offsets = [0, 32], sizes = [8, 32], strides = [1, 1]} : vector<8x128xf32> to vector<8x32xf32>
    %434 = vector.extract_strided_slice %431 {offsets = [0, 64], sizes = [8, 32], strides = [1, 1]} : vector<8x128xf32> to vector<8x32xf32>
    %435 = vector.extract_strided_slice %431 {offsets = [0, 96], sizes = [8, 32], strides = [1, 1]} : vector<8x128xf32> to vector<8x32xf32>
    %436 = arith.mulf %433, %350 : vector<8x32xf32>
    %437 = arith.mulf %432, %434 : vector<8x32xf32>
    %438 = arith.addf %436, %437 : vector<8x32xf32>
    %439 = math.tanh %438 : vector<8x32xf32>
    %440 = arith.mulf %435, %439 : vector<8x32xf32>
    %441 = tpu.concatenate %440, %374 in 1 : vector<8x32xf32>, vector<8x32xf32> -> vector<8x64xf32>
    %c0_134 = arith.constant 0 : index
    %c0_135 = arith.constant 0 : index
    %442 = vector.load %arg8[%c0_134, %c0_135] : memref<64x128xf32, #tpu.memory_space<vmem>>, vector<64x128xf32>
    %cst_136 = arith.constant dense<0.000000e+00> : vector<8x128xf32>
    %443 = tpu.matmul %441, %442, %cst_136 {dimension_numbers = #tpu.dot_dimension_numbers<[1], [0], [0], [1], [0, 0, 1, 1], [], []>} : vector<8x64xf32>, vector<64x128xf32>, vector<8x128xf32> -> vector<8x128xf32>
    %444 = arith.addf %443, %14 : vector<8x128xf32>
    %cst_137 = arith.constant 5.000000e-01 : f32
    %445 = vector.broadcast %cst_137 : f32 to vector<8x128xf32>
    %446 = arith.mulf %445, %444 : vector<8x128xf32>
    %447 = arith.select %5, %444, %446 : vector<8x128xi1>, vector<8x128xf32>
    %448 = math.tanh %447 : vector<8x128xf32>
    %cst_138 = arith.constant 5.000000e-01 : f32
    %449 = vector.broadcast %cst_138 : f32 to vector<8x128xf32>
    %450 = arith.mulf %449, %448 : vector<8x128xf32>
    %cst_139 = arith.constant 5.000000e-01 : f32
    %451 = vector.broadcast %cst_139 : f32 to vector<8x128xf32>
    %452 = arith.addf %450, %451 : vector<8x128xf32>
    %453 = arith.select %5, %448, %452 : vector<8x128xi1>, vector<8x128xf32>
    %454 = vector.extract_strided_slice %453 {offsets = [0, 0], sizes = [8, 32], strides = [1, 1]} : vector<8x128xf32> to vector<8x32xf32>
    %455 = vector.extract_strided_slice %453 {offsets = [0, 32], sizes = [8, 32], strides = [1, 1]} : vector<8x128xf32> to vector<8x32xf32>
    %456 = vector.extract_strided_slice %453 {offsets = [0, 64], sizes = [8, 32], strides = [1, 1]} : vector<8x128xf32> to vector<8x32xf32>
    %457 = vector.extract_strided_slice %453 {offsets = [0, 96], sizes = [8, 32], strides = [1, 1]} : vector<8x128xf32> to vector<8x32xf32>
    %458 = arith.mulf %455, %372 : vector<8x32xf32>
    %459 = arith.mulf %454, %456 : vector<8x32xf32>
    %460 = arith.addf %458, %459 : vector<8x32xf32>
    %461 = math.tanh %460 : vector<8x32xf32>
    %462 = arith.mulf %457, %461 : vector<8x32xf32>
    %c32_140 = arith.constant 32 : index
    %c0_141 = arith.constant 0 : index
    %463 = vector.load %arg15[%c32_140, %c0_141] : memref<64x32xf32, #tpu.memory_space<vmem>>, vector<8x32xf32>
    tpu.vector_store %arg15[%c32_140, %c0_141], %462 {strides = array<i32>} : memref<64x32xf32, #tpu.memory_space<vmem>>, vector<8x32xf32>,
    %c40 = arith.constant 40 : index
    %c0_142 = arith.constant 0 : index
    %464 = vector.load %arg14[%c40, %c0_142] : memref<64x128xf32, #tpu.memory_space<vmem>>, vector<8x128xf32>
    %cst_143 = arith.constant dense<0.000000e+00> : vector<8x128xf32>
    %465 = tpu.matmul %396, %15, %cst_143 {dimension_numbers = #tpu.dot_dimension_numbers<[1], [0], [0], [1], [0, 0, 1, 1], [], []>} : vector<8x32xf32>, vector<32x128xf32>, vector<8x128xf32> -> vector<8x128xf32>
    %466 = arith.addf %464, %465 : vector<8x128xf32>
    %cst_144 = arith.constant 5.000000e-01 : f32
    %467 = vector.broadcast %cst_144 : f32 to vector<8x128xf32>
    %468 = arith.mulf %467, %466 : vector<8x128xf32>
    %469 = arith.select %5, %466, %468 : vector<8x128xi1>, vector<8x128xf32>
    %470 = math.tanh %469 : vector<8x128xf32>
    %cst_145 = arith.constant 5.000000e-01 : f32
    %471 = vector.broadcast %cst_145 : f32 to vector<8x128xf32>
    %472 = arith.mulf %471, %470 : vector<8x128xf32>
    %cst_146 = arith.constant 5.000000e-01 : f32
    %473 = vector.broadcast %cst_146 : f32 to vector<8x128xf32>
    %474 = arith.addf %472, %473 : vector<8x128xf32>
    %475 = arith.select %5, %470, %474 : vector<8x128xi1>, vector<8x128xf32>
    %476 = vector.extract_strided_slice %475 {offsets = [0, 0], sizes = [8, 32], strides = [1, 1]} : vector<8x128xf32> to vector<8x32xf32>
    %477 = vector.extract_strided_slice %475 {offsets = [0, 32], sizes = [8, 32], strides = [1, 1]} : vector<8x128xf32> to vector<8x32xf32>
    %478 = vector.extract_strided_slice %475 {offsets = [0, 64], sizes = [8, 32], strides = [1, 1]} : vector<8x128xf32> to vector<8x32xf32>
    %479 = vector.extract_strided_slice %475 {offsets = [0, 96], sizes = [8, 32], strides = [1, 1]} : vector<8x128xf32> to vector<8x32xf32>
    %480 = arith.mulf %477, %394 : vector<8x32xf32>
    %481 = arith.mulf %476, %478 : vector<8x32xf32>
    %482 = arith.addf %480, %481 : vector<8x32xf32>
    %483 = math.tanh %482 : vector<8x32xf32>
    %484 = arith.mulf %479, %483 : vector<8x32xf32>
    %485 = tpu.concatenate %484, %418 in 1 : vector<8x32xf32>, vector<8x32xf32> -> vector<8x64xf32>
    %c0_147 = arith.constant 0 : index
    %c0_148 = arith.constant 0 : index
    %486 = vector.load %arg4[%c0_147, %c0_148] : memref<64x128xf32, #tpu.memory_space<vmem>>, vector<64x128xf32>
    %cst_149 = arith.constant dense<0.000000e+00> : vector<8x128xf32>
    %487 = tpu.matmul %485, %486, %cst_149 {dimension_numbers = #tpu.dot_dimension_numbers<[1], [0], [0], [1], [0, 0, 1, 1], [], []>} : vector<8x64xf32>, vector<64x128xf32>, vector<8x128xf32> -> vector<8x128xf32>
    %488 = arith.addf %487, %8 : vector<8x128xf32>
    %cst_150 = arith.constant 5.000000e-01 : f32
    %489 = vector.broadcast %cst_150 : f32 to vector<8x128xf32>
    %490 = arith.mulf %489, %488 : vector<8x128xf32>
    %491 = arith.select %5, %488, %490 : vector<8x128xi1>, vector<8x128xf32>
    %492 = math.tanh %491 : vector<8x128xf32>
    %cst_151 = arith.constant 5.000000e-01 : f32
    %493 = vector.broadcast %cst_151 : f32 to vector<8x128xf32>
    %494 = arith.mulf %493, %492 : vector<8x128xf32>
    %cst_152 = arith.constant 5.000000e-01 : f32
    %495 = vector.broadcast %cst_152 : f32 to vector<8x128xf32>
    %496 = arith.addf %494, %495 : vector<8x128xf32>
    %497 = arith.select %5, %492, %496 : vector<8x128xi1>, vector<8x128xf32>
    %498 = vector.extract_strided_slice %497 {offsets = [0, 0], sizes = [8, 32], strides = [1, 1]} : vector<8x128xf32> to vector<8x32xf32>
    %499 = vector.extract_strided_slice %497 {offsets = [0, 32], sizes = [8, 32], strides = [1, 1]} : vector<8x128xf32> to vector<8x32xf32>
    %500 = vector.extract_strided_slice %497 {offsets = [0, 64], sizes = [8, 32], strides = [1, 1]} : vector<8x128xf32> to vector<8x32xf32>
    %501 = vector.extract_strided_slice %497 {offsets = [0, 96], sizes = [8, 32], strides = [1, 1]} : vector<8x128xf32> to vector<8x32xf32>
    %502 = arith.mulf %499, %416 : vector<8x32xf32>
    %503 = arith.mulf %498, %500 : vector<8x32xf32>
    %504 = arith.addf %502, %503 : vector<8x32xf32>
    %505 = math.tanh %504 : vector<8x32xf32>
    %506 = arith.mulf %501, %505 : vector<8x32xf32>
    %507 = tpu.concatenate %506, %440 in 1 : vector<8x32xf32>, vector<8x32xf32> -> vector<8x64xf32>
    %c0_153 = arith.constant 0 : index
    %c0_154 = arith.constant 0 : index
    %508 = vector.load %arg6[%c0_153, %c0_154] : memref<64x128xf32, #tpu.memory_space<vmem>>, vector<64x128xf32>
    %cst_155 = arith.constant dense<0.000000e+00> : vector<8x128xf32>
    %509 = tpu.matmul %507, %508, %cst_155 {dimension_numbers = #tpu.dot_dimension_numbers<[1], [0], [0], [1], [0, 0, 1, 1], [], []>} : vector<8x64xf32>, vector<64x128xf32>, vector<8x128xf32> -> vector<8x128xf32>
    %510 = arith.addf %509, %11 : vector<8x128xf32>
    %cst_156 = arith.constant 5.000000e-01 : f32
    %511 = vector.broadcast %cst_156 : f32 to vector<8x128xf32>
    %512 = arith.mulf %511, %510 : vector<8x128xf32>
    %513 = arith.select %5, %510, %512 : vector<8x128xi1>, vector<8x128xf32>
    %514 = math.tanh %513 : vector<8x128xf32>
    %cst_157 = arith.constant 5.000000e-01 : f32
    %515 = vector.broadcast %cst_157 : f32 to vector<8x128xf32>
    %516 = arith.mulf %515, %514 : vector<8x128xf32>
    %cst_158 = arith.constant 5.000000e-01 : f32
    %517 = vector.broadcast %cst_158 : f32 to vector<8x128xf32>
    %518 = arith.addf %516, %517 : vector<8x128xf32>
    %519 = arith.select %5, %514, %518 : vector<8x128xi1>, vector<8x128xf32>
    %520 = vector.extract_strided_slice %519 {offsets = [0, 0], sizes = [8, 32], strides = [1, 1]} : vector<8x128xf32> to vector<8x32xf32>
    %521 = vector.extract_strided_slice %519 {offsets = [0, 32], sizes = [8, 32], strides = [1, 1]} : vector<8x128xf32> to vector<8x32xf32>
    %522 = vector.extract_strided_slice %519 {offsets = [0, 64], sizes = [8, 32], strides = [1, 1]} : vector<8x128xf32> to vector<8x32xf32>
    %523 = vector.extract_strided_slice %519 {offsets = [0, 96], sizes = [8, 32], strides = [1, 1]} : vector<8x128xf32> to vector<8x32xf32>
    %524 = arith.mulf %521, %438 : vector<8x32xf32>
    %525 = arith.mulf %520, %522 : vector<8x32xf32>
    %526 = arith.addf %524, %525 : vector<8x32xf32>
    %527 = math.tanh %526 : vector<8x32xf32>
    %528 = arith.mulf %523, %527 : vector<8x32xf32>
    %529 = tpu.concatenate %528, %462 in 1 : vector<8x32xf32>, vector<8x32xf32> -> vector<8x64xf32>
    %c0_159 = arith.constant 0 : index
    %c0_160 = arith.constant 0 : index
    %530 = vector.load %arg8[%c0_159, %c0_160] : memref<64x128xf32, #tpu.memory_space<vmem>>, vector<64x128xf32>
    %cst_161 = arith.constant dense<0.000000e+00> : vector<8x128xf32>
    %531 = tpu.matmul %529, %530, %cst_161 {dimension_numbers = #tpu.dot_dimension_numbers<[1], [0], [0], [1], [0, 0, 1, 1], [], []>} : vector<8x64xf32>, vector<64x128xf32>, vector<8x128xf32> -> vector<8x128xf32>
    %532 = arith.addf %531, %14 : vector<8x128xf32>
    %cst_162 = arith.constant 5.000000e-01 : f32
    %533 = vector.broadcast %cst_162 : f32 to vector<8x128xf32>
    %534 = arith.mulf %533, %532 : vector<8x128xf32>
    %535 = arith.select %5, %532, %534 : vector<8x128xi1>, vector<8x128xf32>
    %536 = math.tanh %535 : vector<8x128xf32>
    %cst_163 = arith.constant 5.000000e-01 : f32
    %537 = vector.broadcast %cst_163 : f32 to vector<8x128xf32>
    %538 = arith.mulf %537, %536 : vector<8x128xf32>
    %cst_164 = arith.constant 5.000000e-01 : f32
    %539 = vector.broadcast %cst_164 : f32 to vector<8x128xf32>
    %540 = arith.addf %538, %539 : vector<8x128xf32>
    %541 = arith.select %5, %536, %540 : vector<8x128xi1>, vector<8x128xf32>
    %542 = vector.extract_strided_slice %541 {offsets = [0, 0], sizes = [8, 32], strides = [1, 1]} : vector<8x128xf32> to vector<8x32xf32>
    %543 = vector.extract_strided_slice %541 {offsets = [0, 32], sizes = [8, 32], strides = [1, 1]} : vector<8x128xf32> to vector<8x32xf32>
    %544 = vector.extract_strided_slice %541 {offsets = [0, 64], sizes = [8, 32], strides = [1, 1]} : vector<8x128xf32> to vector<8x32xf32>
    %545 = vector.extract_strided_slice %541 {offsets = [0, 96], sizes = [8, 32], strides = [1, 1]} : vector<8x128xf32> to vector<8x32xf32>
    %546 = arith.mulf %543, %460 : vector<8x32xf32>
    %547 = arith.mulf %542, %544 : vector<8x32xf32>
    %548 = arith.addf %546, %547 : vector<8x32xf32>
    %549 = math.tanh %548 : vector<8x32xf32>
    %550 = arith.mulf %545, %549 : vector<8x32xf32>
    %c40_165 = arith.constant 40 : index
    %c0_166 = arith.constant 0 : index
    %551 = vector.load %arg15[%c40_165, %c0_166] : memref<64x32xf32, #tpu.memory_space<vmem>>, vector<8x32xf32>
    tpu.vector_store %arg15[%c40_165, %c0_166], %550 {strides = array<i32>} : memref<64x32xf32, #tpu.memory_space<vmem>>, vector<8x32xf32>,
    %c48 = arith.constant 48 : index
    %c0_167 = arith.constant 0 : index
    %552 = vector.load %arg14[%c48, %c0_167] : memref<64x128xf32, #tpu.memory_space<vmem>>, vector<8x128xf32>
    %cst_168 = arith.constant dense<0.000000e+00> : vector<8x128xf32>
    %553 = tpu.matmul %484, %15, %cst_168 {dimension_numbers = #tpu.dot_dimension_numbers<[1], [0], [0], [1], [0, 0, 1, 1], [], []>} : vector<8x32xf32>, vector<32x128xf32>, vector<8x128xf32> -> vector<8x128xf32>
    %554 = arith.addf %552, %553 : vector<8x128xf32>
    %cst_169 = arith.constant 5.000000e-01 : f32
    %555 = vector.broadcast %cst_169 : f32 to vector<8x128xf32>
    %556 = arith.mulf %555, %554 : vector<8x128xf32>
    %557 = arith.select %5, %554, %556 : vector<8x128xi1>, vector<8x128xf32>
    %558 = math.tanh %557 : vector<8x128xf32>
    %cst_170 = arith.constant 5.000000e-01 : f32
    %559 = vector.broadcast %cst_170 : f32 to vector<8x128xf32>
    %560 = arith.mulf %559, %558 : vector<8x128xf32>
    %cst_171 = arith.constant 5.000000e-01 : f32
    %561 = vector.broadcast %cst_171 : f32 to vector<8x128xf32>
    %562 = arith.addf %560, %561 : vector<8x128xf32>
    %563 = arith.select %5, %558, %562 : vector<8x128xi1>, vector<8x128xf32>
    %564 = vector.extract_strided_slice %563 {offsets = [0, 0], sizes = [8, 32], strides = [1, 1]} : vector<8x128xf32> to vector<8x32xf32>
    %565 = vector.extract_strided_slice %563 {offsets = [0, 32], sizes = [8, 32], strides = [1, 1]} : vector<8x128xf32> to vector<8x32xf32>
    %566 = vector.extract_strided_slice %563 {offsets = [0, 64], sizes = [8, 32], strides = [1, 1]} : vector<8x128xf32> to vector<8x32xf32>
    %567 = vector.extract_strided_slice %563 {offsets = [0, 96], sizes = [8, 32], strides = [1, 1]} : vector<8x128xf32> to vector<8x32xf32>
    %568 = arith.mulf %565, %482 : vector<8x32xf32>
    %569 = arith.mulf %564, %566 : vector<8x32xf32>
    %570 = arith.addf %568, %569 : vector<8x32xf32>
    %571 = math.tanh %570 : vector<8x32xf32>
    %572 = arith.mulf %567, %571 : vector<8x32xf32>
    %573 = tpu.concatenate %572, %506 in 1 : vector<8x32xf32>, vector<8x32xf32> -> vector<8x64xf32>
    %c0_172 = arith.constant 0 : index
    %c0_173 = arith.constant 0 : index
    %574 = vector.load %arg4[%c0_172, %c0_173] : memref<64x128xf32, #tpu.memory_space<vmem>>, vector<64x128xf32>
    %cst_174 = arith.constant dense<0.000000e+00> : vector<8x128xf32>
    %575 = tpu.matmul %573, %574, %cst_174 {dimension_numbers = #tpu.dot_dimension_numbers<[1], [0], [0], [1], [0, 0, 1, 1], [], []>} : vector<8x64xf32>, vector<64x128xf32>, vector<8x128xf32> -> vector<8x128xf32>
    %576 = arith.addf %575, %8 : vector<8x128xf32>
    %cst_175 = arith.constant 5.000000e-01 : f32
    %577 = vector.broadcast %cst_175 : f32 to vector<8x128xf32>
    %578 = arith.mulf %577, %576 : vector<8x128xf32>
    %579 = arith.select %5, %576, %578 : vector<8x128xi1>, vector<8x128xf32>
    %580 = math.tanh %579 : vector<8x128xf32>
    %cst_176 = arith.constant 5.000000e-01 : f32
    %581 = vector.broadcast %cst_176 : f32 to vector<8x128xf32>
    %582 = arith.mulf %581, %580 : vector<8x128xf32>
    %cst_177 = arith.constant 5.000000e-01 : f32
    %583 = vector.broadcast %cst_177 : f32 to vector<8x128xf32>
    %584 = arith.addf %582, %583 : vector<8x128xf32>
    %585 = arith.select %5, %580, %584 : vector<8x128xi1>, vector<8x128xf32>
    %586 = vector.extract_strided_slice %585 {offsets = [0, 0], sizes = [8, 32], strides = [1, 1]} : vector<8x128xf32> to vector<8x32xf32>
    %587 = vector.extract_strided_slice %585 {offsets = [0, 32], sizes = [8, 32], strides = [1, 1]} : vector<8x128xf32> to vector<8x32xf32>
    %588 = vector.extract_strided_slice %585 {offsets = [0, 64], sizes = [8, 32], strides = [1, 1]} : vector<8x128xf32> to vector<8x32xf32>
    %589 = vector.extract_strided_slice %585 {offsets = [0, 96], sizes = [8, 32], strides = [1, 1]} : vector<8x128xf32> to vector<8x32xf32>
    %590 = arith.mulf %587, %504 : vector<8x32xf32>
    %591 = arith.mulf %586, %588 : vector<8x32xf32>
    %592 = arith.addf %590, %591 : vector<8x32xf32>
    %593 = math.tanh %592 : vector<8x32xf32>
    %594 = arith.mulf %589, %593 : vector<8x32xf32>
    %595 = tpu.concatenate %594, %528 in 1 : vector<8x32xf32>, vector<8x32xf32> -> vector<8x64xf32>
    %c0_178 = arith.constant 0 : index
    %c0_179 = arith.constant 0 : index
    %596 = vector.load %arg6[%c0_178, %c0_179] : memref<64x128xf32, #tpu.memory_space<vmem>>, vector<64x128xf32>
    %cst_180 = arith.constant dense<0.000000e+00> : vector<8x128xf32>
    %597 = tpu.matmul %595, %596, %cst_180 {dimension_numbers = #tpu.dot_dimension_numbers<[1], [0], [0], [1], [0, 0, 1, 1], [], []>} : vector<8x64xf32>, vector<64x128xf32>, vector<8x128xf32> -> vector<8x128xf32>
    %598 = arith.addf %597, %11 : vector<8x128xf32>
    %cst_181 = arith.constant 5.000000e-01 : f32
    %599 = vector.broadcast %cst_181 : f32 to vector<8x128xf32>
    %600 = arith.mulf %599, %598 : vector<8x128xf32>
    %601 = arith.select %5, %598, %600 : vector<8x128xi1>, vector<8x128xf32>
    %602 = math.tanh %601 : vector<8x128xf32>
    %cst_182 = arith.constant 5.000000e-01 : f32
    %603 = vector.broadcast %cst_182 : f32 to vector<8x128xf32>
    %604 = arith.mulf %603, %602 : vector<8x128xf32>
    %cst_183 = arith.constant 5.000000e-01 : f32
    %605 = vector.broadcast %cst_183 : f32 to vector<8x128xf32>
    %606 = arith.addf %604, %605 : vector<8x128xf32>
    %607 = arith.select %5, %602, %606 : vector<8x128xi1>, vector<8x128xf32>
    %608 = vector.extract_strided_slice %607 {offsets = [0, 0], sizes = [8, 32], strides = [1, 1]} : vector<8x128xf32> to vector<8x32xf32>
    %609 = vector.extract_strided_slice %607 {offsets = [0, 32], sizes = [8, 32], strides = [1, 1]} : vector<8x128xf32> to vector<8x32xf32>
    %610 = vector.extract_strided_slice %607 {offsets = [0, 64], sizes = [8, 32], strides = [1, 1]} : vector<8x128xf32> to vector<8x32xf32>
    %611 = vector.extract_strided_slice %607 {offsets = [0, 96], sizes = [8, 32], strides = [1, 1]} : vector<8x128xf32> to vector<8x32xf32>
    %612 = arith.mulf %609, %526 : vector<8x32xf32>
    %613 = arith.mulf %608, %610 : vector<8x32xf32>
    %614 = arith.addf %612, %613 : vector<8x32xf32>
    %615 = math.tanh %614 : vector<8x32xf32>
    %616 = arith.mulf %611, %615 : vector<8x32xf32>
    %617 = tpu.concatenate %616, %550 in 1 : vector<8x32xf32>, vector<8x32xf32> -> vector<8x64xf32>
    %c0_184 = arith.constant 0 : index
    %c0_185 = arith.constant 0 : index
    %618 = vector.load %arg8[%c0_184, %c0_185] : memref<64x128xf32, #tpu.memory_space<vmem>>, vector<64x128xf32>
    %cst_186 = arith.constant dense<0.000000e+00> : vector<8x128xf32>
    %619 = tpu.matmul %617, %618, %cst_186 {dimension_numbers = #tpu.dot_dimension_numbers<[1], [0], [0], [1], [0, 0, 1, 1], [], []>} : vector<8x64xf32>, vector<64x128xf32>, vector<8x128xf32> -> vector<8x128xf32>
    %620 = arith.addf %619, %14 : vector<8x128xf32>
    %cst_187 = arith.constant 5.000000e-01 : f32
    %621 = vector.broadcast %cst_187 : f32 to vector<8x128xf32>
    %622 = arith.mulf %621, %620 : vector<8x128xf32>
    %623 = arith.select %5, %620, %622 : vector<8x128xi1>, vector<8x128xf32>
    %624 = math.tanh %623 : vector<8x128xf32>
    %cst_188 = arith.constant 5.000000e-01 : f32
    %625 = vector.broadcast %cst_188 : f32 to vector<8x128xf32>
    %626 = arith.mulf %625, %624 : vector<8x128xf32>
    %cst_189 = arith.constant 5.000000e-01 : f32
    %627 = vector.broadcast %cst_189 : f32 to vector<8x128xf32>
    %628 = arith.addf %626, %627 : vector<8x128xf32>
    %629 = arith.select %5, %624, %628 : vector<8x128xi1>, vector<8x128xf32>
    %630 = vector.extract_strided_slice %629 {offsets = [0, 0], sizes = [8, 32], strides = [1, 1]} : vector<8x128xf32> to vector<8x32xf32>
    %631 = vector.extract_strided_slice %629 {offsets = [0, 32], sizes = [8, 32], strides = [1, 1]} : vector<8x128xf32> to vector<8x32xf32>
    %632 = vector.extract_strided_slice %629 {offsets = [0, 64], sizes = [8, 32], strides = [1, 1]} : vector<8x128xf32> to vector<8x32xf32>
    %633 = vector.extract_strided_slice %629 {offsets = [0, 96], sizes = [8, 32], strides = [1, 1]} : vector<8x128xf32> to vector<8x32xf32>
    %634 = arith.mulf %631, %548 : vector<8x32xf32>
    %635 = arith.mulf %630, %632 : vector<8x32xf32>
    %636 = arith.addf %634, %635 : vector<8x32xf32>
    %637 = math.tanh %636 : vector<8x32xf32>
    %638 = arith.mulf %633, %637 : vector<8x32xf32>
    %c48_190 = arith.constant 48 : index
    %c0_191 = arith.constant 0 : index
    %639 = vector.load %arg15[%c48_190, %c0_191] : memref<64x32xf32, #tpu.memory_space<vmem>>, vector<8x32xf32>
    tpu.vector_store %arg15[%c48_190, %c0_191], %638 {strides = array<i32>} : memref<64x32xf32, #tpu.memory_space<vmem>>, vector<8x32xf32>,
    %c56 = arith.constant 56 : index
    %c0_192 = arith.constant 0 : index
    %640 = vector.load %arg14[%c56, %c0_192] : memref<64x128xf32, #tpu.memory_space<vmem>>, vector<8x128xf32>
    %cst_193 = arith.constant dense<0.000000e+00> : vector<8x128xf32>
    %641 = tpu.matmul %572, %15, %cst_193 {dimension_numbers = #tpu.dot_dimension_numbers<[1], [0], [0], [1], [0, 0, 1, 1], [], []>} : vector<8x32xf32>, vector<32x128xf32>, vector<8x128xf32> -> vector<8x128xf32>
    %642 = arith.addf %640, %641 : vector<8x128xf32>
    %cst_194 = arith.constant 5.000000e-01 : f32
    %643 = vector.broadcast %cst_194 : f32 to vector<8x128xf32>
    %644 = arith.mulf %643, %642 : vector<8x128xf32>
    %645 = arith.select %5, %642, %644 : vector<8x128xi1>, vector<8x128xf32>
    %646 = math.tanh %645 : vector<8x128xf32>
    %cst_195 = arith.constant 5.000000e-01 : f32
    %647 = vector.broadcast %cst_195 : f32 to vector<8x128xf32>
    %648 = arith.mulf %647, %646 : vector<8x128xf32>
    %cst_196 = arith.constant 5.000000e-01 : f32
    %649 = vector.broadcast %cst_196 : f32 to vector<8x128xf32>
    %650 = arith.addf %648, %649 : vector<8x128xf32>
    %651 = arith.select %5, %646, %650 : vector<8x128xi1>, vector<8x128xf32>
    %652 = vector.extract_strided_slice %651 {offsets = [0, 0], sizes = [8, 32], strides = [1, 1]} : vector<8x128xf32> to vector<8x32xf32>
    %653 = vector.extract_strided_slice %651 {offsets = [0, 32], sizes = [8, 32], strides = [1, 1]} : vector<8x128xf32> to vector<8x32xf32>
    %654 = vector.extract_strided_slice %651 {offsets = [0, 64], sizes = [8, 32], strides = [1, 1]} : vector<8x128xf32> to vector<8x32xf32>
    %655 = vector.extract_strided_slice %651 {offsets = [0, 96], sizes = [8, 32], strides = [1, 1]} : vector<8x128xf32> to vector<8x32xf32>
    %656 = arith.mulf %653, %570 : vector<8x32xf32>
    %657 = arith.mulf %652, %654 : vector<8x32xf32>
    %658 = arith.addf %656, %657 : vector<8x32xf32>
    %659 = math.tanh %658 : vector<8x32xf32>
    %660 = arith.mulf %655, %659 : vector<8x32xf32>
    %661 = tpu.concatenate %660, %594 in 1 : vector<8x32xf32>, vector<8x32xf32> -> vector<8x64xf32>
    %c0_197 = arith.constant 0 : index
    %c0_198 = arith.constant 0 : index
    %662 = vector.load %arg4[%c0_197, %c0_198] : memref<64x128xf32, #tpu.memory_space<vmem>>, vector<64x128xf32>
    %cst_199 = arith.constant dense<0.000000e+00> : vector<8x128xf32>
    %663 = tpu.matmul %661, %662, %cst_199 {dimension_numbers = #tpu.dot_dimension_numbers<[1], [0], [0], [1], [0, 0, 1, 1], [], []>} : vector<8x64xf32>, vector<64x128xf32>, vector<8x128xf32> -> vector<8x128xf32>
    %664 = arith.addf %663, %8 : vector<8x128xf32>
    %cst_200 = arith.constant 5.000000e-01 : f32
    %665 = vector.broadcast %cst_200 : f32 to vector<8x128xf32>
    %666 = arith.mulf %665, %664 : vector<8x128xf32>
    %667 = arith.select %5, %664, %666 : vector<8x128xi1>, vector<8x128xf32>
    %668 = math.tanh %667 : vector<8x128xf32>
    %cst_201 = arith.constant 5.000000e-01 : f32
    %669 = vector.broadcast %cst_201 : f32 to vector<8x128xf32>
    %670 = arith.mulf %669, %668 : vector<8x128xf32>
    %cst_202 = arith.constant 5.000000e-01 : f32
    %671 = vector.broadcast %cst_202 : f32 to vector<8x128xf32>
    %672 = arith.addf %670, %671 : vector<8x128xf32>
    %673 = arith.select %5, %668, %672 : vector<8x128xi1>, vector<8x128xf32>
    %674 = vector.extract_strided_slice %673 {offsets = [0, 0], sizes = [8, 32], strides = [1, 1]} : vector<8x128xf32> to vector<8x32xf32>
    %675 = vector.extract_strided_slice %673 {offsets = [0, 32], sizes = [8, 32], strides = [1, 1]} : vector<8x128xf32> to vector<8x32xf32>
    %676 = vector.extract_strided_slice %673 {offsets = [0, 64], sizes = [8, 32], strides = [1, 1]} : vector<8x128xf32> to vector<8x32xf32>
    %677 = vector.extract_strided_slice %673 {offsets = [0, 96], sizes = [8, 32], strides = [1, 1]} : vector<8x128xf32> to vector<8x32xf32>
    %678 = arith.mulf %675, %592 : vector<8x32xf32>
    %679 = arith.mulf %674, %676 : vector<8x32xf32>
    %680 = arith.addf %678, %679 : vector<8x32xf32>
    %681 = math.tanh %680 : vector<8x32xf32>
    %682 = arith.mulf %677, %681 : vector<8x32xf32>
    %683 = tpu.concatenate %682, %616 in 1 : vector<8x32xf32>, vector<8x32xf32> -> vector<8x64xf32>
    %c0_203 = arith.constant 0 : index
    %c0_204 = arith.constant 0 : index
    %684 = vector.load %arg6[%c0_203, %c0_204] : memref<64x128xf32, #tpu.memory_space<vmem>>, vector<64x128xf32>
    %cst_205 = arith.constant dense<0.000000e+00> : vector<8x128xf32>
    %685 = tpu.matmul %683, %684, %cst_205 {dimension_numbers = #tpu.dot_dimension_numbers<[1], [0], [0], [1], [0, 0, 1, 1], [], []>} : vector<8x64xf32>, vector<64x128xf32>, vector<8x128xf32> -> vector<8x128xf32>
    %686 = arith.addf %685, %11 : vector<8x128xf32>
    %cst_206 = arith.constant 5.000000e-01 : f32
    %687 = vector.broadcast %cst_206 : f32 to vector<8x128xf32>
    %688 = arith.mulf %687, %686 : vector<8x128xf32>
    %689 = arith.select %5, %686, %688 : vector<8x128xi1>, vector<8x128xf32>
    %690 = math.tanh %689 : vector<8x128xf32>
    %cst_207 = arith.constant 5.000000e-01 : f32
    %691 = vector.broadcast %cst_207 : f32 to vector<8x128xf32>
    %692 = arith.mulf %691, %690 : vector<8x128xf32>
    %cst_208 = arith.constant 5.000000e-01 : f32
    %693 = vector.broadcast %cst_208 : f32 to vector<8x128xf32>
    %694 = arith.addf %692, %693 : vector<8x128xf32>
    %695 = arith.select %5, %690, %694 : vector<8x128xi1>, vector<8x128xf32>
    %696 = vector.extract_strided_slice %695 {offsets = [0, 0], sizes = [8, 32], strides = [1, 1]} : vector<8x128xf32> to vector<8x32xf32>
    %697 = vector.extract_strided_slice %695 {offsets = [0, 32], sizes = [8, 32], strides = [1, 1]} : vector<8x128xf32> to vector<8x32xf32>
    %698 = vector.extract_strided_slice %695 {offsets = [0, 64], sizes = [8, 32], strides = [1, 1]} : vector<8x128xf32> to vector<8x32xf32>
    %699 = vector.extract_strided_slice %695 {offsets = [0, 96], sizes = [8, 32], strides = [1, 1]} : vector<8x128xf32> to vector<8x32xf32>
    %700 = arith.mulf %697, %614 : vector<8x32xf32>
    %701 = arith.mulf %696, %698 : vector<8x32xf32>
    %702 = arith.addf %700, %701 : vector<8x32xf32>
    %703 = math.tanh %702 : vector<8x32xf32>
    %704 = arith.mulf %699, %703 : vector<8x32xf32>
    %705 = tpu.concatenate %704, %638 in 1 : vector<8x32xf32>, vector<8x32xf32> -> vector<8x64xf32>
    %c0_209 = arith.constant 0 : index
    %c0_210 = arith.constant 0 : index
    %706 = vector.load %arg8[%c0_209, %c0_210] : memref<64x128xf32, #tpu.memory_space<vmem>>, vector<64x128xf32>
    %cst_211 = arith.constant dense<0.000000e+00> : vector<8x128xf32>
    %707 = tpu.matmul %705, %706, %cst_211 {dimension_numbers = #tpu.dot_dimension_numbers<[1], [0], [0], [1], [0, 0, 1, 1], [], []>} : vector<8x64xf32>, vector<64x128xf32>, vector<8x128xf32> -> vector<8x128xf32>
    %708 = arith.addf %707, %14 : vector<8x128xf32>
    %cst_212 = arith.constant 5.000000e-01 : f32
    %709 = vector.broadcast %cst_212 : f32 to vector<8x128xf32>
    %710 = arith.mulf %709, %708 : vector<8x128xf32>
    %711 = arith.select %5, %708, %710 : vector<8x128xi1>, vector<8x128xf32>
    %712 = math.tanh %711 : vector<8x128xf32>
    %cst_213 = arith.constant 5.000000e-01 : f32
    %713 = vector.broadcast %cst_213 : f32 to vector<8x128xf32>
    %714 = arith.mulf %713, %712 : vector<8x128xf32>
    %cst_214 = arith.constant 5.000000e-01 : f32
    %715 = vector.broadcast %cst_214 : f32 to vector<8x128xf32>
    %716 = arith.addf %714, %715 : vector<8x128xf32>
    %717 = arith.select %5, %712, %716 : vector<8x128xi1>, vector<8x128xf32>
    %718 = vector.extract_strided_slice %717 {offsets = [0, 0], sizes = [8, 32], strides = [1, 1]} : vector<8x128xf32> to vector<8x32xf32>
    %719 = vector.extract_strided_slice %717 {offsets = [0, 32], sizes = [8, 32], strides = [1, 1]} : vector<8x128xf32> to vector<8x32xf32>
    %720 = vector.extract_strided_slice %717 {offsets = [0, 64], sizes = [8, 32], strides = [1, 1]} : vector<8x128xf32> to vector<8x32xf32>
    %721 = vector.extract_strided_slice %717 {offsets = [0, 96], sizes = [8, 32], strides = [1, 1]} : vector<8x128xf32> to vector<8x32xf32>
    %722 = arith.mulf %719, %636 : vector<8x32xf32>
    %723 = arith.mulf %718, %720 : vector<8x32xf32>
    %724 = arith.addf %722, %723 : vector<8x32xf32>
    %725 = math.tanh %724 : vector<8x32xf32>
    %726 = arith.mulf %721, %725 : vector<8x32xf32>
    %c56_215 = arith.constant 56 : index
    %c0_216 = arith.constant 0 : index
    %727 = vector.load %arg15[%c56_215, %c0_216] : memref<64x32xf32, #tpu.memory_space<vmem>>, vector<8x32xf32>
    tpu.vector_store %arg15[%c56_215, %c0_216], %726 {strides = array<i32>} : memref<64x32xf32, #tpu.memory_space<vmem>>, vector<8x32xf32>,
    %c0_217 = arith.constant 0 : index
    %c0_218 = arith.constant 0 : index
    %728 = vector.load %arg15[%c0_217, %c0_218] : memref<64x32xf32, #tpu.memory_space<vmem>>, vector<64x32xf32>
    %c0_219 = arith.constant 0 : index
    %c0_220 = arith.constant 0 : index
    %729 = vector.load %arg10[%c0_219, %c0_220] : memref<32x8xf32, #tpu.memory_space<vmem>>, vector<32x8xf32>
    %cst_221 = arith.constant dense<0.000000e+00> : vector<64x8xf32>
    %730 = tpu.matmul %728, %729, %cst_221 {dimension_numbers = #tpu.dot_dimension_numbers<[1], [0], [0], [1], [0, 0, 1, 1], [], []>} : vector<64x32xf32>, vector<32x8xf32>, vector<64x8xf32> -> vector<64x8xf32>
    %c0_222 = arith.constant 0 : index
    %c0_223 = arith.constant 0 : index
    %731 = vector.load %arg11[%c0_222, %c0_223] : memref<1x8xf32, #tpu.memory_space<vmem>>, vector<1x8xf32>
    %732 = vector.broadcast %731 : vector<1x8xf32> to vector<64x8xf32>
    %733 = arith.addf %730, %732 : vector<64x8xf32>
    %c0_224 = arith.constant 0 : index
    %c0_225 = arith.constant 0 : index
    %734 = vector.load %arg12[%c0_224, %c0_225] : memref<64x8xf32, #tpu.memory_space<vmem>>, vector<64x8xf32>
    tpu.vector_store %arg12[%c0_224, %c0_225], %733 {strides = array<i32>} : memref<64x8xf32, #tpu.memory_space<vmem>>, vector<64x8xf32>,
    %c0_226 = arith.constant 0 : index
    %c0_227 = arith.constant 0 : index
    %c0_228 = arith.constant 0 : index
    %735 = vector.load %arg13[%c0_226, %c0_227, %c0_228] : memref<8x8x32xf32, #tpu.memory_space<vmem>>, vector<1x8x32xf32>
    %736 = vector.shape_cast %735 : vector<1x8x32xf32> to vector<8x32xf32>
    %737 = vector.shape_cast %660 : vector<8x32xf32> to vector<1x8x32xf32>
    tpu.vector_store %arg13[%c0_226, %c0_227, %c0_228], %737 {strides = array<i32>} : memref<8x8x32xf32, #tpu.memory_space<vmem>>, vector<1x8x32xf32>,
    %c1 = arith.constant 1 : index
    %c0_229 = arith.constant 0 : index
    %c0_230 = arith.constant 0 : index
    %738 = vector.load %arg13[%c1, %c0_229, %c0_230] : memref<8x8x32xf32, #tpu.memory_space<vmem>>, vector<1x8x32xf32>
    %739 = vector.shape_cast %738 : vector<1x8x32xf32> to vector<8x32xf32>
    %740 = vector.shape_cast %658 : vector<8x32xf32> to vector<1x8x32xf32>
    tpu.vector_store %arg13[%c1, %c0_229, %c0_230], %740 {strides = array<i32>} : memref<8x8x32xf32, #tpu.memory_space<vmem>>, vector<1x8x32xf32>,
    %c2 = arith.constant 2 : index
    %c0_231 = arith.constant 0 : index
    %c0_232 = arith.constant 0 : index
    %741 = vector.load %arg13[%c2, %c0_231, %c0_232] : memref<8x8x32xf32, #tpu.memory_space<vmem>>, vector<1x8x32xf32>
    %742 = vector.shape_cast %741 : vector<1x8x32xf32> to vector<8x32xf32>
    %743 = vector.shape_cast %682 : vector<8x32xf32> to vector<1x8x32xf32>
    tpu.vector_store %arg13[%c2, %c0_231, %c0_232], %743 {strides = array<i32>} : memref<8x8x32xf32, #tpu.memory_space<vmem>>, vector<1x8x32xf32>,
    %c3 = arith.constant 3 : index
    %c0_233 = arith.constant 0 : index
    %c0_234 = arith.constant 0 : index
    %744 = vector.load %arg13[%c3, %c0_233, %c0_234] : memref<8x8x32xf32, #tpu.memory_space<vmem>>, vector<1x8x32xf32>
    %745 = vector.shape_cast %744 : vector<1x8x32xf32> to vector<8x32xf32>
    %746 = vector.shape_cast %680 : vector<8x32xf32> to vector<1x8x32xf32>
    tpu.vector_store %arg13[%c3, %c0_233, %c0_234], %746 {strides = array<i32>} : memref<8x8x32xf32, #tpu.memory_space<vmem>>, vector<1x8x32xf32>,
    %c4 = arith.constant 4 : index
    %c0_235 = arith.constant 0 : index
    %c0_236 = arith.constant 0 : index
    %747 = vector.load %arg13[%c4, %c0_235, %c0_236] : memref<8x8x32xf32, #tpu.memory_space<vmem>>, vector<1x8x32xf32>
    %748 = vector.shape_cast %747 : vector<1x8x32xf32> to vector<8x32xf32>
    %749 = vector.shape_cast %704 : vector<8x32xf32> to vector<1x8x32xf32>
    tpu.vector_store %arg13[%c4, %c0_235, %c0_236], %749 {strides = array<i32>} : memref<8x8x32xf32, #tpu.memory_space<vmem>>, vector<1x8x32xf32>,
    %c5 = arith.constant 5 : index
    %c0_237 = arith.constant 0 : index
    %c0_238 = arith.constant 0 : index
    %750 = vector.load %arg13[%c5, %c0_237, %c0_238] : memref<8x8x32xf32, #tpu.memory_space<vmem>>, vector<1x8x32xf32>
    %751 = vector.shape_cast %750 : vector<1x8x32xf32> to vector<8x32xf32>
    %752 = vector.shape_cast %702 : vector<8x32xf32> to vector<1x8x32xf32>
    tpu.vector_store %arg13[%c5, %c0_237, %c0_238], %752 {strides = array<i32>} : memref<8x8x32xf32, #tpu.memory_space<vmem>>, vector<1x8x32xf32>,
    %c6 = arith.constant 6 : index
    %c0_239 = arith.constant 0 : index
    %c0_240 = arith.constant 0 : index
    %753 = vector.load %arg13[%c6, %c0_239, %c0_240] : memref<8x8x32xf32, #tpu.memory_space<vmem>>, vector<1x8x32xf32>
    %754 = vector.shape_cast %753 : vector<1x8x32xf32> to vector<8x32xf32>
    %755 = vector.shape_cast %726 : vector<8x32xf32> to vector<1x8x32xf32>
    tpu.vector_store %arg13[%c6, %c0_239, %c0_240], %755 {strides = array<i32>} : memref<8x8x32xf32, #tpu.memory_space<vmem>>, vector<1x8x32xf32>,
    %c7 = arith.constant 7 : index
    %c0_241 = arith.constant 0 : index
    %c0_242 = arith.constant 0 : index
    %756 = vector.load %arg13[%c7, %c0_241, %c0_242] : memref<8x8x32xf32, #tpu.memory_space<vmem>>, vector<1x8x32xf32>
    %757 = vector.shape_cast %756 : vector<1x8x32xf32> to vector<8x32xf32>
    %758 = vector.shape_cast %724 : vector<8x32xf32> to vector<1x8x32xf32>
    tpu.vector_store %arg13[%c7, %c0_241, %c0_242], %758 {strides = array<i32>} : memref<8x8x32xf32, #tpu.memory_space<vmem>>, vector<1x8x32xf32>,
    return
  }
}

</mosaic_0001>

<bundles_post_ra>
// kernel: lstm_general_forward.1
= control target key start
LH: loop header
LB: loop body
LE: loop exit
PB: predicated region body
PF: predicated region fallthrough
CT: control target
= control target key end

     0   :  { %vm89_vm0 = vcmask 64512   ;;  %v5316_v0 = vmov 0.0|0.0   ;;  %vm5317_vm1 = vmmov 0   ;;  %v5318_v4 = vmov 0.0   ;;  %s5319_s22 = smov 64   ;;  %s5320_s23 = smov 32   ;;  %s6678_s2 = inlined_call_operand.vmem [shape: f32[32,128], index: 2, kind: input, shape index: {}]   ;;  %s6679_s1 = inlined_call_operand.vmem [shape: f32[8,128], index: 1, kind: input, shape index: {}]   ;;  %s6680_s0 = inlined_call_operand.vmem [shape: f32[64,8], index: 0, kind: input, shape index: {}]   ;;  %s6681_s3 = inlined_call_operand.vmem [shape: f32[1,128], index: 3, kind: input, shape index: {}]   ;;  %s6682_s4 = inlined_call_operand.vmem [shape: f32[64,128], index: 4, kind: input, shape index: {}]   ;;  %s6683_s5 = inlined_call_operand.vmem [shape: f32[1,128], index: 5, kind: input, shape index: {}]   ;;  %s6684_s6 = inlined_call_operand.vmem [shape: f32[64,128], index: 6, kind: input, shape index: {}]   ;;  %s6685_s7 = inlined_call_operand.vmem [shape: f32[1,128], index: 7, kind: input, shape index: {}]   ;;  %s6686_s8 = inlined_call_operand.vmem [shape: f32[64,128], index: 8, kind: input, shape index: {}]   ;;  %s6687_s9 = inlined_call_operand.vmem [shape: f32[1,128], index: 9, kind: input, shape index: {}]   ;;  %s6688_s13 = inlined_call_operand.vmem [shape: f32[8,8,32], index: 13, kind: output, shape index: {1}]   ;;  %s6689_s10 = inlined_call_operand.vmem [shape: f32[32,8], index: 10, kind: input, shape index: {}]   ;;  %s6690_s11 = inlined_call_operand.vmem [shape: f32[1,8], index: 11, kind: input, shape index: {}]   ;;  %s6691_s12 = inlined_call_operand.vmem [shape: f32[64,8], index: 12, kind: output, shape index: {0}]  }
   0x1   :  { %4834 = vmatprep.subr.bf16.mxu1 %v5316_v0  ;;  %v69_v1 = vld [vmem:[%s6678_s2] sm:$0xff]  ;;  %v70_v2 = vld [vmem:[%s6678_s2 + $0x8] sm:$0xff]  ;;  %4278 = vmatprep.mubr.msk.f32.mxu1 %vm5317_vm1, %v5318_v4  ;;  %v71_v8 = vld [vmem:[%s6678_s2 + $0x10] sm:$0xff]  ;;  %v43_v11 = vlaneseq  ;;  %vm228_vm5 = vcmask 261120   ;;  %vm339_vm6 = vcmask 523264   ;;  %s5321_s16 = smov 96  }
   0x2   :  { %v81_v3 = vld [vmem:[%s6679_s1] sm:$0xff]  ;;  %v5404_v5 = vpack.c.bf16 %v70_v2, %v69_v1  ;;  %v74_v7 = vld [vmem:[%s6680_s0 + $0x8] sm:$0xff]  ;;  %v72_v9 = vld [vmem:[%s6678_s2 + $0x18] sm:$0xff] }
   0x3   :  { %4256 = vmatprep.subr.mxu0 %v81_v3  ;;  %v73_v6 = vld [vmem:[%s6680_s0] sm:$0xff]  ;;  %v5421_v10 = vpack.c.bf16 %v72_v9, %v71_v8  ;;  %v44_v15 = vand.u32 127, %v43_v11  ;;  %v75_v32 = vld [vmem:[%s6680_s0 + $0x10] sm:$0xff]  ;;  %v76_v33 = vld [vmem:[%s6680_s0 + $0x18] sm:$0xff] }
   0x4   :  { %4257 = vmatpush3.msra.mxu0 %v81_v3  ;;  %4258 = vmatprep.mubr.msk.f32.mxu0 %vm89_vm0, %v73_v6  ;;  %v5435_v13 = vld [vmem:[%s6681_s3] ss:$0 sm:$0xff]  ;;  %v332_v36 = vld [vmem:[%s6682_s4 + $0x8] sm:$0xff]  ;;  %v333_v37 = vld [vmem:[%s6682_s4 + $0x10] sm:$0xff] }
   0x5   :  { %4836 = vmatpush3.bf16.msra.mxu1 %v5404_v5  ;;  %4259 = vmatmul.mubr.msk.f32.vlgmr.msra.gmra.mrb[0].mxu0 %vm89_vm0, %v74_v7  ;;  %vm45_vm2 = vcmp.ge.s32.totalorder %v44_v15, 64  ;;  %vm46_vm3 = vcmp.lt.s32.totalorder %v44_v15, 96  ;;  %v77_v34 = vld [vmem:[%s6680_s0 + $0x20] sm:$0xff]  ;;  %v334_v39 = vld [vmem:[%s6682_s4 + $0x18] sm:$0xff]  ;;  %v78_v40 = vld [vmem:[%s6680_s0 + $0x28] sm:$0xff] }
   0x6   :  { %4837 = vmatprep.subr.bf16.mxu1 %v5316_v0  ;;  %4840 = vmatprep.subr.bf16.mxu0 %v5316_v0  ;;  %vm5438_vm4 = vmand %vm45_vm2, %vm46_vm3  ;;  %v331_v35 = vld [vmem:[%s6682_s4] sm:$0xff]  ;;  %v5481_v41 = vpack.c.bf16 %v334_v39, %v333_v37  ;;  %v79_v42 = vld [vmem:[%s6680_s0 + $0x30] sm:$0xff] }
   0x7   :  { %4261 = vmatprep.mubr.msk.f32.mxu0 %vm89_vm0, %v75_v32  ;;  %v5470_v38 = vpack.c.bf16 %v332_v36, %v331_v35  ;;  %v335_v43 = vld [vmem:[%s6682_s4 + $0x20] sm:$0xff]  ;;  %v336_v44 = vld [vmem:[%s6682_s4 + $0x28] sm:$0xff]  ;;  %v80_v45 = vld [vmem:[%s6680_s0 + $0x38] sm:$0xff] }
   0x8   :  { %v5499_v46 = vpack.c.bf16 %v336_v44, %v335_v43  ;;  %v337_v47 = vld [vmem:[%s6682_s4 + $0x30] sm:$0xff]  ;;  %v338_v48 = vld [vmem:[%s6682_s4 + $0x38] sm:$0xff]  ;;  %v5538_v61 = vld [vmem:[%s6683_s5] ss:$0 sm:$0xff] }
   0x9   :  { %4839 = vmatpush3.bf16.msra.mxu1 %v5421_v10  ;;  %4262 = vmatmul.mubr.msk.f32.gmra.mrb[2].mxu0 %vm89_vm0, %v76_v33  ;;  %v5513_v50 = vpack.c.bf16 %v338_v48, %v337_v47 }
   0xa   :  { %4852 = vmatprep.subr.bf16.mxu1 %v5316_v0  ;;  %4264 = vmatprep.mubr.msk.f32.mxu0 %vm89_vm0, %v77_v34 }
   0xb   :  { %4842 = vmatpush3.bf16.msra.mxu0 %v5470_v38 }
   0xc   :  { %4279 = vmatmul.mubr.f32.vlgmr.msra.gmra.mrb[0].mxu1 %v5318_v4  ;;  %4843 = vmatprep.subr.bf16.mxu0 %v5316_v0 }
   0xd   :  { %4316 = vmatprep.mubr.msk.f32.mxu1 %vm5317_vm1, %v5318_v4  ;;  %4265 = vmatmul.mubr.msk.f32.gmra.mrb[4].mxu0 %vm89_vm0, %v78_v40 }
   0xe   :  { %4267 = vmatprep.mubr.msk.f32.mxu0 %vm89_vm0, %v79_v42 }
   0xf   :  { %4845 = vmatpush3.bf16.msra.mxu0 %v5481_v41 }
  0x10   :  { %4846 = vmatprep.subr.bf16.mxu0 %v5316_v0 }
  0x11   :  { %4268 = vmatmul.mubr.msk.f32.gmra.mrb[6].mxu0 %vm89_vm0, %v80_v45 }
  0x12   :  { %4297 = vmatprep.mubr.msk.f32.mxu0 %vm5317_vm1, %v5318_v4 }
  0x13   :  { %4848 = vmatpush3.bf16.msra.mxu0 %v5499_v46 }
  0x14   :  { %4849 = vmatprep.subr.bf16.mxu0 %v5316_v0 }
  0x17   :  { %4851 = vmatpush3.bf16.msra.mxu0 %v5513_v50 }
  0x18   :  { %4864 = vmatprep.subr.bf16.mxu0 %v5316_v0 }
  0xd8   :  { %v5430_v12 = vpop.f32.mrb[0].mxu0 }
  0xd9   :  { %v180_v14 = vpop.f32.mrb[1].mxu0  ;;  %v186_v40 = vadd.f32 %v5430_v12, %v5435_v13 }
  0xda   :  { %v181_v16 = vadd.f32 %v5435_v13, %v180_v14 }
  0xdc   :  { %v5519_v53 = vpop.f32.mrb[2].mxu0 }
  0xdd   :  { %v5521_v54 = vpop.f32.mrb[3].mxu0 }
  0xdf   :  { %v298_v17 = vpop.f32.mrb[0].mxu1 }
  0xe0   :  { %v302_v18 = vadd.f32 %v298_v17, %v181_v16  ;;  %v4280_v19 = vpop.f32.mrb[1].mxu1  ;;  %v5523_v55 = vpop.f32.mrb[4].mxu0 }
  0xe1   :  { %v5525_v56 = vpop.f32.mrb[5].mxu0  ;;  %v442_v19 = vld [vmem:[%s6684_s6 + $0x8] sm:$0xff] }
  0xe2   :  { %v303_v21 = vmul.f32 0.5, %v302_v18 }
  0xe4   :  { %v304_v22 = vsel %vm5438_vm4, %v302_v18, %v303_v21  ;;  %v5527_v57 = vpop.f32.mrb[6].mxu0  ;;  %v441_v18 = vld [vmem:[%s6684_s6] sm:$0xff]  ;;  %v443_v21 = vld [vmem:[%s6684_s6 + $0x10] sm:$0xff] }
  0xe5   :  { %5184 = vtanh.f32 %v304_v22  ;;  %v5529_v58 = vpop.f32.mrb[7].mxu0  ;;  %v5559_v22 = vpack.c.bf16 %v442_v19, %v441_v18 }
  0xe7   :  { %4854 = vmatpush3.bf16.msra.mxu1 %v5559_v22 }
  0xe8   :  { %4855 = vmatprep.subr.bf16.mxu1 %v5316_v0 }
  0xef   :  { %v5185_v23 = vpop.eup %5184 }
  0xf0   :  { %v306_v24 = vmul.f32 0.5, %v5185_v23 }
  0xf2   :  { %v307_v25 = vadd.f32 0.5, %v306_v24 }
  0xf4   :  { %v308_v26 = vsel %vm5438_vm4, %v5185_v23, %v307_v25  ;;  %v444_v23 = vld [vmem:[%s6684_s6 + $0x18] sm:$0xff]  ;;  %v445_v25 = vld [vmem:[%s6684_s6 + $0x20] sm:$0xff] }
  0xf5   :  { %311 = vrot.lane.b32.xlu0 %v308_v26, %s5319_s22  ;;  %v309_v29 = vmul.f32 0.0, %v308_v26  ;;  %v5565_v24 = vpack.c.bf16 %v444_v23, %v443_v21 }
  0xf7   :  { %4857 = vmatpush3.bf16.msra.mxu1 %v5565_v24 }
  0xf8   :  { %4858 = vmatprep.subr.bf16.mxu1 %v5316_v0 }
 0x167   :  { %v312_v27 = vpop.permute.xlu0 %311 }
 0x168   :  { %v314_v28 = vmul.f32 %v312_v27, %v308_v26 }
 0x16a   :  { %316 = vrot.lane.b32.xlu0 %v314_v28, %s5320_s23  ;;  %v447_v28 = vld [vmem:[%s6684_s6 + $0x30] sm:$0xff] }
 0x1dc   :  { %v317_v30 = vpop.permute.xlu0 %316 }
 0x1dd   :  { %v5448_v31 = vadd.f32 %v317_v30, %v309_v29  ;;  %v448_v29 = vld [vmem:[%s6684_s6 + $0x38] sm:$0xff] }
 0x1de   :  { %v5586_v32 = vpack.c.bf16 %v448_v29, %v447_v28 }
 0x1df   :  { %5186 = vtanh.f32 %v5448_v31 }
 0x1e9   :  { %v5187_v49 = vpop.eup %5186 }
 0x1ea   :  { %322 = vrot.lane.b32.xlu1 %v5187_v49, %s5319_s22 }
 0x25c   :  { %v323_v51 = vpop.permute.xlu1 %322 }
 0x25d   :  { %v325_v52 = vmul.f32 %v323_v51, %v308_v26  ;;  %v446_v26 = vld [vmem:[%s6684_s6 + $0x28] sm:$0xff] }
 0x25e   :  { %v5575_v27 = vpack.c.bf16 %v446_v26, %v445_v25 }
 0x25f   :  { %327 = vrot.lane.b32.xlu1 %v325_v52, %s5320_s23 }
 0x260   :  { %4860 = vmatpush3.bf16.msra.mxu1 %v5575_v27 }
 0x261   :  { %4861 = vmatprep.subr.bf16.mxu1 %v5316_v0 }
 0x264   :  { %4863 = vmatpush3.bf16.msra.mxu1 %v5586_v32 }
 0x265   :  { %4876 = vmatprep.subr.bf16.mxu1 %v5316_v0 }
 0x2d1   :  { %v328_v59 = vpop.permute.xlu1 %327 }
 0x2d2   :  { %v330_v60 = vsel %vm228_vm5, %v328_v59, 0.0 }
 0x2d3   :  { %4298 = vmatmul.mubr.msk.f32.vlgmr.msra.gmra.mrb[8].mxu0 %vm339_vm6, %v330_v60 }
 0x2d4   :  { %4335 = vmatprep.mubr.msk.f32.mxu0 %vm5317_vm1, %v5318_v4 }
 0x3a6   :  { %v409_v62 = vpop.f32.mrb[8].mxu0 }
 0x3a7   :  { %v410_v63 = vadd.f32 %v5538_v61, %v409_v62  ;;  %v4299_v1 = vpop.f32.mrb[9].mxu0 }
 0x3a9   :  { %v413_v2 = vmul.f32 0.5, %v410_v63 }
 0x3ab   :  { %v414_v3 = vsel %vm5438_vm4, %v410_v63, %v413_v2  ;;  %v5628_v2 = vld [vmem:[%s6685_s7] ss:$0 sm:$0xff] }
 0x3ac   :  { %5188 = vtanh.f32 %v414_v3 }
 0x3b6   :  { %v5189_v6 = vpop.eup %5188 }
 0x3b7   :  { %v416_v7 = vmul.f32 0.5, %v5189_v6 }
 0x3b9   :  { %v417_v8 = vadd.f32 0.5, %v416_v7 }
 0x3bb   :  { %v418_v9 = vsel %vm5438_vm4, %v5189_v6, %v417_v8 }
 0x3bc   :  { %421 = vrot.lane.b32.xlu0 %v418_v9, %s5319_s22  ;;  %v419_v15 = vmul.f32 0.0, %v418_v9 }
 0x42e   :  { %v422_v11 = vpop.permute.xlu0 %421 }
 0x42f   :  { %v424_v14 = vmul.f32 %v422_v11, %v418_v9 }
 0x431   :  { %426 = vrot.lane.b32.xlu1 %v424_v14, %s5320_s23 }
 0x4a3   :  { %v427_v16 = vpop.permute.xlu1 %426 }
 0x4a4   :  { %v5547_v17 = vadd.f32 %v427_v16, %v419_v15 }
 0x4a6   :  { %5190 = vtanh.f32 %v5547_v17 }
 0x4b0   :  { %v5191_v30 = vpop.eup %5190 }
 0x4b1   :  { %432 = vrot.lane.b32.xlu0 %v5191_v30, %s5319_s22 }
 0x523   :  { %v433_v33 = vpop.permute.xlu0 %432 }
 0x524   :  { %v435_v34 = vmul.f32 %v433_v33, %v418_v9 }
 0x526   :  { %437 = vrot.lane.b32.xlu1 %v435_v34, %s5320_s23 }
 0x598   :  { %v438_v35 = vpop.permute.xlu1 %437 }
 0x599   :  { %v440_v36 = vsel %vm228_vm5, %v438_v35, 0.0 }
 0x59a   :  { %4317 = vmatmul.mubr.msk.f32.vlgmr.msra.gmra.mrb[2].mxu1 %vm339_vm6, %v440_v36 }
 0x59b   :  { %4878 = vmatpush3.bf16.msra.mxu1 %v5404_v5  ;;  %4346 = vmatprep.mubr.msk.f32.mxu1 %vm5317_vm1, %v5318_v4 }
 0x59c   :  { %4879 = vmatprep.subr.bf16.mxu1 %v5316_v0 }
 0x59f   :  { %4881 = vmatpush3.bf16.msra.mxu1 %v5421_v10 }
 0x5a0   :  { %4882 = vmatprep.subr.bf16.mxu1 %v5316_v0 }
 0x5a2   :  { %4347 = vmatmul.mubr.msk.f32.vlgmr.msra.gmra.mrb[4].mxu1 %vm228_vm5, %v328_v59 }
 0x5a3   :  { %4884 = vmatpush3.bf16.msra.mxu1 %v5470_v38  ;;  %4365 = vmatprep.mubr.msk.f32.mxu1 %vm5317_vm1, %v5318_v4 }
 0x5a4   :  { %4885 = vmatprep.subr.bf16.mxu1 %v5316_v0 }
 0x5a7   :  { %4887 = vmatpush3.bf16.msra.mxu1 %v5481_v41 }
 0x5a8   :  { %4888 = vmatprep.subr.bf16.mxu1 %v5316_v0 }
 0x5ab   :  { %4890 = vmatpush3.bf16.msra.mxu1 %v5499_v46 }
 0x5ac   :  { %4891 = vmatprep.subr.bf16.mxu1 %v5316_v0 }
 0x5af   :  { %4893 = vmatpush3.bf16.msra.mxu1 %v5513_v50 }
 0x5b0   :  { %4906 = vmatprep.subr.bf16.mxu1 %v5316_v0 }
 0x66d   :  { %v518_v37 = vpop.f32.mrb[2].mxu1 }
 0x66e   :  { %v4318_v39 = vpop.f32.mrb[3].mxu1  ;;  %v519_v3 = vadd.f32 %v5628_v2, %v518_v37  ;;  %v550_v37 = vld [vmem:[%s6686_s8] sm:$0xff] }
 0x66f   :  { %v551_v39 = vld [vmem:[%s6686_s8 + $0x8] sm:$0xff] }
 0x670   :  { %v522_v6 = vmul.f32 0.5, %v519_v3 }
 0x675   :  { %v728_v42 = vpop.f32.mrb[4].mxu1 }
 0x676   :  { %v732_v43 = vadd.f32 %v728_v42, %v186_v40  ;;  %v4348_v44 = vpop.f32.mrb[5].mxu1  ;;  %v5658_v40 = vpack.c.bf16 %v551_v39, %v550_v37  ;;  %v552_v42 = vld [vmem:[%s6686_s8 + $0x10] sm:$0xff] }
 0x678   :  { %v733_v45 = vmul.f32 0.5, %v732_v43  ;;  %4866 = vmatpush3.bf16.msra.mxu0 %v5658_v40 }
 0x679   :  { %4867 = vmatprep.subr.bf16.mxu0 %v5316_v0 }
 0x67a   :  { %v734_v47 = vsel %vm5438_vm4, %v732_v43, %v733_v45  ;;  %v553_v43 = vld [vmem:[%s6686_s8 + $0x18] sm:$0xff]  ;;  %v554_v45 = vld [vmem:[%s6686_s8 + $0x20] sm:$0xff] }
 0x67b   :  { %5192 = vtanh.f32 %v734_v47  ;;  %v5667_v44 = vpack.c.bf16 %v553_v43, %v552_v42  ;;  %v555_v47 = vld [vmem:[%s6686_s8 + $0x28] sm:$0xff] }
 0x67d   :  { %4869 = vmatpush3.bf16.msra.mxu0 %v5667_v44 }
 0x67e   :  { %4870 = vmatprep.subr.bf16.mxu0 %v5316_v0 }
 0x685   :  { %v5193_v48 = vpop.eup %5192 }
 0x686   :  { %v736_v49 = vmul.f32 0.5, %v5193_v48 }
 0x688   :  { %v737_v51 = vadd.f32 0.5, %v736_v49  ;;  %v5679_v49 = vpack.c.bf16 %v555_v47, %v554_v45 }
 0x68a   :  { %v738_v52 = vsel %vm5438_vm4, %v5193_v48, %v737_v51  ;;  %4872 = vmatpush3.bf16.msra.mxu0 %v5679_v49 }
 0x68b   :  { %741 = vrot.lane.b32.xlu0 %v738_v52, %s5319_s22  ;;  %v739_v12 = vmul.f32 %v738_v52, %v5448_v31  ;;  %v523_v31 = vsel %vm5438_vm4, %v519_v3, %v522_v6  ;;  %4873 = vmatprep.subr.bf16.mxu0 %v5316_v0 }
 0x6fd   :  { %v742_v59 = vpop.permute.xlu0 %741 }
 0x6fe   :  { %v744_v60 = vmul.f32 %v742_v59, %v738_v52  ;;  %v557_v59 = vld [vmem:[%s6686_s8 + $0x38] sm:$0xff] }
 0x700   :  { %746 = vrot.lane.b32.xlu1 %v744_v60, %s5320_s23 }
 0x772   :  { %v747_v62 = vpop.permute.xlu1 %746 }
 0x773   :  { %v5620_v63 = vadd.f32 %v747_v62, %v739_v12 }
 0x775   :  { %5194 = vtanh.f32 %v5620_v63 }
 0x776   :  { %5196 = vtanh.f32 %v523_v31 }
 0x77f   :  { %v5195_v1 = vpop.eup %5194 }
 0x780   :  { %752 = vrot.lane.b32.xlu0 %v5195_v1, %s5319_s22  ;;  %v5197_v7 = vpop.eup %5196 }
 0x781   :  { %v525_v8 = vmul.f32 0.5, %v5197_v7 }
 0x783   :  { %v526_v14 = vadd.f32 0.5, %v525_v8 }
 0x784   :  { %760 = vrot.lane.b32.xlu0 %v435_v34, %s5319_s22 }
 0x785   :  { %v527_v15 = vsel %vm5438_vm4, %v5197_v7, %v526_v14 }
 0x786   :  { %v528_v25 = vmul.f32 0.0, %v527_v15 }
 0x7f2   :  { %v753_v9 = vpop.permute.xlu0 %752 }
 0x7f3   :  { %v755_v11 = vmul.f32 %v753_v9, %v738_v52  ;;  %v556_v52 = vld [vmem:[%s6686_s8 + $0x30] sm:$0xff] }
 0x7f4   :  { %v5691_v12 = vpack.c.bf16 %v557_v59, %v556_v52 }
 0x7f5   :  { %757 = vrot.lane.b32.xlu1 %v755_v11, %s5320_s23 }
 0x7f6   :  { %v761_v16 = vpop.permute.xlu0 %760  ;;  %4875 = vmatpush3.bf16.msra.mxu0 %v5691_v12 }
 0x7f7   :  { %4894 = vmatprep.subr.bf16.mxu0 %v5316_v0 }
 0x7f9   :  { %530 = vrot.lane.b32.xlu1 %v527_v15, %s5319_s22 }
 0x867   :  { %v5637_v18 = vpop.permute.xlu1 %757 }
 0x868   :  { %v763_v19 = vsel %vm228_vm5, %v5637_v18, %v761_v16 }
 0x869   :  { %4366 = vmatmul.mubr.msk.f32.vlgmr.msra.gmra.mrb[6].mxu1 %vm339_vm6, %v763_v19 }
 0x86a   :  { %4403 = vmatprep.mubr.msk.f32.mxu1 %vm5317_vm1, %v5318_v4  ;;  %4908 = vmatpush3.bf16.msra.mxu1 %v5658_v40 }
 0x86b   :  { %v531_v21 = vpop.permute.xlu1 %530  ;;  %4909 = vmatprep.subr.bf16.mxu1 %v5316_v0 }
 0x86c   :  { %v533_v23 = vmul.f32 %v531_v21, %v527_v15 }
 0x86e   :  { %535 = vrot.lane.b32.xlu1 %v533_v23, %s5320_s23  ;;  %4911 = vmatpush3.bf16.msra.mxu1 %v5667_v44 }
 0x86f   :  { %4912 = vmatprep.subr.bf16.mxu1 %v5316_v0 }
 0x872   :  { %4914 = vmatpush3.bf16.msra.mxu1 %v5679_v49 }
 0x873   :  { %4915 = vmatprep.subr.bf16.mxu1 %v5316_v0 }
 0x876   :  { %4917 = vmatpush3.bf16.msra.mxu1 %v5691_v12 }
 0x877   :  { %4936 = vmatprep.subr.bf16.mxu1 %v5316_v0 }
 0x8e0   :  { %v536_v26 = vpop.permute.xlu1 %535 }
 0x8e1   :  { %v5645_v28 = vadd.f32 %v536_v26, %v528_v25 }
 0x8e3   :  { %5198 = vtanh.f32 %v5645_v28 }
 0x8ed   :  { %v5199_v29 = vpop.eup %5198 }
 0x8ee   :  { %541 = vrot.lane.b32.xlu1 %v5199_v29, %s5319_s22 }
 0x93c   :  { %v841_v30 = vpop.f32.mrb[6].mxu1 }
 0x93d   :  { %v842_v33 = vadd.f32 %v5538_v61, %v841_v30  ;;  %v4367_v34 = vpop.f32.mrb[7].mxu1  ;;  %v191_v30 = vadd.f32 %v5435_v13, %v5521_v54 }
 0x93f   :  { %v845_v35 = vmul.f32 0.5, %v842_v33 }
 0x941   :  { %v846_v36 = vsel %vm5438_vm4, %v842_v33, %v845_v35 }
 0x942   :  { %5200 = vtanh.f32 %v846_v36 }
 0x94c   :  { %v5201_v48 = vpop.eup %5200 }
 0x94d   :  { %v848_v51 = vmul.f32 0.5, %v5201_v48 }
 0x94f   :  { %v849_v60 = vadd.f32 0.5, %v848_v51 }
 0x951   :  { %v850_v62 = vsel %vm5438_vm4, %v5201_v48, %v849_v60 }
 0x952   :  { %853 = vrot.lane.b32.xlu0 %v850_v62, %s5319_s22  ;;  %v851_v9 = vmul.f32 %v850_v62, %v5547_v17 }
 0x960   :  { %v542_v1 = vpop.permute.xlu1 %541 }
 0x961   :  { %v544_v3 = vmul.f32 %v542_v1, %v527_v15 }
 0x963   :  { %546 = vrot.lane.b32.xlu1 %v544_v3, %s5320_s23 }
 0x967   :  { %872 = vrot.lane.b32.xlu1 %v544_v3, %s5319_s22 }
 0x9c4   :  { %v854_v6 = vpop.permute.xlu0 %853 }
 0x9c5   :  { %v856_v31 = vmul.f32 %v854_v6, %v850_v62 }
 0x9c7   :  { %858 = vrot.lane.b32.xlu0 %v856_v31, %s5320_s23 }
 0x9d5   :  { %v547_v7 = vpop.permute.xlu1 %546 }
 0x9d6   :  { %v549_v8 = vsel %vm228_vm5, %v547_v7, 0.0 }
 0x9d7   :  { %4336 = vmatmul.mubr.msk.f32.vlgmr.msra.gmra.mrb[10].mxu0 %vm339_vm6, %v549_v8 }
 0x9d8   :  { %4896 = vmatpush3.bf16.msra.mxu0 %v5559_v22  ;;  %4384 = vmatprep.mubr.msk.f32.mxu0 %vm5317_vm1, %v5318_v4 }
 0x9d9   :  { %4897 = vmatprep.subr.bf16.mxu0 %v5316_v0  ;;  %v873_v25 = vpop.permute.xlu1 %872 }
 0x9dc   :  { %4899 = vmatpush3.bf16.msra.mxu0 %v5565_v24 }
 0x9dd   :  { %4900 = vmatprep.subr.bf16.mxu0 %v5316_v0 }
 0x9e0   :  { %4902 = vmatpush3.bf16.msra.mxu0 %v5575_v27 }
 0x9e1   :  { %4903 = vmatprep.subr.bf16.mxu0 %v5316_v0 }
 0x9e4   :  { %4905 = vmatpush3.bf16.msra.mxu0 %v5586_v32 }
 0x9e5   :  { %4918 = vmatprep.subr.bf16.mxu0 %v5316_v0 }
 0xa39   :  { %v859_v11 = vpop.permute.xlu0 %858 }
 0xa3a   :  { %v5719_v14 = vadd.f32 %v859_v11, %v851_v9 }
 0xa3c   :  { %5202 = vtanh.f32 %v5719_v14 }
 0xa46   :  { %v5203_v15 = vpop.eup %5202 }
 0xa47   :  { %864 = vrot.lane.b32.xlu0 %v5203_v15, %s5319_s22 }
 0xaaa   :  { %v627_v16 = vpop.f32.mrb[10].mxu0 }
 0xaab   :  { %v4337_v19 = vpop.f32.mrb[11].mxu0 }
 0xab9   :  { %v865_v21 = vpop.permute.xlu0 %864 }
 0xaba   :  { %v867_v23 = vmul.f32 %v865_v21, %v850_v62 }
 0xabc   :  { %869 = vrot.lane.b32.xlu0 %v867_v23, %s5320_s23 }
 0xb2e   :  { %v870_v26 = vpop.permute.xlu0 %869 }
 0xb2f   :  { %v875_v29 = vsel %vm228_vm5, %v870_v26, %v873_v25 }
 0xb30   :  { %4385 = vmatmul.mubr.msk.f32.vlgmr.msra.gmra.mrb[12].mxu0 %vm339_vm6, %v875_v29 }
 0xb31   :  { %4920 = vmatpush3.bf16.msra.mxu0 %v5404_v5  ;;  %4414 = vmatprep.mubr.msk.f32.mxu0 %vm5317_vm1, %v5318_v4 }
 0xb32   :  { %4921 = vmatprep.subr.bf16.mxu0 %v5316_v0 }
 0xb35   :  { %4923 = vmatpush3.bf16.msra.mxu0 %v5421_v10 }
 0xb36   :  { %4924 = vmatprep.subr.bf16.mxu0 %v5316_v0 }
 0xb38   :  { %4415 = vmatmul.mubr.msk.f32.vlgmr.msra.gmra.mrb[14].mxu0 %vm228_vm5, %v5637_v18 }
 0xb39   :  { %4926 = vmatpush3.bf16.msra.mxu0 %v5470_v38  ;;  %4433 = vmatprep.mubr.msk.f32.mxu0 %vm5317_vm1, %v5318_v4 }
 0xb3a   :  { %4927 = vmatprep.subr.bf16.mxu0 %v5316_v0 }
 0xb3d   :  { %4929 = vmatpush3.bf16.msra.mxu0 %v5481_v41 }
 0xb3e   :  { %4930 = vmatprep.subr.bf16.mxu0 %v5316_v0 }
 0xb41   :  { %4932 = vmatpush3.bf16.msra.mxu0 %v5499_v46 }
 0xb42   :  { %4933 = vmatprep.subr.bf16.mxu0 %v5316_v0 }
 0xb45   :  { %4935 = vmatpush3.bf16.msra.mxu0 %v5513_v50 }
 0xb46   :  { %4948 = vmatprep.subr.bf16.mxu0 %v5316_v0 }
 0xc03   :  { %v953_v17 = vpop.f32.mrb[12].mxu0 }
 0xc04   :  { %v4386_v18 = vpop.f32.mrb[13].mxu0  ;;  %v954_v54 = vadd.f32 %v5628_v2, %v953_v17 }
 0xc06   :  { %v957_v51 = vmul.f32 0.5, %v954_v54 }
 0xc08   :  { %v958_v52 = vsel %vm5438_vm4, %v954_v54, %v957_v51 }
 0xc0b   :  { %v1166_v33 = vpop.f32.mrb[14].mxu0 }
 0xc0c   :  { %v1170_v34 = vadd.f32 %v1166_v33, %v191_v30  ;;  %v4416_v35 = vpop.f32.mrb[15].mxu0 }
 0xc0e   :  { %v1171_v36 = vmul.f32 0.5, %v1170_v34 }
 0xc10   :  { %v1172_v37 = vsel %vm5438_vm4, %v1170_v34, %v1171_v36 }
 0xc11   :  { %5204 = vtanh.f32 %v1172_v37 }
 0xc12   :  { %5206 = vtanh.f32 %v958_v52 }
 0xc1b   :  { %v5205_v39 = vpop.eup %5204 }
 0xc1c   :  { %v1174_v42 = vmul.f32 0.5, %v5205_v39  ;;  %v5207_v1 = vpop.eup %5206 }
 0xc1d   :  { %v960_v6 = vmul.f32 0.5, %v5207_v1 }
 0xc1e   :  { %v1175_v43 = vadd.f32 0.5, %v1174_v42 }
 0xc1f   :  { %v961_v31 = vadd.f32 0.5, %v960_v6 }
 0xc20   :  { %v1176_v45 = vsel %vm5438_vm4, %v5205_v39, %v1175_v43 }
 0xc21   :  { %1179 = vrot.lane.b32.xlu0 %v1176_v45, %s5319_s22  ;;  %v1177_v59 = vmul.f32 %v1176_v45, %v5620_v63  ;;  %v5763_v7 = vsel %vm5438_vm4, %v5207_v1, %v961_v31  ;;  %v5770_v63 = vld [vmem:[%s6687_s9] ss:$0 sm:$0xff] }
 0xc22   :  { %v628_v8 = vadd.f32 %v5770_v63, %v627_v16 }
 0xc24   :  { %v631_v9 = vmul.f32 0.5, %v628_v8 }
 0xc26   :  { %v632_v11 = vsel %vm5438_vm4, %v628_v8, %v631_v9 }
 0xc93   :  { %v1180_v47 = vpop.permute.xlu0 %1179 }
 0xc94   :  { %v1182_v48 = vmul.f32 %v1180_v47, %v1176_v45 }
 0xc96   :  { %1184 = vrot.lane.b32.xlu1 %v1182_v48, %s5320_s23 }
 0xd08   :  { %v1185_v60 = vpop.permute.xlu1 %1184 }
 0xd09   :  { %v5756_v62 = vadd.f32 %v1185_v60, %v1177_v59 }
 0xd0b   :  { %5208 = vtanh.f32 %v5756_v62 }
 0xd0c   :  { %5210 = vtanh.f32 %v632_v11 }
 0xd15   :  { %v5209_v3 = vpop.eup %5208 }
 0xd16   :  { %1190 = vrot.lane.b32.xlu0 %v5209_v3, %s5319_s22  ;;  %v5211_v15 = vpop.eup %5210  ;;  %v963_v3 = vmul.f32 %v5763_v7, %v5645_v28 }
 0xd17   :  { %v634_v19 = vmul.f32 0.5, %v5211_v15 }
 0xd19   :  { %v635_v25 = vadd.f32 0.5, %v634_v19 }
 0xd1a   :  { %1198 = vrot.lane.b32.xlu0 %v867_v23, %s5319_s22 }
 0xd1b   :  { %v636_v26 = vsel %vm5438_vm4, %v5211_v15, %v635_v25 }
 0xd1c   :  { %v637_v43 = vmul.f32 0.0, %v636_v26 }
 0xd1e   :  { %965 = vrot.lane.b32.xlu0 %v5763_v7, %s5319_s22 }
 0xd88   :  { %v1191_v21 = vpop.permute.xlu0 %1190 }
 0xd89   :  { %v1193_v23 = vmul.f32 %v1191_v21, %v1176_v45 }
 0xd8b   :  { %1195 = vrot.lane.b32.xlu1 %v1193_v23, %s5320_s23 }
 0xd8c   :  { %v1199_v29 = vpop.permute.xlu0 %1198 }
 0xd8f   :  { %639 = vrot.lane.b32.xlu1 %v636_v26, %s5319_s22 }
 0xd90   :  { %v966_v39 = vpop.permute.xlu0 %965 }
 0xd91   :  { %v968_v52 = vmul.f32 %v966_v39, %v5763_v7 }
 0xdfd   :  { %v5779_v17 = vpop.permute.xlu1 %1195 }
 0xdfe   :  { %v1201_v16 = vsel %vm228_vm5, %v5779_v17, %v1199_v29 }
 0xdff   :  { %4434 = vmatmul.mubr.msk.f32.vlgmr.msra.gmra.mrb[16].mxu0 %vm339_vm6, %v1201_v16 }
 0xe00   :  { %4950 = vmatpush3.bf16.msra.mxu0 %v5658_v40  ;;  %4471 = vmatprep.mubr.msk.f32.mxu0 %vm5317_vm1, %v5318_v4 }
 0xe01   :  { %v640_v18 = vpop.permute.xlu1 %639  ;;  %4951 = vmatprep.subr.bf16.mxu0 %v5316_v0 }
 0xe02   :  { %v642_v30 = vmul.f32 %v640_v18, %v636_v26 }
 0xe04   :  { %644 = vrot.lane.b32.xlu0 %v642_v30, %s5320_s23  ;;  %4953 = vmatpush3.bf16.msra.mxu0 %v5667_v44 }
 0xe05   :  { %4954 = vmatprep.subr.bf16.mxu0 %v5316_v0 }
 0xe08   :  { %4956 = vmatpush3.bf16.msra.mxu0 %v5679_v49 }
 0xe09   :  { %4957 = vmatprep.subr.bf16.mxu0 %v5316_v0 }
 0xe0c   :  { %4959 = vmatpush3.bf16.msra.mxu0 %v5691_v12 }
 0xe0d   :  { %4978 = vmatprep.subr.bf16.mxu0 %v5316_v0 }
 0xe76   :  { %v645_v42 = vpop.permute.xlu0 %644 }
 0xe77   :  { %v5798_v45 = vadd.f32 %v645_v42, %v637_v43 }
 0xed2   :  { %v1279_v33 = vpop.f32.mrb[16].mxu0 }
 0xed3   :  { %v1280_v34 = vadd.f32 %v5538_v61, %v1279_v33  ;;  %v4435_v35 = vpop.f32.mrb[17].mxu0 }
 0xed5   :  { %v1283_v36 = vmul.f32 0.5, %v1280_v34 }
 0xed7   :  { %v1284_v37 = vsel %vm5438_vm4, %v1280_v34, %v1283_v36  ;;  %v196_v36 = vadd.f32 %v5519_v53, %v5435_v13 }
 0xed8   :  { %5212 = vtanh.f32 %v1284_v37 }
 0xed9   :  { %5214 = vtanh.f32 %v5798_v45 }
 0xee2   :  { %v5213_v47 = vpop.eup %5212 }
 0xee3   :  { %v1286_v48 = vmul.f32 0.5, %v5213_v47  ;;  %v5215_v59 = vpop.eup %5214 }
 0xee5   :  { %v1287_v54 = vadd.f32 0.5, %v1286_v48 }
 0xee7   :  { %v1288_v51 = vsel %vm5438_vm4, %v5213_v47, %v1287_v54 }
 0xee8   :  { %1291 = vrot.lane.b32.xlu1 %v1288_v51, %s5319_s22  ;;  %v1289_v9 = vmul.f32 %v1288_v51, %v5719_v14 }
 0xeec   :  { %970 = vrot.lane.b32.xlu1 %v968_v52, %s5320_s23 }
 0xef0   :  { %650 = vrot.lane.b32.xlu1 %v5215_v59, %s5319_s22 }
 0xf5a   :  { %v1292_v60 = vpop.permute.xlu1 %1291 }
 0xf5b   :  { %v1294_v1 = vmul.f32 %v1292_v60, %v1288_v51 }
 0xf5d   :  { %1296 = vrot.lane.b32.xlu0 %v1294_v1, %s5320_s23 }
 0xf5e   :  { %v971_v6 = vpop.permute.xlu1 %970 }
 0xf5f   :  { %v5810_v31 = vadd.f32 %v971_v6, %v963_v3 }
 0xf61   :  { %5216 = vtanh.f32 %v5810_v31 }
 0xf62   :  { %v651_v21 = vpop.permute.xlu1 %650 }
 0xf63   :  { %v5819_v23 = vmul.f32 %v651_v21, %v636_v26 }
 0xf6b   :  { %v5217_v8 = vpop.eup %5216 }
 0xf6c   :  { %976 = vrot.lane.b32.xlu0 %v5217_v8, %s5319_s22 }
 0xfcf   :  { %v1297_v11 = vpop.permute.xlu0 %1296 }
 0xfd0   :  { %v5815_v15 = vadd.f32 %v1297_v11, %v1289_v9 }
 0xfd2   :  { %5218 = vtanh.f32 %v5815_v15 }
 0xfdc   :  { %v5219_v19 = vpop.eup %5218 }
 0xfdd   :  { %1302 = vrot.lane.b32.xlu1 %v5219_v19, %s5319_s22 }
 0xfde   :  { %v977_v28 = vpop.permute.xlu0 %976 }
 0xfdf   :  { %v979_v25 = vmul.f32 %v977_v28, %v5763_v7 }
 0xfe1   :  { %981 = vrot.lane.b32.xlu0 %v979_v25, %s5320_s23  ;;  %984 = vrot.lane.b32.xlu1 %v5819_v23, %s5319_s22 }
 0xfe5   :  { %1310 = vrot.lane.b32.xlu1 %v979_v25, %s5319_s22 }
0x104f   :  { %v1303_v14 = vpop.permute.xlu1 %1302 }
0x1050   :  { %v5826_v29 = vmul.f32 %v1303_v14, %v1288_v51 }
0x1052   :  { %1307 = vrot.lane.b32.xlu0 %v5826_v29, %s5320_s23 }
0x1053   :  { %v982_v16 = vpop.permute.xlu0 %981  ;;  %v985_v18 = vpop.permute.xlu1 %984 }
0x1054   :  { %v987_v26 = vsel %vm228_vm5, %v982_v16, %v985_v18 }
0x1055   :  { %4404 = vmatmul.mubr.msk.f32.vlgmr.msra.gmra.mrb[8].mxu1 %vm339_vm6, %v987_v26 }
0x1056   :  { %4938 = vmatpush3.bf16.msra.mxu1 %v5559_v22  ;;  %4452 = vmatprep.mubr.msk.f32.mxu1 %vm5317_vm1, %v5318_v4 }
0x1057   :  { %4939 = vmatprep.subr.bf16.mxu1 %v5316_v0  ;;  %v1311_v7 = vpop.permute.xlu1 %1310 }
0x105a   :  { %4941 = vmatpush3.bf16.msra.mxu1 %v5565_v24 }
0x105b   :  { %4942 = vmatprep.subr.bf16.mxu1 %v5316_v0 }
0x105e   :  { %4944 = vmatpush3.bf16.msra.mxu1 %v5575_v27 }
0x105f   :  { %4945 = vmatprep.subr.bf16.mxu1 %v5316_v0 }
0x1062   :  { %4947 = vmatpush3.bf16.msra.mxu1 %v5586_v32 }
0x1063   :  { %4960 = vmatprep.subr.bf16.mxu1 %v5316_v0 }
0x10c4   :  { %v1308_v30 = vpop.permute.xlu0 %1307 }
0x10c5   :  { %v1313_v33 = vsel %vm228_vm5, %v1308_v30, %v1311_v7 }
0x10c6   :  { %4453 = vmatmul.mubr.msk.f32.vlgmr.msra.gmra.mrb[10].mxu1 %vm339_vm6, %v1313_v33 }
0x10c7   :  { %4962 = vmatpush3.bf16.msra.mxu1 %v5404_v5  ;;  %4482 = vmatprep.mubr.msk.f32.mxu1 %vm5317_vm1, %v5318_v4 }
0x10c8   :  { %4963 = vmatprep.subr.bf16.mxu1 %v5316_v0 }
0x10cb   :  { %4965 = vmatpush3.bf16.msra.mxu1 %v5421_v10 }
0x10cc   :  { %4966 = vmatprep.subr.bf16.mxu1 %v5316_v0 }
0x10ce   :  { %4483 = vmatmul.mubr.msk.f32.vlgmr.msra.gmra.mrb[12].mxu1 %vm228_vm5, %v5779_v17 }
0x10cf   :  { %4968 = vmatpush3.bf16.msra.mxu1 %v5470_v38  ;;  %4501 = vmatprep.mubr.msk.f32.mxu1 %vm5317_vm1, %v5318_v4 }
0x10d0   :  { %4969 = vmatprep.subr.bf16.mxu1 %v5316_v0 }
0x10d3   :  { %4971 = vmatpush3.bf16.msra.mxu1 %v5481_v41 }
0x10d4   :  { %4972 = vmatprep.subr.bf16.mxu1 %v5316_v0 }
0x10d7   :  { %4974 = vmatpush3.bf16.msra.mxu1 %v5499_v46 }
0x10d8   :  { %4975 = vmatprep.subr.bf16.mxu1 %v5316_v0 }
0x10db   :  { %4977 = vmatpush3.bf16.msra.mxu1 %v5513_v50 }
0x10dc   :  { %4990 = vmatprep.subr.bf16.mxu1 %v5316_v0 }
0x1128   :  { %v1065_v17 = vpop.f32.mrb[8].mxu1 }
0x1129   :  { %v4405_v34 = vpop.f32.mrb[9].mxu1 }
0x1199   :  { %v1391_v38 = vpop.f32.mrb[10].mxu1 }
0x119a   :  { %v4454_v35 = vpop.f32.mrb[11].mxu1  ;;  %v1392_v13 = vadd.f32 %v5628_v2, %v1391_v38 }
0x119c   :  { %v1395_v53 = vmul.f32 0.5, %v1392_v13 }
0x119e   :  { %v1396_v52 = vsel %vm5438_vm4, %v1392_v13, %v1395_v53 }
0x11a1   :  { %v1604_v37 = vpop.f32.mrb[12].mxu1 }
0x11a2   :  { %v1608_v39 = vadd.f32 %v1604_v37, %v196_v36  ;;  %v4484_v41 = vpop.f32.mrb[13].mxu1 }
0x11a4   :  { %v1609_v42 = vmul.f32 0.5, %v1608_v39 }
0x11a6   :  { %v1610_v46 = vsel %vm5438_vm4, %v1608_v39, %v1609_v42 }
0x11a7   :  { %5220 = vtanh.f32 %v1610_v46 }
0x11a8   :  { %5222 = vtanh.f32 %v1396_v52 }
0x11b1   :  { %v5221_v43 = vpop.eup %5220 }
0x11b2   :  { %v1612_v47 = vmul.f32 0.5, %v5221_v43  ;;  %v5223_v3 = vpop.eup %5222 }
0x11b3   :  { %v1398_v8 = vmul.f32 0.5, %v5223_v3 }
0x11b4   :  { %v1613_v50 = vadd.f32 0.5, %v1612_v47 }
0x11b5   :  { %v1399_v9 = vadd.f32 0.5, %v1398_v8 }
0x11b6   :  { %v1614_v48 = vsel %vm5438_vm4, %v5221_v43, %v1613_v50 }
0x11b7   :  { %1617 = vrot.lane.b32.xlu0 %v1614_v48, %s5319_s22  ;;  %v1615_v59 = vmul.f32 %v1614_v48, %v5756_v62  ;;  %v5882_v11 = vsel %vm5438_vm4, %v5223_v3, %v1399_v9  ;;  %v1066_v62 = vadd.f32 %v5770_v63, %v1065_v17 }
0x11b8   :  { %v1401_v50 = vmul.f32 %v5882_v11, %v5810_v31 }
0x11b9   :  { %v1069_v19 = vmul.f32 0.5, %v1066_v62 }
0x11bb   :  { %v1070_v21 = vsel %vm5438_vm4, %v1066_v62, %v1069_v19 }
0x1229   :  { %v1618_v54 = vpop.permute.xlu0 %1617 }
0x122a   :  { %v1620_v51 = vmul.f32 %v1618_v54, %v1614_v48 }
0x122c   :  { %1622 = vrot.lane.b32.xlu1 %v1620_v51, %s5320_s23 }
0x129e   :  { %v1623_v60 = vpop.permute.xlu1 %1622 }
0x129f   :  { %v5874_v1 = vadd.f32 %v1623_v60, %v1615_v59 }
0x12a1   :  { %5224 = vtanh.f32 %v5874_v1 }
0x12a2   :  { %5226 = vtanh.f32 %v1070_v21 }
0x12ab   :  { %v5225_v6 = vpop.eup %5224 }
0x12ac   :  { %1628 = vrot.lane.b32.xlu0 %v5225_v6, %s5319_s22  ;;  %v5227_v28 = vpop.eup %5226 }
0x12ad   :  { %v1072_v25 = vmul.f32 0.5, %v5227_v28 }
0x12af   :  { %v1073_v18 = vadd.f32 0.5, %v1072_v25  ;;  %v5972_v25 = vld [vmem:[%s6681_s3] ss:$0 sm:$0xff] }
0x12b0   :  { %1636 = vrot.lane.b32.xlu0 %v5826_v29, %s5319_s22 }
0x12b1   :  { %v1074_v29 = vsel %vm5438_vm4, %v5227_v28, %v1073_v18 }
0x12b2   :  { %v1075_v39 = vmul.f32 %v1074_v29, %v5798_v45 }
0x12b4   :  { %1403 = vrot.lane.b32.xlu0 %v5882_v11, %s5319_s22 }
0x131e   :  { %v1629_v14 = vpop.permute.xlu0 %1628 }
0x131f   :  { %v1631_v16 = vmul.f32 %v1629_v14, %v1614_v48  ;;  %v201_v14 = vadd.f32 %v5972_v25, %v5525_v56 }
0x1321   :  { %1633 = vrot.lane.b32.xlu1 %v1631_v16, %s5320_s23 }
0x1322   :  { %v1637_v26 = vpop.permute.xlu0 %1636 }
0x1325   :  { %1077 = vrot.lane.b32.xlu1 %v1074_v29, %s5319_s22 }
0x1393   :  { %v5893_v7 = vpop.permute.xlu1 %1633 }
0x1394   :  { %v1639_v30 = vsel %vm228_vm5, %v5893_v7, %v1637_v26 }
0x1395   :  { %4502 = vmatmul.mubr.msk.f32.vlgmr.msra.gmra.mrb[14].mxu1 %vm339_vm6, %v1639_v30 }
0x1396   :  { %4992 = vmatpush3.bf16.msra.mxu1 %v5658_v40  ;;  %4539 = vmatprep.mubr.msk.f32.mxu1 %vm5317_vm1, %v5318_v4 }
0x1397   :  { %v1078_v33 = vpop.permute.xlu1 %1077  ;;  %4993 = vmatprep.subr.bf16.mxu1 %v5316_v0 }
0x1398   :  { %v1080_v17 = vmul.f32 %v1078_v33, %v1074_v29 }
0x139a   :  { %1082 = vrot.lane.b32.xlu0 %v1080_v17, %s5320_s23  ;;  %4995 = vmatpush3.bf16.msra.mxu1 %v5667_v44  ;;  %v1404_v44 = vpop.permute.xlu0 %1403 }
0x139b   :  { %4996 = vmatprep.subr.bf16.mxu1 %v5316_v0  ;;  %v1406_v46 = vmul.f32 %v1404_v44, %v5882_v11 }
0x139e   :  { %4998 = vmatpush3.bf16.msra.mxu1 %v5679_v49 }
0x139f   :  { %4999 = vmatprep.subr.bf16.mxu1 %v5316_v0 }
0x13a2   :  { %5001 = vmatpush3.bf16.msra.mxu1 %v5691_v12 }
0x13a3   :  { %5020 = vmatprep.subr.bf16.mxu1 %v5316_v0 }
0x140c   :  { %v1083_v37 = vpop.permute.xlu0 %1082 }
0x140d   :  { %v5913_v49 = vadd.f32 %v1083_v37, %v1075_v39 }
0x1468   :  { %v1717_v40 = vpop.f32.mrb[14].mxu1 }
0x1469   :  { %v1718_v34 = vadd.f32 %v5538_v61, %v1717_v40  ;;  %v4503_v38 = vpop.f32.mrb[15].mxu1 }
0x146b   :  { %v1721_v35 = vmul.f32 0.5, %v1718_v34 }
0x146d   :  { %v1722_v36 = vsel %vm5438_vm4, %v1718_v34, %v1721_v35 }
0x146e   :  { %5228 = vtanh.f32 %v1722_v36 }
0x146f   :  { %5230 = vtanh.f32 %v5913_v49 }
0x1478   :  { %v5229_v41 = vpop.eup %5228 }
0x1479   :  { %v1724_v42 = vmul.f32 0.5, %v5229_v41  ;;  %v5231_v43 = vpop.eup %5230 }
0x147b   :  { %v1725_v12 = vadd.f32 0.5, %v1724_v42  ;;  %v2080_v42 = vld [vmem:[%s6682_s4 + $0x10] sm:$0xff] }
0x147d   :  { %v1726_v61 = vsel %vm5438_vm4, %v5229_v41, %v1725_v12  ;;  %v2078_v41 = vld [vmem:[%s6682_s4] sm:$0xff] }
0x147e   :  { %1729 = vrot.lane.b32.xlu1 %v1726_v61, %s5319_s22  ;;  %v1727_v13 = vmul.f32 %v1726_v61, %v5815_v15 }
0x1482   :  { %1408 = vrot.lane.b32.xlu1 %v1406_v46, %s5320_s23 }
0x1486   :  { %1088 = vrot.lane.b32.xlu1 %v5231_v43, %s5319_s22 }
0x14f0   :  { %v1730_v45 = vpop.permute.xlu1 %1729 }
0x14f1   :  { %v1732_v47 = vmul.f32 %v1730_v45, %v1726_v61 }
0x14f3   :  { %1734 = vrot.lane.b32.xlu0 %v1732_v47, %s5320_s23  ;;  %v2082_v47 = vld [vmem:[%s6682_s4 + $0x20] sm:$0xff] }
0x14f4   :  { %v1409_v48 = vpop.permute.xlu1 %1408 }
0x14f5   :  { %v5925_v54 = vadd.f32 %v1409_v48, %v1401_v50  ;;  %v2083_v50 = vld [vmem:[%s6682_s4 + $0x28] sm:$0xff] }
0x14f6   :  { %v6015_v48 = vpack.c.bf16 %v2083_v50, %v2082_v47 }
0x14f7   :  { %5232 = vtanh.f32 %v5925_v54 }
0x14f8   :  { %v1089_v60 = vpop.permute.xlu1 %1088 }
0x14f9   :  { %v5934_v3 = vmul.f32 %v1089_v60, %v1074_v29 }
0x1501   :  { %v5233_v51 = vpop.eup %5232 }
0x1502   :  { %1414 = vrot.lane.b32.xlu0 %v5233_v51, %s5319_s22 }
0x1565   :  { %v1735_v53 = vpop.permute.xlu0 %1734 }
0x1566   :  { %v5930_v52 = vadd.f32 %v1735_v53, %v1727_v13  ;;  %v2084_v13 = vld [vmem:[%s6682_s4 + $0x30] sm:$0xff]  ;;  %v2085_v53 = vld [vmem:[%s6682_s4 + $0x38] sm:$0xff] }
0x1568   :  { %5234 = vtanh.f32 %v5930_v52 }
0x1572   :  { %v5235_v59 = vpop.eup %5234 }
0x1573   :  { %1740 = vrot.lane.b32.xlu1 %v5235_v59, %s5319_s22  ;;  %v6027_v59 = vpack.c.bf16 %v2085_v53, %v2084_v13  ;;  %v2190_v53 = vld [vmem:[%s6684_s6] sm:$0xff] }
0x1574   :  { %v1415_v31 = vpop.permute.xlu0 %1414 }
0x1575   :  { %v1417_v6 = vmul.f32 %v1415_v31, %v5882_v11 }
0x1577   :  { %1419 = vrot.lane.b32.xlu0 %v1417_v6, %s5320_s23  ;;  %1422 = vrot.lane.b32.xlu1 %v5934_v3, %s5319_s22 }
0x157b   :  { %1748 = vrot.lane.b32.xlu1 %v1417_v6, %s5319_s22 }
0x15e5   :  { %v1741_v15 = vpop.permute.xlu1 %1740 }
0x15e6   :  { %v5941_v8 = vmul.f32 %v1741_v15, %v1726_v61  ;;  %v2081_v61 = vld [vmem:[%s6682_s4 + $0x18] sm:$0xff] }
0x15e7   :  { %v6004_v46 = vpack.c.bf16 %v2081_v61, %v2080_v42 }
0x15e8   :  { %1745 = vrot.lane.b32.xlu0 %v5941_v8, %s5320_s23 }
0x15e9   :  { %v1420_v9 = vpop.permute.xlu0 %1419  ;;  %v1423_v62 = vpop.permute.xlu1 %1422 }
0x15ea   :  { %v1425_v19 = vsel %vm228_vm5, %v1420_v9, %v1423_v62 }
0x15eb   :  { %4472 = vmatmul.mubr.msk.f32.vlgmr.msra.gmra.mrb[18].mxu0 %vm339_vm6, %v1425_v19 }
0x15ec   :  { %4980 = vmatpush3.bf16.msra.mxu0 %v5559_v22  ;;  %4520 = vmatprep.mubr.msk.f32.mxu0 %vm5317_vm1, %v5318_v4 }
0x15ed   :  { %4981 = vmatprep.subr.bf16.mxu0 %v5316_v0  ;;  %v1749_v11 = vpop.permute.xlu1 %1748 }
0x15f0   :  { %4983 = vmatpush3.bf16.msra.mxu0 %v5565_v24 }
0x15f1   :  { %4984 = vmatprep.subr.bf16.mxu0 %v5316_v0 }
0x15f4   :  { %4986 = vmatpush3.bf16.msra.mxu0 %v5575_v27 }
0x15f5   :  { %4987 = vmatprep.subr.bf16.mxu0 %v5316_v0 }
0x15f8   :  { %4989 = vmatpush3.bf16.msra.mxu0 %v5586_v32 }
0x15f9   :  { %5002 = vmatprep.subr.bf16.mxu0 %v5316_v0 }
0x165a   :  { %v1746_v21 = vpop.permute.xlu0 %1745 }
0x165b   :  { %v1751_v22 = vsel %vm228_vm5, %v1746_v21, %v1749_v11 }
0x165c   :  { %4521 = vmatmul.mubr.msk.f32.vlgmr.msra.gmra.mrb[20].mxu0 %vm339_vm6, %v1751_v22 }
0x165d   :  { %5004 = vmatpush3.bf16.msra.mxu0 %v5404_v5  ;;  %4550 = vmatprep.mubr.msk.f32.mxu0 %vm5317_vm1, %v5318_v4 }
0x165e   :  { %5005 = vmatprep.subr.bf16.mxu0 %v5316_v0 }
0x1661   :  { %5007 = vmatpush3.bf16.msra.mxu0 %v5421_v10 }
0x1662   :  { %5008 = vmatprep.subr.bf16.mxu0 %v5316_v0 }
0x1664   :  { %4551 = vmatmul.mubr.msk.f32.vlgmr.msra.gmra.mrb[22].mxu0 %vm228_vm5, %v5893_v7 }
0x1665   :  { %4569 = vmatprep.mubr.msk.f32.mxu0 %vm5317_vm1, %v5318_v4 }
0x16be   :  { %v1503_v24 = vpop.f32.mrb[18].mxu0 }
0x16bf   :  { %v4473_v27 = vpop.f32.mrb[19].mxu0  ;;  %v1504_v31 = vadd.f32 %v5770_v63, %v1503_v24 }
0x16c1   :  { %v1507_v6 = vmul.f32 0.5, %v1504_v31 }
0x16c3   :  { %v1508_v15 = vsel %vm5438_vm4, %v1504_v31, %v1507_v6  ;;  %v2191_v31 = vld [vmem:[%s6684_s6 + $0x8] sm:$0xff] }
0x172f   :  { %v1829_v32 = vpop.f32.mrb[20].mxu0 }
0x1730   :  { %v4522_v28 = vpop.f32.mrb[21].mxu0  ;;  %v1830_v56 = vadd.f32 %v5628_v2, %v1829_v32  ;;  %v2079_v2 = vld [vmem:[%s6682_s4 + $0x8] sm:$0xff] }
0x1732   :  { %v1833_v35 = vmul.f32 0.5, %v1830_v56 }
0x1734   :  { %v1834_v36 = vsel %vm5438_vm4, %v1830_v56, %v1833_v35 }
0x1737   :  { %v2042_v16 = vpop.f32.mrb[22].mxu0 }
0x1738   :  { %v2046_v18 = vadd.f32 %v2042_v16, %v201_v14  ;;  %v4552_v29 = vpop.f32.mrb[23].mxu0  ;;  %v6056_v16 = vld [vmem:[%s6683_s5] ss:$0 sm:$0xff] }
0x173a   :  { %v2047_v26 = vmul.f32 0.5, %v2046_v18 }
0x173c   :  { %v2048_v7 = vsel %vm5438_vm4, %v2046_v18, %v2047_v26 }
0x173d   :  { %5236 = vtanh.f32 %v2048_v7 }
0x173e   :  { %5238 = vtanh.f32 %v1834_v36 }
0x1747   :  { %v5237_v30 = vpop.eup %5236 }
0x1748   :  { %v2050_v33 = vmul.f32 0.5, %v5237_v30  ;;  %v5239_v12 = vpop.eup %5238 }
0x1749   :  { %v1836_v45 = vmul.f32 0.5, %v5239_v12 }
0x174a   :  { %v2051_v17 = vadd.f32 0.5, %v2050_v33 }
0x174b   :  { %v1837_v51 = vadd.f32 0.5, %v1836_v45 }
0x174c   :  { %v2052_v40 = vsel %vm5438_vm4, %v5237_v30, %v2051_v17 }
0x174d   :  { %2055 = vrot.lane.b32.xlu0 %v2052_v40, %s5319_s22  ;;  %v2053_v44 = vmul.f32 %v2052_v40, %v5874_v1  ;;  %v5998_v1 = vpack.c.bf16 %v2079_v2, %v2078_v41  ;;  %v6031_v60 = vsel %vm5438_vm4, %v5239_v12, %v1837_v51 }
0x174e   :  { %v1839_v41 = vmul.f32 %v6031_v60, %v5925_v54 }
0x174f   :  { %5010 = vmatpush3.bf16.msra.mxu0 %v5998_v1 }
0x1750   :  { %5011 = vmatprep.subr.bf16.mxu0 %v5316_v0 }
0x1753   :  { %5013 = vmatpush3.bf16.msra.mxu0 %v6004_v46 }
0x1754   :  { %5014 = vmatprep.subr.bf16.mxu0 %v5316_v0 }
0x1757   :  { %5016 = vmatpush3.bf16.msra.mxu0 %v6015_v48 }
0x1758   :  { %5017 = vmatprep.subr.bf16.mxu0 %v5316_v0 }
0x175b   :  { %5019 = vmatpush3.bf16.msra.mxu0 %v6027_v59 }
0x175c   :  { %5032 = vmatprep.subr.bf16.mxu0 %v5316_v0 }
0x17bf   :  { %v2056_v34 = vpop.permute.xlu0 %2055 }
0x17c0   :  { %v2058_v38 = vmul.f32 %v2056_v34, %v2052_v40 }
0x17c2   :  { %2060 = vrot.lane.b32.xlu1 %v2058_v38, %s5320_s23 }
0x1834   :  { %v2061_v37 = vpop.permute.xlu1 %2060 }
0x1835   :  { %v5986_v39 = vadd.f32 %v2061_v37, %v2053_v44 }
0x1837   :  { %5240 = vtanh.f32 %v5986_v39 }
0x1838   :  { %5242 = vtanh.f32 %v1508_v15 }
0x1841   :  { %v5241_v43 = vpop.eup %5240 }
0x1842   :  { %2066 = vrot.lane.b32.xlu0 %v5241_v43, %s5319_s22 }
0x1846   :  { %2074 = vrot.lane.b32.xlu0 %v5941_v8, %s5319_s22  ;;  %v5243_v8 = vpop.eup %5242 }
0x1847   :  { %v1510_v9 = vmul.f32 0.5, %v5243_v8 }
0x1849   :  { %v1511_v11 = vadd.f32 0.5, %v1510_v9  ;;  %v2192_v9 = vld [vmem:[%s6684_s6 + $0x10] sm:$0xff] }
0x184a   :  { %1841 = vrot.lane.b32.xlu0 %v6031_v60, %s5319_s22 }
0x184b   :  { %v1512_v21 = vsel %vm5438_vm4, %v5243_v8, %v1511_v11 }
0x184c   :  { %v1513_v17 = vmul.f32 %v1512_v21, %v5913_v49 }
0x18b4   :  { %v2067_v62 = vpop.permute.xlu0 %2066 }
0x18b5   :  { %v2069_v19 = vmul.f32 %v2067_v62, %v2052_v40  ;;  %v2193_v62 = vld [vmem:[%s6684_s6 + $0x18] sm:$0xff] }
0x18b6   :  { %v6111_v11 = vpack.c.bf16 %v2193_v62, %v2192_v9 }
0x18b7   :  { %2071 = vrot.lane.b32.xlu1 %v2069_v19, %s5320_s23 }
0x18b8   :  { %v2075_v22 = vpop.permute.xlu0 %2074 }
0x18bb   :  { %1515 = vrot.lane.b32.xlu1 %v1512_v21, %s5319_s22 }
0x18bc   :  { %v1842_v30 = vpop.permute.xlu0 %1841 }
0x18bd   :  { %v1844_v36 = vmul.f32 %v1842_v30, %v6031_v60 }
0x1929   :  { %v6045_v27 = vpop.permute.xlu1 %2071 }
0x192a   :  { %v2077_v24 = vsel %vm228_vm5, %v6045_v27, %v2075_v22  ;;  %v2195_v22 = vld [vmem:[%s6684_s6 + $0x28] sm:$0xff] }
0x192b   :  { %4570 = vmatmul.mubr.msk.f32.vlgmr.msra.gmra.mrb[24].mxu0 %vm339_vm6, %v2077_v24 }
0x192c   :  { %4607 = vmatprep.mubr.msk.f32.mxu0 %vm5317_vm1, %v5318_v4 }
0x192d   :  { %v1516_v32 = vpop.permute.xlu1 %1515 }
0x192e   :  { %v1518_v28 = vmul.f32 %v1516_v32, %v1512_v21  ;;  %v2196_v32 = vld [vmem:[%s6684_s6 + $0x30] sm:$0xff] }
0x1930   :  { %1520 = vrot.lane.b32.xlu0 %v1518_v28, %s5320_s23  ;;  %v2197_v28 = vld [vmem:[%s6684_s6 + $0x38] sm:$0xff] }
0x19a2   :  { %v1521_v33 = vpop.permute.xlu0 %1520 }
0x19a3   :  { %v6062_v40 = vadd.f32 %v1521_v33, %v1513_v17  ;;  %v206_v17 = vadd.f32 %v5972_v25, %v5523_v55  ;;  %v6169_v55 = vld [vmem:[%s6685_s7] ss:$0 sm:$0xff] }
0x19fe   :  { %v2155_v14 = vpop.f32.mrb[24].mxu0 }
0x19ff   :  { %v2156_v18 = vadd.f32 %v6056_v16, %v2155_v14  ;;  %v4571_v29 = vpop.f32.mrb[25].mxu0  ;;  %v6133_v14 = vpack.c.bf16 %v2197_v28, %v2196_v32 }
0x1a01   :  { %v2159_v26 = vmul.f32 0.5, %v2156_v18 }
0x1a03   :  { %v2160_v7 = vsel %vm5438_vm4, %v2156_v18, %v2159_v26 }
0x1a04   :  { %5244 = vtanh.f32 %v2160_v7 }
0x1a05   :  { %5246 = vtanh.f32 %v6062_v40 }
0x1a0e   :  { %v5245_v34 = vpop.eup %5244 }
0x1a0f   :  { %v2162_v38 = vmul.f32 0.5, %v5245_v34  ;;  %v5247_v44 = vpop.eup %5246 }
0x1a11   :  { %v2163_v56 = vadd.f32 0.5, %v2162_v38 }
0x1a13   :  { %v2164_v35 = vsel %vm5438_vm4, %v5245_v34, %v2163_v56 }
0x1a14   :  { %2167 = vrot.lane.b32.xlu1 %v2164_v35, %s5319_s22  ;;  %v2165_v61 = vmul.f32 %v2164_v35, %v5930_v52 }
0x1a18   :  { %1846 = vrot.lane.b32.xlu1 %v1844_v36, %s5320_s23 }
0x1a1c   :  { %1526 = vrot.lane.b32.xlu1 %v5247_v44, %s5319_s22 }
0x1a86   :  { %v2168_v49 = vpop.permute.xlu1 %2167 }
0x1a87   :  { %v2170_v37 = vmul.f32 %v2168_v49, %v2164_v35 }
0x1a89   :  { %2172 = vrot.lane.b32.xlu0 %v2170_v37, %s5320_s23 }
0x1a8a   :  { %v1847_v2 = vpop.permute.xlu1 %1846 }
0x1a8b   :  { %v6074_v42 = vadd.f32 %v1847_v2, %v1839_v41 }
0x1a8d   :  { %5248 = vtanh.f32 %v6074_v42 }
0x1a8e   :  { %v1527_v50 = vpop.permute.xlu1 %1526 }
0x1a8f   :  { %v6083_v51 = vmul.f32 %v1527_v50, %v1512_v21  ;;  %v2194_v21 = vld [vmem:[%s6684_s6 + $0x20] sm:$0xff] }
0x1a90   :  { %v6123_v24 = vpack.c.bf16 %v2195_v22, %v2194_v21 }
0x1a97   :  { %v5249_v12 = vpop.eup %5248 }
0x1a98   :  { %1852 = vrot.lane.b32.xlu0 %v5249_v12, %s5319_s22 }
0x1afb   :  { %v2173_v43 = vpop.permute.xlu0 %2172 }
0x1afc   :  { %v6079_v45 = vadd.f32 %v2173_v43, %v2165_v61 }
0x1afe   :  { %5250 = vtanh.f32 %v6079_v45 }
0x1b08   :  { %v5251_v47 = vpop.eup %5250 }
0x1b09   :  { %2178 = vrot.lane.b32.xlu1 %v5251_v47, %s5319_s22 }
0x1b0a   :  { %v1853_v54 = vpop.permute.xlu0 %1852 }
0x1b0b   :  { %v1855_v13 = vmul.f32 %v1853_v54, %v6031_v60  ;;  %v6100_v60 = vpack.c.bf16 %v2191_v31, %v2190_v53 }
0x1b0d   :  { %1857 = vrot.lane.b32.xlu0 %v1855_v13, %s5320_s23  ;;  %1860 = vrot.lane.b32.xlu1 %v6083_v51, %s5319_s22 }
0x1b11   :  { %2186 = vrot.lane.b32.xlu1 %v1855_v13, %s5319_s22 }
0x1b7b   :  { %v2179_v52 = vpop.permute.xlu1 %2178 }
0x1b7c   :  { %v6096_v6 = vmul.f32 %v2179_v52, %v2164_v35 }
0x1b7e   :  { %2183 = vrot.lane.b32.xlu0 %v6096_v6, %s5320_s23 }
0x1b7f   :  { %v1858_v15 = vpop.permute.xlu0 %1857  ;;  %v1861_v8 = vpop.permute.xlu1 %1860 }
0x1b80   :  { %v1863_v19 = vsel %vm228_vm5, %v1858_v15, %v1861_v8 }
0x1b81   :  { %4540 = vmatmul.mubr.msk.f32.vlgmr.msra.gmra.mrb[16].mxu1 %vm339_vm6, %v1863_v19 }
0x1b82   :  { %5022 = vmatpush3.bf16.msra.mxu1 %v6100_v60  ;;  %4588 = vmatprep.mubr.msk.f32.mxu1 %vm5317_vm1, %v5318_v4 }
0x1b83   :  { %5023 = vmatprep.subr.bf16.mxu1 %v5316_v0  ;;  %v2187_v18 = vpop.permute.xlu1 %2186 }
0x1b86   :  { %5025 = vmatpush3.bf16.msra.mxu1 %v6111_v11 }
0x1b87   :  { %5026 = vmatprep.subr.bf16.mxu1 %v5316_v0 }
0x1b8a   :  { %5028 = vmatpush3.bf16.msra.mxu1 %v6123_v24 }
0x1b8b   :  { %5029 = vmatprep.subr.bf16.mxu1 %v5316_v0 }
0x1b8e   :  { %5031 = vmatpush3.bf16.msra.mxu1 %v6133_v14 }
0x1b8f   :  { %5044 = vmatprep.subr.bf16.mxu1 %v5316_v0 }
0x1bf0   :  { %v2184_v29 = vpop.permute.xlu0 %2183 }
0x1bf1   :  { %v2189_v26 = vsel %vm228_vm5, %v2184_v29, %v2187_v18 }
0x1bf2   :  { %4589 = vmatmul.mubr.msk.f32.vlgmr.msra.gmra.mrb[18].mxu1 %vm339_vm6, %v2189_v26 }
0x1bf3   :  { %5046 = vmatpush3.bf16.msra.mxu1 %v5404_v5  ;;  %4618 = vmatprep.mubr.msk.f32.mxu1 %vm5317_vm1, %v5318_v4 }
0x1bf4   :  { %5047 = vmatprep.subr.bf16.mxu1 %v5316_v0 }
0x1bf7   :  { %5049 = vmatpush3.bf16.msra.mxu1 %v5421_v10 }
0x1bf8   :  { %5050 = vmatprep.subr.bf16.mxu1 %v5316_v0 }
0x1bfa   :  { %4619 = vmatmul.mubr.msk.f32.vlgmr.msra.gmra.mrb[20].mxu1 %vm228_vm5, %v6045_v27 }
0x1bfb   :  { %5052 = vmatpush3.bf16.msra.mxu1 %v5998_v1  ;;  %4637 = vmatprep.mubr.msk.f32.mxu1 %vm5317_vm1, %v5318_v4 }
0x1bfc   :  { %5053 = vmatprep.subr.bf16.mxu1 %v5316_v0 }
0x1bff   :  { %5055 = vmatpush3.bf16.msra.mxu1 %v6004_v46 }
0x1c00   :  { %5056 = vmatprep.subr.bf16.mxu1 %v5316_v0 }
0x1c03   :  { %5058 = vmatpush3.bf16.msra.mxu1 %v6015_v48 }
0x1c04   :  { %5059 = vmatprep.subr.bf16.mxu1 %v5316_v0 }
0x1c07   :  { %5061 = vmatpush3.bf16.msra.mxu1 %v6027_v59 }
0x1c08   :  { %5074 = vmatprep.subr.bf16.mxu1 %v5316_v0 }
0x1c54   :  { %v1941_v27 = vpop.f32.mrb[16].mxu1 }
0x1c55   :  { %v4541_v7 = vpop.f32.mrb[17].mxu1 }
0x1cc5   :  { %v2267_v30 = vpop.f32.mrb[18].mxu1 }
0x1cc6   :  { %v4590_v33 = vpop.f32.mrb[19].mxu1  ;;  %v2268_v61 = vadd.f32 %v6169_v55, %v2267_v30 }
0x1cc8   :  { %v2271_v43 = vmul.f32 0.5, %v2268_v61 }
0x1cca   :  { %v2272_v47 = vsel %vm5438_vm4, %v2268_v61, %v2271_v43 }
0x1ccd   :  { %v2480_v34 = vpop.f32.mrb[20].mxu1 }
0x1cce   :  { %v2484_v38 = vadd.f32 %v2480_v34, %v206_v17  ;;  %v4620_v56 = vpop.f32.mrb[21].mxu1 }
0x1cd0   :  { %v2485_v35 = vmul.f32 0.5, %v2484_v38 }
0x1cd2   :  { %v2486_v36 = vsel %vm5438_vm4, %v2484_v38, %v2485_v35 }
0x1cd3   :  { %5252 = vtanh.f32 %v2486_v36 }
0x1cd4   :  { %5254 = vtanh.f32 %v2272_v47 }
0x1cdd   :  { %v5253_v44 = vpop.eup %5252 }
0x1cde   :  { %v2488_v49 = vmul.f32 0.5, %v5253_v44  ;;  %v5255_v52 = vpop.eup %5254 }
0x1cdf   :  { %v2274_v31 = vmul.f32 0.5, %v5255_v52 }
0x1ce0   :  { %v2489_v37 = vadd.f32 0.5, %v2488_v49 }
0x1ce1   :  { %v2275_v15 = vadd.f32 0.5, %v2274_v31 }
0x1ce2   :  { %v2490_v41 = vsel %vm5438_vm4, %v5253_v44, %v2489_v37 }
0x1ce3   :  { %2493 = vrot.lane.b32.xlu0 %v2490_v41, %s5319_s22  ;;  %v2491_v50 = vmul.f32 %v2490_v41, %v5986_v39  ;;  %v6183_v8 = vsel %vm5438_vm4, %v5255_v52, %v2275_v15  ;;  %v1942_v39 = vadd.f32 %v5770_v63, %v1941_v27  ;;  %v2303_v52 = vld [vmem:[%s6686_s8 + $0x8] sm:$0xff] }
0x1ce4   :  { %v2277_v43 = vmul.f32 %v6183_v8, %v6074_v42  ;;  %v2305_v42 = vld [vmem:[%s6686_s8 + $0x18] sm:$0xff] }
0x1ce5   :  { %v1945_v9 = vmul.f32 0.5, %v1942_v39 }
0x1ce7   :  { %v1946_v62 = vsel %vm5438_vm4, %v1942_v39, %v1945_v9  ;;  %v2306_v39 = vld [vmem:[%s6686_s8 + $0x20] sm:$0xff]  ;;  %v2307_v9 = vld [vmem:[%s6686_s8 + $0x28] sm:$0xff] }
0x1d55   :  { %v2494_v2 = vpop.permute.xlu0 %2493 }
0x1d56   :  { %v2496_v12 = vmul.f32 %v2494_v2, %v2490_v41 }
0x1d58   :  { %2498 = vrot.lane.b32.xlu1 %v2496_v12, %s5320_s23 }
0x1dca   :  { %v2499_v54 = vpop.permute.xlu1 %2498 }
0x1dcb   :  { %v6175_v13 = vadd.f32 %v2499_v54, %v2491_v50  ;;  %v2302_v54 = vld [vmem:[%s6686_s8] sm:$0xff] }
0x1dcc   :  { %v6235_v31 = vpack.c.bf16 %v2303_v52, %v2302_v54 }
0x1dcd   :  { %5256 = vtanh.f32 %v6175_v13 }
0x1dce   :  { %5258 = vtanh.f32 %v1946_v62  ;;  %5034 = vmatpush3.bf16.msra.mxu0 %v6235_v31 }
0x1dcf   :  { %5035 = vmatprep.subr.bf16.mxu0 %v5316_v0 }
0x1dd7   :  { %v5257_v53 = vpop.eup %5256 }
0x1dd8   :  { %2504 = vrot.lane.b32.xlu0 %v5257_v53, %s5319_s22  ;;  %v5259_v19 = vpop.eup %5258  ;;  %v2304_v53 = vld [vmem:[%s6686_s8 + $0x10] sm:$0xff] }
0x1dd9   :  { %v1948_v21 = vmul.f32 0.5, %v5259_v19  ;;  %v6241_v15 = vpack.c.bf16 %v2305_v42, %v2304_v53 }
0x1ddb   :  { %v1949_v28 = vadd.f32 0.5, %v1948_v21  ;;  %5037 = vmatpush3.bf16.msra.mxu0 %v6241_v15 }
0x1ddc   :  { %2512 = vrot.lane.b32.xlu0 %v6096_v6, %s5319_s22  ;;  %5038 = vmatprep.subr.bf16.mxu0 %v5316_v0 }
0x1ddd   :  { %v6193_v6 = vsel %vm5438_vm4, %v5259_v19, %v1949_v28  ;;  %v6254_v19 = vpack.c.bf16 %v2307_v9, %v2306_v39  ;;  %v2309_v28 = vld [vmem:[%s6686_s8 + $0x38] sm:$0xff] }
0x1dde   :  { %v1951_v35 = vmul.f32 %v6193_v6, %v6062_v40 }
0x1ddf   :  { %5040 = vmatpush3.bf16.msra.mxu0 %v6254_v19 }
0x1de0   :  { %2279 = vrot.lane.b32.xlu0 %v6183_v8, %s5319_s22  ;;  %5041 = vmatprep.subr.bf16.mxu0 %v5316_v0 }
0x1e4a   :  { %v2505_v22 = vpop.permute.xlu0 %2504 }
0x1e4b   :  { %v2507_v32 = vmul.f32 %v2505_v22, %v2490_v41 }
0x1e4d   :  { %2509 = vrot.lane.b32.xlu1 %v2507_v32, %s5320_s23  ;;  %v2308_v32 = vld [vmem:[%s6686_s8 + $0x30] sm:$0xff] }
0x1e4e   :  { %v2513_v63 = vpop.permute.xlu0 %2512 }
0x1e51   :  { %1953 = vrot.lane.b32.xlu1 %v6193_v6, %s5319_s22 }
0x1e52   :  { %v2280_v38 = vpop.permute.xlu0 %2279 }
0x1e53   :  { %v2282_v2 = vmul.f32 %v2280_v38, %v6183_v8 }
0x1ebf   :  { %v6197_v18 = vpop.permute.xlu1 %2509 }
0x1ec0   :  { %v2515_v29 = vsel %vm228_vm5, %v6197_v18, %v2513_v63 }
0x1ec1   :  { %4638 = vmatmul.mubr.msk.f32.vlgmr.msra.gmra.mrb[22].mxu1 %vm339_vm6, %v2515_v29  ;;  %v6272_v29 = vpack.c.bf16 %v2309_v28, %v2308_v32 }
0x1ec2   :  { %4675 = vmatprep.mubr.msk.f32.mxu1 %vm5317_vm1, %v5318_v4  ;;  %5076 = vmatpush3.bf16.msra.mxu1 %v6235_v31 }
0x1ec3   :  { %v1954_v26 = vpop.permute.xlu1 %1953  ;;  %5077 = vmatprep.subr.bf16.mxu1 %v5316_v0  ;;  %5043 = vmatpush3.bf16.msra.mxu0 %v6272_v29 }
0x1ec4   :  { %v1956_v27 = vmul.f32 %v1954_v26, %v6193_v6  ;;  %5062 = vmatprep.subr.bf16.mxu0 %v5316_v0 }
0x1ec6   :  { %1958 = vrot.lane.b32.xlu0 %v1956_v27, %s5320_s23  ;;  %5079 = vmatpush3.bf16.msra.mxu1 %v6241_v15 }
0x1ec7   :  { %5080 = vmatprep.subr.bf16.mxu1 %v5316_v0 }
0x1eca   :  { %5082 = vmatpush3.bf16.msra.mxu1 %v6254_v19 }
0x1ecb   :  { %5083 = vmatprep.subr.bf16.mxu1 %v5316_v0 }
0x1ece   :  { %5085 = vmatpush3.bf16.msra.mxu1 %v6272_v29 }
0x1ecf   :  { %5104 = vmatprep.subr.bf16.mxu1 %v5316_v0 }
0x1f38   :  { %v1959_v56 = vpop.permute.xlu0 %1958 }
0x1f39   :  { %v6211_v36 = vadd.f32 %v1959_v56, %v1951_v35 }
0x1f94   :  { %v2593_v7 = vpop.f32.mrb[22].mxu1 }
0x1f95   :  { %v2594_v30 = vadd.f32 %v6056_v16, %v2593_v7  ;;  %v4639_v33 = vpop.f32.mrb[23].mxu1 }
0x1f97   :  { %v2597_v17 = vmul.f32 0.5, %v2594_v30 }
0x1f99   :  { %v2598_v34 = vsel %vm5438_vm4, %v2594_v30, %v2597_v17 }
0x1f9a   :  { %5260 = vtanh.f32 %v2598_v34 }
0x1f9b   :  { %5262 = vtanh.f32 %v6211_v36 }
0x1fa4   :  { %v5261_v44 = vpop.eup %5260 }
0x1fa5   :  { %v2600_v49 = vmul.f32 0.5, %v5261_v44  ;;  %v5263_v12 = vpop.eup %5262 }
0x1fa7   :  { %v2601_v37 = vadd.f32 0.5, %v2600_v49 }
0x1fa9   :  { %v2602_v41 = vsel %vm5438_vm4, %v5261_v44, %v2601_v37 }
0x1faa   :  { %2605 = vrot.lane.b32.xlu1 %v2602_v41, %s5319_s22  ;;  %v2603_v21 = vmul.f32 %v2602_v41, %v6079_v45 }
0x1fae   :  { %2284 = vrot.lane.b32.xlu1 %v2282_v2, %s5320_s23 }
0x1fb2   :  { %1964 = vrot.lane.b32.xlu1 %v5263_v12, %s5319_s22 }
0x201c   :  { %v2606_v40 = vpop.permute.xlu1 %2605 }
0x201d   :  { %v2608_v61 = vmul.f32 %v2606_v40, %v2602_v41 }
0x201f   :  { %2610 = vrot.lane.b32.xlu0 %v2608_v61, %s5320_s23 }
0x2020   :  { %v2285_v47 = vpop.permute.xlu1 %2284 }
0x2021   :  { %v6223_v50 = vadd.f32 %v2285_v47, %v2277_v43 }
0x2023   :  { %5264 = vtanh.f32 %v6223_v50 }
0x2024   :  { %v1965_v26 = vpop.permute.xlu1 %1964 }
0x2025   :  { %v6281_v7 = vmul.f32 %v1965_v26, %v6193_v6 }
0x202d   :  { %v5265_v62 = vpop.eup %5264 }
0x202e   :  { %2290 = vrot.lane.b32.xlu0 %v5265_v62, %s5319_s22 }
0x2091   :  { %v2611_v22 = vpop.permute.xlu0 %2610 }
0x2092   :  { %v6270_v63 = vadd.f32 %v2611_v22, %v2603_v21 }
0x2094   :  { %5266 = vtanh.f32 %v6270_v63 }
0x209e   :  { %v5267_v45 = vpop.eup %5266 }
0x209f   :  { %2616 = vrot.lane.b32.xlu1 %v5267_v45, %s5319_s22 }
0x20a0   :  { %v2291_v27 = vpop.permute.xlu0 %2290 }
0x20a1   :  { %v2293_v30 = vmul.f32 %v2291_v27, %v6183_v8 }
0x20a3   :  { %2295 = vrot.lane.b32.xlu0 %v2293_v30, %s5320_s23  ;;  %2298 = vrot.lane.b32.xlu1 %v6281_v7, %s5319_s22 }
0x20a7   :  { %2624 = vrot.lane.b32.xlu1 %v2293_v30, %s5319_s22 }
0x2111   :  { %v2617_v33 = vpop.permute.xlu1 %2616 }
0x2112   :  { %v6288_v17 = vmul.f32 %v2617_v33, %v2602_v41  ;;  %v211_v41 = vadd.f32 %v5972_v25, %v5529_v58 }
0x2114   :  { %2621 = vrot.lane.b32.xlu0 %v6288_v17, %s5320_s23 }
0x2115   :  { %v2296_v34 = vpop.permute.xlu0 %2295  ;;  %v2299_v38 = vpop.permute.xlu1 %2298 }
0x2116   :  { %v2301_v6 = vsel %vm228_vm5, %v2296_v34, %v2299_v38 }
0x2117   :  { %4608 = vmatmul.mubr.msk.f32.vlgmr.msra.gmra.mrb[26].mxu0 %vm339_vm6, %v2301_v6 }
0x2118   :  { %5064 = vmatpush3.bf16.msra.mxu0 %v6100_v60  ;;  %4656 = vmatprep.mubr.msk.f32.mxu0 %vm5317_vm1, %v5318_v4 }
0x2119   :  { %5065 = vmatprep.subr.bf16.mxu0 %v5316_v0  ;;  %v2625_v8 = vpop.permute.xlu1 %2624 }
0x211c   :  { %5067 = vmatpush3.bf16.msra.mxu0 %v6111_v11 }
0x211d   :  { %5068 = vmatprep.subr.bf16.mxu0 %v5316_v0 }
0x2120   :  { %5070 = vmatpush3.bf16.msra.mxu0 %v6123_v24 }
0x2121   :  { %5071 = vmatprep.subr.bf16.mxu0 %v5316_v0 }
0x2124   :  { %5073 = vmatpush3.bf16.msra.mxu0 %v6133_v14 }
0x2125   :  { %5086 = vmatprep.subr.bf16.mxu0 %v5316_v0 }
0x2186   :  { %v2622_v56 = vpop.permute.xlu0 %2621 }
0x2187   :  { %v2627_v35 = vsel %vm228_vm5, %v2622_v56, %v2625_v8 }
0x2188   :  { %4657 = vmatmul.mubr.msk.f32.vlgmr.msra.gmra.mrb[28].mxu0 %vm339_vm6, %v2627_v35 }
0x2189   :  { %5088 = vmatpush3.bf16.msra.mxu0 %v5404_v5  ;;  %4686 = vmatprep.mubr.msk.f32.mxu0 %vm5317_vm1, %v5318_v4 }
0x218a   :  { %5089 = vmatprep.subr.bf16.mxu0 %v5316_v0 }
0x218d   :  { %5091 = vmatpush3.bf16.msra.mxu0 %v5421_v10 }
0x218e   :  { %5092 = vmatprep.subr.bf16.mxu0 %v5316_v0 }
0x2190   :  { %4687 = vmatmul.mubr.msk.f32.vlgmr.msra.gmra.mrb[30].mxu0 %vm228_vm5, %v6197_v18 }
0x2191   :  { %5094 = vmatpush3.bf16.msra.mxu0 %v5998_v1  ;;  %4705 = vmatprep.mubr.msk.f32.mxu0 %vm5317_vm1, %v5318_v4 }
0x2192   :  { %5095 = vmatprep.subr.bf16.mxu0 %v5316_v0 }
0x2195   :  { %5097 = vmatpush3.bf16.msra.mxu0 %v6004_v46 }
0x2196   :  { %5098 = vmatprep.subr.bf16.mxu0 %v5316_v0 }
0x2199   :  { %5100 = vmatpush3.bf16.msra.mxu0 %v6015_v48 }
0x219a   :  { %5101 = vmatprep.subr.bf16.mxu0 %v5316_v0 }
0x219d   :  { %5103 = vmatpush3.bf16.msra.mxu0 %v6027_v59 }
0x219e   :  { %5116 = vmatprep.subr.bf16.mxu0 %v5316_v0 }
0x21ea   :  { %v2379_v18 = vpop.f32.mrb[26].mxu0 }
0x21eb   :  { %v4609_v44 = vpop.f32.mrb[27].mxu0 }
0x225b   :  { %v2705_v49 = vpop.f32.mrb[28].mxu0 }
0x225c   :  { %v4658_v37 = vpop.f32.mrb[29].mxu0  ;;  %v2706_v58 = vadd.f32 %v6169_v55, %v2705_v49 }
0x225e   :  { %v2709_v9 = vmul.f32 0.5, %v2706_v58 }
0x2260   :  { %v2710_v62 = vsel %vm5438_vm4, %v2706_v58, %v2709_v9 }
0x2263   :  { %v2918_v2 = vpop.f32.mrb[30].mxu0 }
0x2264   :  { %v2922_v12 = vadd.f32 %v2918_v2, %v211_v41  ;;  %v4688_v40 = vpop.f32.mrb[31].mxu0 }
0x2266   :  { %v2923_v61 = vmul.f32 0.5, %v2922_v12 }
0x2268   :  { %v2924_v43 = vsel %vm5438_vm4, %v2922_v12, %v2923_v61 }
0x2269   :  { %5268 = vtanh.f32 %v2924_v43 }
0x226a   :  { %5270 = vtanh.f32 %v2710_v62 }
0x2273   :  { %v5269_v47 = vpop.eup %5268 }
0x2274   :  { %v2926_v54 = vmul.f32 0.5, %v5269_v47  ;;  %v5271_v28 = vpop.eup %5270 }
0x2275   :  { %v2712_v26 = vmul.f32 0.5, %v5271_v28 }
0x2276   :  { %v2927_v52 = vadd.f32 0.5, %v2926_v54 }
0x2277   :  { %v2713_v27 = vadd.f32 0.5, %v2712_v26 }
0x2278   :  { %v2928_v53 = vsel %vm5438_vm4, %v5269_v47, %v2927_v52 }
0x2279   :  { %2931 = vrot.lane.b32.xlu0 %v2928_v53, %s5319_s22  ;;  %v2929_v21 = vmul.f32 %v2928_v53, %v6175_v13  ;;  %v6344_v30 = vsel %vm5438_vm4, %v5271_v28, %v2713_v27  ;;  %v6351_v13 = vld [vmem:[%s6687_s9] ss:$0 sm:$0xff] }
0x227a   :  { %v2380_v33 = vadd.f32 %v6351_v13, %v2379_v18 }
0x227c   :  { %v2383_v34 = vmul.f32 0.5, %v2380_v33 }
0x227e   :  { %v2384_v38 = vsel %vm5438_vm4, %v2380_v33, %v2383_v34 }
0x22eb   :  { %v2932_v42 = vpop.permute.xlu0 %2931 }
0x22ec   :  { %v2934_v39 = vmul.f32 %v2932_v42, %v2928_v53 }
0x22ee   :  { %2936 = vrot.lane.b32.xlu1 %v2934_v39, %s5320_s23 }
0x2360   :  { %v2937_v22 = vpop.permute.xlu1 %2936 }
0x2361   :  { %v6336_v32 = vadd.f32 %v2937_v22, %v2929_v21 }
0x2363   :  { %5272 = vtanh.f32 %v6336_v32 }
0x2364   :  { %5274 = vtanh.f32 %v2384_v38 }
0x236d   :  { %v5273_v45 = vpop.eup %5272 }
0x236e   :  { %2942 = vrot.lane.b32.xlu0 %v5273_v45, %s5319_s22  ;;  %v2715_v45 = vmul.f32 %v6344_v30, %v6223_v50 }
0x2372   :  { %2950 = vrot.lane.b32.xlu0 %v6288_v17, %s5319_s22  ;;  %v5275_v17 = vpop.eup %5274 }
0x2373   :  { %v2386_v6 = vmul.f32 0.5, %v5275_v17 }
0x2375   :  { %v2387_v35 = vadd.f32 0.5, %v2386_v6 }
0x2376   :  { %2717 = vrot.lane.b32.xlu0 %v6344_v30, %s5319_s22 }
0x2377   :  { %v2388_v44 = vsel %vm5438_vm4, %v5275_v17, %v2387_v35 }
0x23e0   :  { %v2943_v8 = vpop.permute.xlu0 %2942 }
0x23e1   :  { %v2945_v56 = vmul.f32 %v2943_v8, %v2928_v53  ;;  %v2389_v53 = vmul.f32 %v2388_v44, %v6211_v36 }
0x23e3   :  { %2947 = vrot.lane.b32.xlu1 %v2945_v56, %s5320_s23 }
0x23e4   :  { %v2951_v49 = vpop.permute.xlu0 %2950 }
0x23e7   :  { %2391 = vrot.lane.b32.xlu1 %v2388_v44, %s5319_s22 }
0x23e8   :  { %v2718_v54 = vpop.permute.xlu0 %2717 }
0x23e9   :  { %v2720_v21 = vmul.f32 %v2718_v54, %v6344_v30 }
0x2455   :  { %v6360_v37 = vpop.permute.xlu1 %2947 }
0x2456   :  { %v2953_v18 = vsel %vm228_vm5, %v6360_v37, %v2951_v49 }
0x2457   :  { %4706 = vmatmul.mubr.msk.f32.vlgmr.msra.gmra.mrb[32].mxu0 %vm339_vm6, %v2953_v18 }
0x2458   :  { %5118 = vmatpush3.bf16.msra.mxu0 %v6235_v31  ;;  %4743 = vmatprep.mubr.msk.f32.mxu0 %vm5317_vm1, %v5318_v4 }
0x2459   :  { %v2392_v41 = vpop.permute.xlu1 %2391  ;;  %5119 = vmatprep.subr.bf16.mxu0 %v5316_v0 }
0x245a   :  { %v2394_v2 = vmul.f32 %v2392_v41, %v2388_v44 }
0x245c   :  { %2396 = vrot.lane.b32.xlu0 %v2394_v2, %s5320_s23  ;;  %5121 = vmatpush3.bf16.msra.mxu0 %v6241_v15 }
0x245d   :  { %5122 = vmatprep.subr.bf16.mxu0 %v5316_v0 }
0x2460   :  { %5124 = vmatpush3.bf16.msra.mxu0 %v6254_v19 }
0x2461   :  { %5125 = vmatprep.subr.bf16.mxu0 %v5316_v0 }
0x2464   :  { %5127 = vmatpush3.bf16.msra.mxu0 %v6272_v29 }
0x2465   :  { %5146 = vmatprep.subr.bf16.mxu0 %v5316_v0 }
0x24ce   :  { %v2397_v52 = vpop.permute.xlu0 %2396 }
0x24cf   :  { %v6380_v42 = vadd.f32 %v2397_v52, %v2389_v53 }
0x252a   :  { %v3031_v12 = vpop.f32.mrb[32].mxu0 }
0x252b   :  { %v3032_v40 = vadd.f32 %v6056_v16, %v3031_v12  ;;  %v4707_v61 = vpop.f32.mrb[33].mxu0 }
0x252d   :  { %v3035_v43 = vmul.f32 0.5, %v3032_v40 }
0x252f   :  { %v3036_v47 = vsel %vm5438_vm4, %v3032_v40, %v3035_v43  ;;  %v216_v40 = vadd.f32 %v5972_v25, %v5527_v57 }
0x2530   :  { %5276 = vtanh.f32 %v3036_v47 }
0x2531   :  { %5278 = vtanh.f32 %v6380_v42 }
0x253a   :  { %v5277_v39 = vpop.eup %5276 }
0x253b   :  { %v3038_v58 = vmul.f32 0.5, %v5277_v39  ;;  %v5279_v22 = vpop.eup %5278 }
0x253d   :  { %v3039_v9 = vadd.f32 0.5, %v3038_v58 }
0x253f   :  { %v3040_v62 = vsel %vm5438_vm4, %v5277_v39, %v3039_v9 }
0x2540   :  { %3043 = vrot.lane.b32.xlu1 %v3040_v62, %s5319_s22  ;;  %v3041_v34 = vmul.f32 %v3040_v62, %v6270_v63 }
0x2544   :  { %2722 = vrot.lane.b32.xlu1 %v2720_v21, %s5320_s23 }
0x2548   :  { %2402 = vrot.lane.b32.xlu1 %v5279_v22, %s5319_s22 }
0x25b2   :  { %v3044_v36 = vpop.permute.xlu1 %3043 }
0x25b3   :  { %v3046_v28 = vmul.f32 %v3044_v36, %v3040_v62 }
0x25b5   :  { %3048 = vrot.lane.b32.xlu0 %v3046_v28, %s5320_s23 }
0x25b6   :  { %v2723_v26 = vpop.permute.xlu1 %2722 }
0x25b7   :  { %v6392_v27 = vadd.f32 %v2723_v26, %v2715_v45 }
0x25b9   :  { %5280 = vtanh.f32 %v6392_v27 }
0x25ba   :  { %v2403_v8 = vpop.permute.xlu1 %2402 }
0x25bb   :  { %v6401_v56 = vmul.f32 %v2403_v8, %v2388_v44 }
0x25c3   :  { %v5281_v33 = vpop.eup %5280 }
0x25c4   :  { %2728 = vrot.lane.b32.xlu0 %v5281_v33, %s5319_s22 }
0x2627   :  { %v3049_v38 = vpop.permute.xlu0 %3048 }
0x2628   :  { %v6397_v17 = vadd.f32 %v3049_v38, %v3041_v34 }
0x262a   :  { %5282 = vtanh.f32 %v6397_v17 }
0x2634   :  { %v5283_v6 = vpop.eup %5282 }
0x2635   :  { %3054 = vrot.lane.b32.xlu1 %v5283_v6, %s5319_s22 }
0x2636   :  { %v2729_v50 = vpop.permute.xlu0 %2728 }
0x2637   :  { %v2731_v35 = vmul.f32 %v2729_v50, %v6344_v30 }
0x2639   :  { %2733 = vrot.lane.b32.xlu0 %v2731_v35, %s5320_s23  ;;  %2736 = vrot.lane.b32.xlu1 %v6401_v56, %s5319_s22 }
0x263d   :  { %3062 = vrot.lane.b32.xlu1 %v2731_v35, %s5319_s22 }
0x26a7   :  { %v3055_v63 = vpop.permute.xlu1 %3054 }
0x26a8   :  { %v6408_v49 = vmul.f32 %v3055_v63, %v3040_v62 }
0x26aa   :  { %3059 = vrot.lane.b32.xlu0 %v6408_v49, %s5320_s23 }
0x26ab   :  { %v2734_v18 = vpop.permute.xlu0 %2733  ;;  %v2737_v41 = vpop.permute.xlu1 %2736 }
0x26ac   :  { %v2739_v44 = vsel %vm228_vm5, %v2734_v18, %v2737_v41 }
0x26ad   :  { %4676 = vmatmul.mubr.msk.f32.vlgmr.msra.gmra.mrb[24].mxu1 %vm339_vm6, %v2739_v44 }
0x26ae   :  { %5106 = vmatpush3.bf16.msra.mxu1 %v6100_v60  ;;  %4724 = vmatprep.mubr.msk.f32.mxu1 %vm5317_vm1, %v5318_v4 }
0x26af   :  { %5107 = vmatprep.subr.bf16.mxu1 %v5316_v0  ;;  %v3063_v30 = vpop.permute.xlu1 %3062 }
0x26b2   :  { %5109 = vmatpush3.bf16.msra.mxu1 %v6111_v11 }
0x26b3   :  { %5110 = vmatprep.subr.bf16.mxu1 %v5316_v0 }
0x26b6   :  { %5112 = vmatpush3.bf16.msra.mxu1 %v6123_v24 }
0x26b7   :  { %5113 = vmatprep.subr.bf16.mxu1 %v5316_v0 }
0x26ba   :  { %5115 = vmatpush3.bf16.msra.mxu1 %v6133_v14 }
0x26bb   :  { %5128 = vmatprep.subr.bf16.mxu1 %v5316_v0 }
0x271c   :  { %v3060_v2 = vpop.permute.xlu0 %3059 }
0x271d   :  { %v3065_v12 = vsel %vm228_vm5, %v3060_v2, %v3063_v30 }
0x271e   :  { %4725 = vmatmul.mubr.msk.f32.vlgmr.msra.gmra.mrb[26].mxu1 %vm339_vm6, %v3065_v12 }
0x271f   :  { %5130 = vmatpush3.bf16.msra.mxu1 %v5404_v5  ;;  %4754 = vmatprep.mubr.msk.f32.mxu1 %vm5317_vm1, %v5318_v4 }
0x2720   :  { %5131 = vmatprep.subr.bf16.mxu1 %v5316_v0 }
0x2723   :  { %5133 = vmatpush3.bf16.msra.mxu1 %v5421_v10 }
0x2724   :  { %5134 = vmatprep.subr.bf16.mxu1 %v5316_v0 }
0x2726   :  { %4755 = vmatmul.mubr.msk.f32.vlgmr.msra.gmra.mrb[28].mxu1 %vm228_vm5, %v6360_v37 }
0x2727   :  { %5136 = vmatpush3.bf16.msra.mxu1 %v5998_v1  ;;  %4773 = vmatprep.mubr.msk.f32.mxu1 %vm5317_vm1, %v5318_v4 }
0x2728   :  { %5137 = vmatprep.subr.bf16.mxu1 %v5316_v0 }
0x272b   :  { %5139 = vmatpush3.bf16.msra.mxu1 %v6004_v46 }
0x272c   :  { %5140 = vmatprep.subr.bf16.mxu1 %v5316_v0 }
0x272f   :  { %5142 = vmatpush3.bf16.msra.mxu1 %v6015_v48 }
0x2730   :  { %5143 = vmatprep.subr.bf16.mxu1 %v5316_v0 }
0x2733   :  { %5145 = vmatpush3.bf16.msra.mxu1 %v6027_v59 }
0x2734   :  { %5158 = vmatprep.subr.bf16.mxu1 %v5316_v0 }
0x2780   :  { %v2817_v5 = vpop.f32.mrb[24].mxu1 }
0x2781   :  { %v4677_v10 = vpop.f32.mrb[25].mxu1 }
0x27f1   :  { %v3143_v1 = vpop.f32.mrb[26].mxu1 }
0x27f2   :  { %v4726_v37 = vpop.f32.mrb[27].mxu1  ;;  %v3144_v57 = vadd.f32 %v6169_v55, %v3143_v1 }
0x27f4   :  { %v3147_v25 = vmul.f32 0.5, %v3144_v57 }
0x27f6   :  { %v3148_v9 = vsel %vm5438_vm4, %v3144_v57, %v3147_v25 }
0x27f9   :  { %v3356_v61 = vpop.f32.mrb[28].mxu1 }
0x27fa   :  { %v3360_v43 = vadd.f32 %v3356_v61, %v216_v40  ;;  %v4756_v46 = vpop.f32.mrb[29].mxu1 }
0x27fc   :  { %v3361_v47 = vmul.f32 0.5, %v3360_v43 }
0x27fe   :  { %v3362_v48 = vsel %vm5438_vm4, %v3360_v43, %v3361_v47 }
0x27ff   :  { %5284 = vtanh.f32 %v3362_v48 }
0x2800   :  { %5286 = vtanh.f32 %v3148_v9 }
0x2809   :  { %v5285_v54 = vpop.eup %5284 }
0x280a   :  { %v3364_v52 = vmul.f32 0.5, %v5285_v54  ;;  %v5287_v36 = vpop.eup %5286 }
0x280b   :  { %v3150_v45 = vmul.f32 0.5, %v5287_v36 }
0x280c   :  { %v3365_v59 = vadd.f32 0.5, %v3364_v52 }
0x280d   :  { %v3151_v26 = vadd.f32 0.5, %v3150_v45 }
0x280e   :  { %v3366_v53 = vsel %vm5438_vm4, %v5285_v54, %v3365_v59 }
0x280f   :  { %3369 = vrot.lane.b32.xlu0 %v3366_v53, %s5319_s22  ;;  %v3367_v62 = vmul.f32 %v3366_v53, %v6336_v32  ;;  %v6464_v33 = vsel %vm5438_vm4, %v5287_v36, %v3151_v26  ;;  %v2818_v32 = vadd.f32 %v6351_v13, %v2817_v5 }
0x2810   :  { %v3153_v54 = vmul.f32 %v6464_v33, %v6392_v27 }
0x2811   :  { %v2821_v34 = vmul.f32 0.5, %v2818_v32 }
0x2813   :  { %v2822_v38 = vsel %vm5438_vm4, %v2818_v32, %v2821_v34 }
0x2881   :  { %v3370_v39 = vpop.permute.xlu0 %3369 }
0x2882   :  { %v3372_v58 = vmul.f32 %v3370_v39, %v3366_v53 }
0x2884   :  { %3374 = vrot.lane.b32.xlu1 %v3372_v58, %s5320_s23 }
0x28f6   :  { %v3375_v21 = vpop.permute.xlu1 %3374 }
0x28f7   :  { %v6456_v22 = vadd.f32 %v3375_v21, %v3367_v62 }
0x28f9   :  { %5288 = vtanh.f32 %v6456_v22 }
0x28fa   :  { %5290 = vtanh.f32 %v2822_v38 }
0x2903   :  { %v5289_v28 = vpop.eup %5288 }
0x2904   :  { %3380 = vrot.lane.b32.xlu0 %v5289_v28, %s5319_s22  ;;  %v5291_v6 = vpop.eup %5290 }
0x2905   :  { %v2824_v8 = vmul.f32 0.5, %v5291_v6 }
0x2907   :  { %v2825_v63 = vadd.f32 0.5, %v2824_v8 }
0x2908   :  { %3388 = vrot.lane.b32.xlu0 %v6408_v49, %s5319_s22 }
0x2909   :  { %v2826_v49 = vsel %vm5438_vm4, %v5291_v6, %v2825_v63 }
0x290c   :  { %3155 = vrot.lane.b32.xlu0 %v6464_v33, %s5319_s22 }
0x2976   :  { %v3381_v50 = vpop.permute.xlu0 %3380 }
0x2977   :  { %v3383_v35 = vmul.f32 %v3381_v50, %v3366_v53 }
0x2979   :  { %3385 = vrot.lane.b32.xlu1 %v3383_v35, %s5320_s23 }
0x297a   :  { %v3389_v18 = vpop.permute.xlu0 %3388 }
0x297d   :  { %2829 = vrot.lane.b32.xlu1 %v2826_v49, %s5319_s22 }
0x297e   :  { %v3156_v37 = vpop.permute.xlu0 %3155 }
0x297f   :  { %v3158_v46 = vmul.f32 %v3156_v37, %v6464_v33 }
0x29eb   :  { %v3386_v41 = vpop.permute.xlu1 %3385 }
0x29ec   :  { %v3391_v44 = vsel %vm228_vm5, %v3386_v41, %v3389_v18  ;;  %3881 = vst.msk [vmem:[%s6688_s13] sm:$0xff] %vm228_vm5, %v3386_v41 }
0x29ed   :  { %4774 = vmatmul.mubr.msk.f32.vlgmr.msra.gmra.mrb[30].mxu1 %vm339_vm6, %v3391_v44 }
0x29ee   :  { %5160 = vmatpush3.bf16.msra.mxu1 %v6235_v31  ;;  %4811 = vmatprep.mubr.msk.f32.mxu1 %vm5317_vm1, %v5318_v4 }
0x29ef   :  { %v2830_v30 = vpop.permute.xlu1 %2829  ;;  %5161 = vmatprep.subr.bf16.mxu1 %v5316_v0 }
0x29f0   :  { %v2832_v2 = vmul.f32 %v2830_v30, %v2826_v49 }
0x29f2   :  { %2834 = vrot.lane.b32.xlu0 %v2832_v2, %s5320_s23  ;;  %5163 = vmatpush3.bf16.msra.mxu1 %v6241_v15  ;;  %v2827_v15 = vmul.f32 %v2826_v49, %v6380_v42 }
0x29f3   :  { %5164 = vmatprep.subr.bf16.mxu1 %v5316_v0 }
0x29f6   :  { %5166 = vmatpush3.bf16.msra.mxu1 %v6254_v19 }
0x29f7   :  { %5167 = vmatprep.subr.bf16.mxu1 %v5316_v0 }
0x29fa   :  { %5169 = vmatpush3.bf16.msra.mxu1 %v6272_v29 }
0x2a64   :  { %v2835_v40 = vpop.permute.xlu0 %2834 }
0x2a65   :  { %v6495_v61 = vadd.f32 %v2835_v40, %v2827_v15 }
0x2ac0   :  { %v3469_v31 = vpop.f32.mrb[30].mxu1 }
0x2ac1   :  { %v3470_v12 = vadd.f32 %v6056_v16, %v3469_v31  ;;  %v4775_v5 = vpop.f32.mrb[31].mxu1 }
0x2ac3   :  { %v3473_v10 = vmul.f32 0.5, %v3470_v12 }
0x2ac5   :  { %v3474_v1 = vsel %vm5438_vm4, %v3470_v12, %v3473_v10 }
0x2ac6   :  { %5292 = vtanh.f32 %v3474_v1 }
0x2ac7   :  { %5294 = vtanh.f32 %v6495_v61 }
0x2ad0   :  { %v5293_v19 = vpop.eup %5292 }
0x2ad1   :  { %v3476_v43 = vmul.f32 0.5, %v5293_v19  ;;  %v5295_v47 = vpop.eup %5294 }
0x2ad3   :  { %v3477_v29 = vadd.f32 0.5, %v3476_v43 }
0x2ad5   :  { %v3478_v16 = vsel %vm5438_vm4, %v5293_v19, %v3477_v29 }
0x2ad6   :  { %3481 = vrot.lane.b32.xlu1 %v3478_v16, %s5319_s22  ;;  %v3479_v39 = vmul.f32 %v3478_v16, %v6397_v17 }
0x2ada   :  { %3160 = vrot.lane.b32.xlu1 %v3158_v46, %s5320_s23 }
0x2ade   :  { %2840 = vrot.lane.b32.xlu1 %v5295_v47, %s5319_s22 }
0x2b48   :  { %v3482_v42 = vpop.permute.xlu1 %3481 }
0x2b49   :  { %v3484_v48 = vmul.f32 %v3482_v42, %v3478_v16 }
0x2b4b   :  { %3486 = vrot.lane.b32.xlu0 %v3484_v48, %s5320_s23 }
0x2b4c   :  { %v3161_v52 = vpop.permute.xlu1 %3160 }
0x2b4d   :  { %v6507_v59 = vadd.f32 %v3161_v52, %v3153_v54 }
0x2b4f   :  { %5296 = vtanh.f32 %v6507_v59 }
0x2b50   :  { %v2841_v9 = vpop.permute.xlu1 %2840 }
0x2b51   :  { %v6516_v62 = vmul.f32 %v2841_v9, %v2826_v49 }
0x2b59   :  { %v5297_v53 = vpop.eup %5296 }
0x2b5a   :  { %3166 = vrot.lane.b32.xlu0 %v5297_v53, %s5319_s22 }
0x2bbd   :  { %v3487_v58 = vpop.permute.xlu0 %3486 }
0x2bbe   :  { %v6512_v57 = vadd.f32 %v3487_v58, %v3479_v39 }
0x2bc0   :  { %5298 = vtanh.f32 %v6512_v57 }
0x2bca   :  { %v5299_v25 = vpop.eup %5298 }
0x2bcb   :  { %3492 = vrot.lane.b32.xlu1 %v5299_v25, %s5319_s22 }
0x2bcc   :  { %v3167_v27 = vpop.permute.xlu0 %3166 }
0x2bcd   :  { %v3169_v21 = vmul.f32 %v3167_v27, %v6464_v33 }
0x2bcf   :  { %3171 = vrot.lane.b32.xlu0 %v3169_v21, %s5320_s23  ;;  %3174 = vrot.lane.b32.xlu1 %v6516_v62, %s5319_s22 }
0x2bd3   :  { %3500 = vrot.lane.b32.xlu1 %v3169_v21, %s5319_s22 }
0x2c3d   :  { %v3493_v17 = vpop.permute.xlu1 %3492 }
0x2c3e   :  { %v3495_v36 = vmul.f32 %v3493_v17, %v3478_v16 }
0x2c40   :  { %3497 = vrot.lane.b32.xlu0 %v3495_v36, %s5320_s23 }
0x2c41   :  { %v3172_v28 = vpop.permute.xlu0 %3171  ;;  %v3175_v45 = vpop.permute.xlu1 %3174 }
0x2c42   :  { %v3177_v26 = vsel %vm228_vm5, %v3172_v28, %v3175_v45 }
0x2c43   :  { %4744 = vmatmul.mubr.msk.f32.vlgmr.msra.gmra.mrb[34].mxu0 %vm339_vm6, %v3177_v26  ;;  %v3736_v26 = vld [vmem:[%s6689_s10 + $0x18] sm:$0xff] }
0x2c44   :  { %5148 = vmatpush3.bf16.msra.mxu0 %v6100_v60  ;;  %4792 = vmatprep.mubr.msk.f32.mxu0 %vm5317_vm1, %v5318_v4 }
0x2c45   :  { %5149 = vmatprep.subr.bf16.mxu0 %v5316_v0  ;;  %v3501_v33 = vpop.permute.xlu1 %3500 }
0x2c48   :  { %5151 = vmatpush3.bf16.msra.mxu0 %v6111_v11 }
0x2c49   :  { %5152 = vmatprep.subr.bf16.mxu0 %v5316_v0 }
0x2c4c   :  { %5154 = vmatpush3.bf16.msra.mxu0 %v6123_v24 }
0x2c4d   :  { %5155 = vmatprep.subr.bf16.mxu0 %v5316_v0 }
0x2c50   :  { %5157 = vmatpush3.bf16.msra.mxu0 %v6133_v14 }
0x2cb2   :  { %v3498_v32 = vpop.permute.xlu0 %3497 }
0x2cb3   :  { %v3503_v34 = vsel %vm228_vm5, %v3498_v32, %v3501_v33  ;;  %3973 = vst.msk [vmem:[%s6688_s13 + $0x10] sm:$0xff] %vm228_vm5, %v3498_v32 }
0x2cb4   :  { %4793 = vmatmul.mubr.msk.f32.vlgmr.msra.gmra.mrb[36].mxu0 %vm339_vm6, %v3503_v34 }
0x2d16   :  { %v3255_v4 = vpop.f32.mrb[34].mxu0 }
0x2d17   :  { %v3256_v60 = vadd.f32 %v6351_v13, %v3255_v4  ;;  %v4745_v11 = vpop.f32.mrb[35].mxu0 }
0x2d19   :  { %v3259_v24 = vmul.f32 0.5, %v3256_v60 }
0x2d1b   :  { %v3260_v0 = vsel %vm5438_vm4, %v3256_v60, %v3259_v24 }
0x2d1c   :  { %5300 = vtanh.f32 %v3260_v0 }
0x2d26   :  { %v5301_v14 = vpop.eup %5300 }
0x2d27   :  { %v3262_v38 = vmul.f32 0.5, %v5301_v14 }
0x2d29   :  { %v3263_v6 = vadd.f32 0.5, %v3262_v38 }
0x2d2b   :  { %v3264_v8 = vsel %vm5438_vm4, %v5301_v14, %v3263_v6 }
0x2d2c   :  { %3267 = vrot.lane.b32.xlu0 %v3264_v8, %s5319_s22  ;;  %v3265_v10 = vmul.f32 %v3264_v8, %v6495_v61 }
0x2d87   :  { %v3581_v50 = vpop.f32.mrb[36].mxu0 }
0x2d88   :  { %v3582_v35 = vadd.f32 %v6169_v55, %v3581_v50  ;;  %v4794_v63 = vpop.f32.mrb[37].mxu0 }
0x2d8a   :  { %v3585_v49 = vmul.f32 0.5, %v3582_v35 }
0x2d8c   :  { %v3586_v18 = vsel %vm5438_vm4, %v3582_v35, %v3585_v49 }
0x2d8d   :  { %5302 = vtanh.f32 %v3586_v18 }
0x2d97   :  { %v5303_v41 = vpop.eup %5302 }
0x2d98   :  { %v3588_v44 = vmul.f32 0.5, %v5303_v41 }
0x2d9a   :  { %v3589_v30 = vadd.f32 0.5, %v3588_v44 }
0x2d9c   :  { %v3590_v2 = vsel %vm5438_vm4, %v5303_v41, %v3589_v30  ;;  %v3963_v30 = vld [vmem:[%s6690_s11] ss:$0 sm:$0xff] }
0x2d9d   :  { %3593 = vrot.lane.b32.xlu1 %v3590_v2, %s5319_s22  ;;  %v3591_v15 = vmul.f32 %v3590_v2, %v6507_v59 }
0x2d9e   :  { %v3268_v31 = vpop.permute.xlu0 %3267 }
0x2d9f   :  { %v3270_v12 = vmul.f32 %v3268_v31, %v3264_v8 }
0x2da1   :  { %3272 = vrot.lane.b32.xlu0 %v3270_v12, %s5320_s23 }
0x2e0f   :  { %v3594_v5 = vpop.permute.xlu1 %3593 }
0x2e10   :  { %v3596_v55 = vmul.f32 %v3594_v5, %v3590_v2 }
0x2e12   :  { %3598 = vrot.lane.b32.xlu1 %v3596_v55, %s5320_s23 }
0x2e13   :  { %v3273_v1 = vpop.permute.xlu0 %3272 }
0x2e14   :  { %v3275_v37 = vadd.f32 %v3273_v1, %v3265_v10 }
0x2e16   :  { %5304 = vtanh.f32 %v3275_v37 }
0x2e20   :  { %v5305_v40 = vpop.eup %5304 }
0x2e21   :  { %3278 = vrot.lane.b32.xlu0 %v5305_v40, %s5319_s22 }
0x2e84   :  { %v3599_v19 = vpop.permute.xlu1 %3598 }
0x2e85   :  { %v3601_v43 = vadd.f32 %v3599_v19, %v3591_v15 }
0x2e87   :  { %5306 = vtanh.f32 %v3601_v43 }
0x2e91   :  { %v5307_v29 = vpop.eup %5306 }
0x2e92   :  { %3604 = vrot.lane.b32.xlu1 %v5307_v29, %s5319_s22 }
0x2e93   :  { %v3279_v16 = vpop.permute.xlu0 %3278 }
0x2e94   :  { %v3281_v46 = vmul.f32 %v3279_v16, %v3264_v8 }
0x2e96   :  { %3612 = vrot.lane.b32.xlu1 %v3281_v46, %s5319_s22 }
0x2f04   :  { %v3605_v47 = vpop.permute.xlu1 %3604 }
0x2f05   :  { %v3607_v61 = vmul.f32 %v3605_v47, %v3590_v2 }
0x2f07   :  { %3609 = vrot.lane.b32.xlu0 %v3607_v61, %s5320_s23 }
0x2f08   :  { %v3613_v42 = vpop.permute.xlu1 %3612 }
0x2f79   :  { %v3610_v48 = vpop.permute.xlu0 %3609 }
0x2f7a   :  { %v3615_v54 = vsel %vm228_vm5, %v3610_v48, %v3613_v42  ;;  %3975 = vst.msk [vmem:[%s6688_s13 + $0x20] sm:$0xff] %vm228_vm5, %v3610_v48 }
0x2f7b   :  { %4812 = vmatmul.mubr.msk.f32.vlgmr.msra.gmra.mrb[32].mxu1 %vm339_vm6, %v3615_v54 }
0x304e   :  { %v3693_v52 = vpop.f32.mrb[32].mxu1 }
0x304f   :  { %v3694_v59 = vadd.f32 %v6351_v13, %v3693_v52  ;;  %v4813_v53 = vpop.f32.mrb[33].mxu1 }
0x3051   :  { %v3697_v39 = vmul.f32 0.5, %v3694_v59 }
0x3053   :  { %v3698_v58 = vsel %vm5438_vm4, %v3694_v59, %v3697_v39 }
0x3054   :  { %5308 = vtanh.f32 %v3698_v58 }
0x305e   :  { %v5309_v25 = vpop.eup %5308 }
0x305f   :  { %v3700_v9 = vmul.f32 0.5, %v5309_v25 }
0x3061   :  { %v3701_v27 = vadd.f32 0.5, %v3700_v9 }
0x3063   :  { %v3702_v21 = vsel %vm5438_vm4, %v5309_v25, %v3701_v27 }
0x3064   :  { %3705 = vrot.lane.b32.xlu0 %v3702_v21, %s5319_s22  ;;  %v3703_v20 = vmul.f32 %v3702_v21, %v3275_v37 }
0x30d6   :  { %v3706_v17 = vpop.permute.xlu0 %3705 }
0x30d7   :  { %v3708_v36 = vmul.f32 %v3706_v17, %v3702_v21 }
0x30d9   :  { %3710 = vrot.lane.b32.xlu1 %v3708_v36, %s5320_s23 }
0x30dd   :  { %655 = vrot.lane.b32.xlu1 %v5819_v23, %s5320_s23  ;;  %v3733_v23 = vld [vmem:[%s6689_s10] sm:$0xff] }
0x30e1   :  { %1531 = vrot.lane.b32.xlu1 %v6083_v51, %s5320_s23  ;;  %v3734_v51 = vld [vmem:[%s6689_s10 + $0x8] sm:$0xff] }
0x30e5   :  { %2407 = vrot.lane.b32.xlu1 %v6401_v56, %s5320_s23  ;;  %v5170_v56 = vpack.c.bf16 %v3734_v51, %v3733_v23 }
0x30e7   :  { %5171 = vmatprep.subr.bf16.mxu0 %v5170_v56 }
0x30e8   :  { %5173 = vmatpush3.bf16.msra.mxu0 %v5170_v56 }
0x30e9   :  { %3283 = vrot.lane.b32.xlu1 %v3281_v46, %s5320_s23 }
0x30ed   :  { %3883 = vrot.lane.b32.xlu1 %v6456_v22, %s5321_s16  ;;  %v3735_v22 = vld [vmem:[%s6689_s10 + $0x10] sm:$0xff] }
0x30ee   :  { %v5174_v33 = vpack.c.bf16 %v3736_v26, %v3735_v22 }
0x30f0   :  { %5175 = vmatprep.subr.bf16.mxu0 %v5174_v33 }
0x30f1   :  { %3899 = vrot.lane.b32.xlu1 %v3601_v43, %s5321_s16  ;;  %5177 = vmatpush3.bf16.msra.mxu0 %v5174_v33 }
0x314b   :  { %v3711_v13 = vpop.permute.xlu1 %3710 }
0x314c   :  { %v3713_v28 = vadd.f32 %v3711_v13, %v3703_v20 }
0x314e   :  { %5310 = vtanh.f32 %v3713_v28 }
0x314f   :  { %v656_v45 = vpop.permute.xlu1 %655 }
0x3150   :  { %658 = vst.msk [vmem:[#allocation3] sm:$0xff] %vm228_vm5, %v656_v45 }
0x3153   :  { %v1532_v32 = vpop.permute.xlu1 %1531 }
0x3154   :  { %1534 = vst.msk [vmem:[#allocation3 + $0x10] sm:$0xff] %vm228_vm5, %v1532_v32 }
0x3157   :  { %v2408_v34 = vpop.permute.xlu1 %2407  ;;  %v3725_v4 = vld [vmem:[#allocation3] sm:$0xff] }
0x3158   :  { %v5311_v60 = vpop.eup %5310  ;;  %2410 = vst.msk [vmem:[#allocation3 + $0x20] sm:$0xff] %vm228_vm5, %v2408_v34  ;;  %4822 = vmatprep.mubr.msk.f32.mxu0 %vm228_vm5, %v3725_v4 }
0x3159   :  { %3716 = vrot.lane.b32.xlu0 %v5311_v60, %s5319_s22 }
0x315b   :  { %v3284_v11 = vpop.permute.xlu1 %3283 }
0x315c   :  { %3286 = vst.msk [vmem:[#allocation3 + $0x30] sm:$0xff] %vm228_vm5, %v3284_v11 }
0x315d   :  { %1093 = vrot.lane.b32.xlu0 %v5934_v3, %s5320_s23 }
0x315f   :  { %v3884_v24 = vpop.permute.xlu1 %3883  ;;  %v3729_v35 = vld [vmem:[#allocation3 + $0x20] sm:$0xff] }
0x3160   :  { %3972 = vst.msk [vmem:[%s6688_s13 + $0x8] sm:$0xff] %vm228_vm5, %v3884_v24 }
0x3161   :  { %1969 = vrot.lane.b32.xlu0 %v6281_v7, %s5320_s23 }
0x3163   :  { %v3900_v0 = vpop.permute.xlu1 %3899  ;;  %v3731_v63 = vld [vmem:[#allocation3 + $0x30] sm:$0xff] }
0x3164   :  { %3976 = vst.msk [vmem:[%s6688_s13 + $0x28] sm:$0xff] %vm228_vm5, %v3900_v0 }
0x3165   :  { %2845 = vrot.lane.b32.xlu0 %v6516_v62, %s5320_s23  ;;  %v3727_v62 = vld [vmem:[#allocation3 + $0x10] sm:$0xff] }
0x31cb   :  { %v3717_v14 = vpop.permute.xlu0 %3716 }
0x31cc   :  { %v3719_v3 = vmul.f32 %v3717_v14, %v3702_v21 }
0x31ce   :  { %3721 = vrot.lane.b32.xlu0 %v3719_v3, %s5320_s23 }
0x31cf   :  { %v1094_v38 = vpop.permute.xlu0 %1093 }
0x31d0   :  { %1096 = vst.msk [vmem:[#allocation3 + $0x8] sm:$0xff] %vm228_vm5, %v1094_v38 }
0x31d2   :  { %3891 = vrot.lane.b32.xlu0 %v6512_v57, %s5321_s16 }
0x31d3   :  { %v1970_v7 = vpop.permute.xlu0 %1969 }
0x31d4   :  { %1972 = vst.msk [vmem:[#allocation3 + $0x18] sm:$0xff] %vm228_vm5, %v1970_v7 }
0x31d6   :  { %3907 = vrot.lane.b32.xlu0 %v3713_v28, %s5321_s16 }
0x31d7   :  { %v2846_v6 = vpop.permute.xlu0 %2845  ;;  %v3726_v8 = vld [vmem:[#allocation3 + $0x8] sm:$0xff] }
0x31d8   :  { %2848 = vst.msk [vmem:[#allocation3 + $0x28] sm:$0xff] %vm228_vm5, %v2846_v6  ;;  %4823 = vmatmul.mubr.msk.f32.vlgmr.msra.gmra.mrb[38].mxu0 %vm228_vm5, %v3726_v8 }
0x31d9   :  { %4825 = vmatprep.mubr.msk.f32.mxu0 %vm228_vm5, %v3727_v62 }
0x31db   :  { %v3728_v50 = vld [vmem:[#allocation3 + $0x18] sm:$0xff] }
0x31dc   :  { %4826 = vmatmul.mubr.msk.f32.gmra.mrb[40].mxu0 %vm228_vm5, %v3728_v50 }
0x31dd   :  { %4828 = vmatprep.mubr.msk.f32.mxu0 %vm228_vm5, %v3729_v35 }
0x31df   :  { %v3730_v57 = vld [vmem:[#allocation3 + $0x28] sm:$0xff] }
0x31e0   :  { %4829 = vmatmul.mubr.msk.f32.gmra.mrb[42].mxu0 %vm228_vm5, %v3730_v57 }
0x31e1   :  { %4831 = vmatprep.mubr.msk.f32.mxu0 %vm228_vm5, %v3731_v63 }
0x3240   :  { %v3722_v49 = vpop.permute.xlu0 %3721 }
0x3241   :  { %3724 = vst.msk [vmem:[#allocation3 + $0x38] sm:$0xff] %vm228_vm5, %v3722_v49  ;;  %3977 = vst.msk [vmem:[%s6688_s13 + $0x30] sm:$0xff] %vm228_vm5, %v3722_v49 }
0x3244   :  { %v3892_v18 = vpop.permute.xlu0 %3891 }
0x3245   :  { %3974 = vst.msk [vmem:[%s6688_s13 + $0x18] sm:$0xff] %vm228_vm5, %v3892_v18 }
0x3248   :  { %v3908_v41 = vpop.permute.xlu0 %3907  ;;  %v3732_v44 = vld [vmem:[#allocation3 + $0x38] sm:$0xff] }
0x3249   :  { %3978 = vst.msk [vmem:[%s6688_s13 + $0x38] sm:$0xff] %vm228_vm5, %v3908_v41  ;;  %4832 = vmatmul.mubr.msk.f32.gmra.mrb[44].mxu0 %vm228_vm5, %v3732_v44 }
0x32ab   :  { %v4824_v2 = vpop.f32.mrb[38].mxu0 }
0x32ac   :  { %v3840_v31 = vadd.f32 %v4824_v2, %v3963_v30  ;;  %v3834_v12 = vpop.f32.mrb[39].mxu0 }
0x32ad   :  { %v3835_v5 = vadd.f32 %v3963_v30, %v3834_v12 }
0x32ae   :  { %3874 = vst.msk [vmem:[%s6691_s12 + $0x8] sm:$0xff] %vm89_vm0, %v3840_v31 }
0x32af   :  { %3873 = vst.msk [vmem:[%s6691_s12] sm:$0xff] %vm89_vm0, %v3835_v5  ;;  %v4827_v55 = vpop.f32.mrb[40].mxu0 }
0x32b0   :  { %v3850_v10 = vadd.f32 %v4827_v55, %v3963_v30  ;;  %v3844_v1 = vpop.f32.mrb[41].mxu0 }
0x32b1   :  { %v3845_v37 = vadd.f32 %v3963_v30, %v3844_v1 }
0x32b2   :  { %3876 = vst.msk [vmem:[%s6691_s12 + $0x18] sm:$0xff] %vm89_vm0, %v3850_v10 }
0x32b3   :  { %3875 = vst.msk [vmem:[%s6691_s12 + $0x10] sm:$0xff] %vm89_vm0, %v3845_v37  ;;  %v4830_v40 = vpop.f32.mrb[42].mxu0 }
0x32b4   :  { %v3860_v15 = vadd.f32 %v4830_v40, %v3963_v30  ;;  %v3854_v19 = vpop.f32.mrb[43].mxu0 }
0x32b5   :  { %v3855_v43 = vadd.f32 %v3963_v30, %v3854_v19 }
0x32b6   :  { %3878 = vst.msk [vmem:[%s6691_s12 + $0x28] sm:$0xff] %vm89_vm0, %v3860_v15 }
0x32b7   :  { %3877 = vst.msk [vmem:[%s6691_s12 + $0x20] sm:$0xff] %vm89_vm0, %v3855_v43 }
0x331c   :  { %v4833_v29 = vpop.f32.mrb[44].mxu0 }
0x331d   :  { %v3870_v16 = vadd.f32 %v4833_v29, %v3963_v30  ;;  %v3864_v46 = vpop.f32.mrb[45].mxu0 }
0x331e   :  { %v3865_v47 = vadd.f32 %v3963_v30, %v3864_v46 }
0x331f   :  { %3880 = vst.msk [vmem:[%s6691_s12 + $0x38] sm:$0xff] %vm89_vm0, %v3870_v16 }
0x3320   :  { %3879 = vst.msk [vmem:[%s6691_s12 + $0x30] sm:$0xff] %vm89_vm0, %v3865_v47 }

</bundles_post_ra>
